<compile_context>
chip_gen: v7x
topology: tpu7x:2x2x1
jax: 0.10.0
libtpu: 0.0.40
codegen_flags: <defaults>
</compile_context>

<pallas_src>
import functools
import math

import jax
import jax.numpy as jnp
from jax.experimental import pallas as pl
from jax.experimental.pallas import tpu as pltpu


# ---------------------------------------------------------------------------
# Pallas kernel: full 2-layer BiLSTM recurrence + FC head in one call.
# All tensors are small; everything is VMEM-resident.
# ---------------------------------------------------------------------------
def _bilstm_kernel(T, Bp, H,
                   gi0f_ref, gi0b_ref,                 # (T*Bp, 4H) precomputed
                   whh0f_ref, whh0b_ref,               # (H, 4H)
                   w1ff_ref, w1fb_ref, w1bf_ref, w1bb_ref,  # (H, 4H) each
                   whh1f_ref, whh1b_ref,               # (H, 4H)
                   b1f_ref, b1b_ref,                   # (1, 4H)
                   wfcf_ref, wfcb_ref, bfc_ref,        # (H, O), (H, O), (1, O)
                   out_ref,                            # (T*Bp, O)
                   seq0f_ref, seq0b_ref, seq1f_ref, seq1b_ref,  # (T*Bp, H)
                   gi1f_ref, gi1b_ref):                # (T*Bp, 4H)
    f32 = jnp.float32

    def lstm_scan(gi_ref, whh_ref, out_seq_ref, reverse):
        whh = whh_ref[...]                              # hoisted out of loop

        def step(s, carry):
            h, c = carry
            t = (T - 1 - s) if reverse else s
            row = pl.multiple_of(t * Bp, Bp)
            gates = gi_ref[pl.ds(row, Bp), :] + jnp.dot(
                h, whh, preferred_element_type=f32)     # (Bp, 4H), 1 MXU push
            i = jax.nn.sigmoid(gates[:, 0 * H:1 * H])
            f = jax.nn.sigmoid(gates[:, 1 * H:2 * H])
            g = jnp.tanh(gates[:, 2 * H:3 * H])
            o = jax.nn.sigmoid(gates[:, 3 * H:4 * H])
            c_new = f * c + i * g
            h_new = o * jnp.tanh(c_new)
            out_seq_ref[pl.ds(row, Bp), :] = h_new
            return (h_new, c_new)

        zeros = jnp.zeros((Bp, H), f32)
        jax.lax.fori_loop(0, T, step, (zeros, zeros), unroll=True)

    # ---- layer 0 (input projections were precomputed in the wrapper) -------
    lstm_scan(gi0f_ref, whh0f_ref, seq0f_ref, reverse=False)
    lstm_scan(gi0b_ref, whh0b_ref, seq0b_ref, reverse=True)

    # ---- layer 1 input projections: hoisted big matmuls (off serial path) --
    s0f = seq0f_ref[...]                                # (T*Bp, H)
    s0b = seq0b_ref[...]
    gi1f_ref[...] = (jnp.dot(s0f, w1ff_ref[...], preferred_element_type=f32)
                     + jnp.dot(s0b, w1fb_ref[...], preferred_element_type=f32)
                     + b1f_ref[...])
    gi1b_ref[...] = (jnp.dot(s0f, w1bf_ref[...], preferred_element_type=f32)
                     + jnp.dot(s0b, w1bb_ref[...], preferred_element_type=f32)
                     + b1b_ref[...])

    # ---- layer 1 recurrences ------------------------------------------------
    lstm_scan(gi1f_ref, whh1f_ref, seq1f_ref, reverse=False)
    lstm_scan(gi1b_ref, whh1b_ref, seq1b_ref, reverse=True)

    # ---- FC head: single batched matmul over all timesteps ------------------
    y = (jnp.dot(seq1f_ref[...], wfcf_ref[...], preferred_element_type=f32)
         + jnp.dot(seq1b_ref[...], wfcb_ref[...], preferred_element_type=f32)
         + bfc_ref[...])
    out_ref[...] = y.astype(out_ref.dtype)


# ---------------------------------------------------------------------------
# Wrapper: layout plumbing, batch padding, hoisted layer-0 input projection.
# ---------------------------------------------------------------------------
def bilstm_forward(x, params):
    """x: (B, T, I) float32 -> (B, T, O) float32 (matches BiLSTMModel.forward)."""
    B, T, I = x.shape
    H = params["whh0_f"].shape[0]
    O = params["wfc"].shape[-1]
    Bp = max(8, -(-B // 8) * 8)                         # pad batch to sublanes

    x_tm = jnp.transpose(x, (1, 0, 2)).astype(jnp.float32)   # (T, B, I)
    if Bp != B:
        x_tm = jnp.pad(x_tm, ((0, 0), (0, Bp - B), (0, 0)))
    x_flat = x_tm.reshape(T * Bp, I)                    # row = t*Bp + b

    # Hoisted layer-0 input projections (+ pre-summed biases): one matmul per
    # direction in plain XLA, off the kernel's sequential critical path.
    gi0f = x_flat @ params["wih0_f"] + params["b0_f"]   # (T*Bp, 4H)
    gi0b = x_flat @ params["wih0_b"] + params["b0_b"]

    # Split layer-1 / FC weights by which half (fwd/bwd) of the layer-0 concat
    # feeds them, so the kernel never concatenates along lanes.
    w1ff, w1fb = params["wih1_f"][:H], params["wih1_f"][H:]
    w1bf, w1bb = params["wih1_b"][:H], params["wih1_b"][H:]
    wfcf, wfcb = params["wfc"][:H], params["wfc"][H:]

    vmem = pl.BlockSpec(memory_space=pltpu.MemorySpace.VMEM)
    kernel = functools.partial(_bilstm_kernel, T, Bp, H)
    out_flat = pl.pallas_call(
        kernel,
        out_shape=jax.ShapeDtypeStruct((T * Bp, O), jnp.float32),
        in_specs=[vmem] * 15,
        out_specs=vmem,
        scratch_shapes=[
            pltpu.VMEM((T * Bp, H), jnp.float32),       # layer-0 fwd hiddens
            pltpu.VMEM((T * Bp, H), jnp.float32),       # layer-0 bwd hiddens
            pltpu.VMEM((T * Bp, H), jnp.float32),       # layer-1 fwd hiddens
            pltpu.VMEM((T * Bp, H), jnp.float32),       # layer-1 bwd hiddens
            pltpu.VMEM((T * Bp, 4 * H), jnp.float32),   # layer-1 fwd gi
            pltpu.VMEM((T * Bp, 4 * H), jnp.float32),   # layer-1 bwd gi
        ],
    )(gi0f, gi0b,
      params["whh0_f"], params["whh0_b"],
      w1ff, w1fb, w1bf, w1bb,
      params["whh1_f"], params["whh1_b"],
      params["b1_f"], params["b1_b"],
      wfcf, wfcb, params["bfc"])

    out = out_flat.reshape(T, Bp, O)[:, :B, :]          # drop batch padding
    return jnp.transpose(out, (1, 0, 2))                # back to (B, T, O)


# ---------------------------------------------------------------------------
# Deterministic PyTorch-style init.  Weights stored pre-transposed for x @ W,
# fused per gate: (in, 4H) with torch gate order i, f, g, o along the 4H axis.
# Biases pre-summed (b_ih + b_hh).
# ---------------------------------------------------------------------------
def init_params(key, input_dim=1, hidden_dim=64, output_dim=1):
    H, I, O = hidden_dim, input_dim, output_dim
    bound = 1.0 / math.sqrt(H)
    ks = iter(jax.random.split(key, 32))
    u = lambda shape: jax.random.uniform(next(ks), shape, jnp.float32,
                                         -bound, bound)
    p = {}
    for d in ("f", "b"):                                # forward / backward dir
        p[f"wih0_{d}"] = u((I, 4 * H))                  # layer 0: I   -> H
        p[f"whh0_{d}"] = u((H, 4 * H))
        p[f"b0_{d}"] = u((1, 4 * H)) + u((1, 4 * H))    # b_ih + b_hh
        p[f"wih1_{d}"] = u((2 * H, 4 * H))              # layer 1: 2H -> H
        p[f"whh1_{d}"] = u((H, 4 * H))
        p[f"b1_{d}"] = u((1, 4 * H)) + u((1, 4 * H))
    p["wfc"] = u((2 * H, O))                            # fc: 2H -> O
    p["bfc"] = u((1, O))
    return p


# ---------------------------------------------------------------------------
# Pure-JAX reference (same math as torch.nn.LSTM bidirectional + nn.Linear).
# ---------------------------------------------------------------------------
def reference_forward(x, p):
    B, T, _ = x.shape
    H = p["whh0_f"].shape[0]

    def lstm_dir(inp, wih, whh, bias, reverse):
        h = jnp.zeros((B, H), jnp.float32)
        c = jnp.zeros((B, H), jnp.float32)
        outs = [None] * T
        order = range(T - 1, -1, -1) if reverse else range(T)
        for t in order:
            gates = inp[:, t] @ wih + h @ whh + bias
            i = jax.nn.sigmoid(gates[:, 0 * H:1 * H])
            f = jax.nn.sigmoid(gates[:, 1 * H:2 * H])
            g = jnp.tanh(gates[:, 2 * H:3 * H])
            o = jax.nn.sigmoid(gates[:, 3 * H:4 * H])
            c = f * c + i * g
            h = o * jnp.tanh(c)
            outs[t] = h
        return jnp.stack(outs, axis=1)                  # (B, T, H)

    y0 = jnp.concatenate(
        [lstm_dir(x, p["wih0_f"], p["whh0_f"], p["b0_f"], False),
         lstm_dir(x, p["wih0_b"], p["whh0_b"], p["b0_b"], True)], axis=-1)
    y1 = jnp.concatenate(
        [lstm_dir(y0, p["wih1_f"], p["whh1_f"], p["b1_f"], False),
         lstm_dir(y0, p["wih1_b"], p["whh1_b"], p["b1_b"], True)], axis=-1)
    return y1 @ p["wfc"] + p["bfc"]


if __name__ == "__main__":
    B, T = 2, 8
    INPUT_DIM, HIDDEN_DIM, OUTPUT_DIM = 1, 64, 1

    key = jax.random.PRNGKey(0)
    k_x, k_p = jax.random.split(key)
    x = jax.random.normal(k_x, (B, T, INPUT_DIM), jnp.float32)
    params = init_params(k_p, INPUT_DIM, HIDDEN_DIM, OUTPUT_DIM)

    out = jax.block_until_ready(bilstm_forward(x, params))
    ref = jax.block_until_ready(reference_forward(x, params))

    assert out.shape == (B, T, OUTPUT_DIM), out.shape
    assert jnp.max(jnp.abs(out - ref)) < 1e-4, "mismatch vs JAX reference"

    print("KERNEL_OK")
</pallas_src>

<mosaic_0001>
module attributes {stable_mosaic.version = 11 : i64} {
  func.func @_bilstm_kernel(%arg0: memref<64x256xf32, #tpu.memory_space<vmem>>, %arg1: memref<64x256xf32, #tpu.memory_space<vmem>>, %arg2: memref<64x256xf32, #tpu.memory_space<vmem>>, %arg3: memref<64x256xf32, #tpu.memory_space<vmem>>, %arg4: memref<64x256xf32, #tpu.memory_space<vmem>>, %arg5: memref<64x256xf32, #tpu.memory_space<vmem>>, %arg6: memref<64x256xf32, #tpu.memory_space<vmem>>, %arg7: memref<64x256xf32, #tpu.memory_space<vmem>>, %arg8: memref<64x256xf32, #tpu.memory_space<vmem>>, %arg9: memref<64x256xf32, #tpu.memory_space<vmem>>, %arg10: memref<1x256xf32, #tpu.memory_space<vmem>>, %arg11: memref<1x256xf32, #tpu.memory_space<vmem>>, %arg12: memref<64x1xf32, #tpu.memory_space<vmem>>, %arg13: memref<64x1xf32, #tpu.memory_space<vmem>>, %arg14: memref<1x1xf32, #tpu.memory_space<vmem>>, %arg15: memref<64x1xf32, #tpu.memory_space<vmem>>, %arg16: memref<64x64xf32, #tpu.memory_space<vmem>>, %arg17: memref<64x64xf32, #tpu.memory_space<vmem>>, %arg18: memref<64x64xf32, #tpu.memory_space<vmem>>, %arg19: memref<64x64xf32, #tpu.memory_space<vmem>>, %arg20: memref<64x256xf32, #tpu.memory_space<vmem>>, %arg21: memref<64x256xf32, #tpu.memory_space<vmem>>) attributes {dimension_semantics = [], scalar_prefetch = 0 : i64, scratch_operands = 6 : i64, tpu.core_type = #tpu.core_type<tc>} {
    %c0 = arith.constant 0 : index
    %c0_0 = arith.constant 0 : index
    %0 = vector.load %arg2[%c0, %c0_0] : memref<64x256xf32, #tpu.memory_space<vmem>>, vector<64x256xf32>
    %cst = arith.constant 0.000000e+00 : f32
    %1 = vector.broadcast %cst : f32 to vector<8x64xf32>
    %c0_i32 = arith.constant 0 : i32
    %c8_i32 = arith.constant 8 : i32
    %2 = arith.muli %c0_i32, %c8_i32 : i32
    %3 = tpu.assume_multiple %2, 8 : i32
    %4 = arith.index_cast %3 : i32 to index
    %c0_1 = arith.constant 0 : index
    %5 = vector.load %arg0[%4, %c0_1] : memref<64x256xf32, #tpu.memory_space<vmem>>, vector<8x256xf32>
    %cst_2 = arith.constant dense<0.000000e+00> : vector<8x256xf32>
    %6 = tpu.matmul %1, %0, %cst_2 {dimension_numbers = #tpu.dot_dimension_numbers<[1], [0], [0], [1], [0, 0, 1, 1], [], []>} : vector<8x64xf32>, vector<64x256xf32>, vector<8x256xf32> -> vector<8x256xf32>
    %7 = arith.addf %5, %6 : vector<8x256xf32>
    %8 = vector.extract_strided_slice %7 {offsets = [0, 0], sizes = [8, 64], strides = [1, 1]} : vector<8x256xf32> to vector<8x64xf32>
    %9 = arith.negf %8 : vector<8x64xf32>
    %10 = math.exp %9 : vector<8x64xf32>
    %cst_3 = arith.constant 1.000000e+00 : f32
    %11 = vector.broadcast %cst_3 : f32 to vector<8x64xf32>
    %12 = arith.addf %11, %10 : vector<8x64xf32>
    %13 = arith.divf %11, %12 : vector<8x64xf32>
    %14 = vector.extract_strided_slice %7 {offsets = [0, 64], sizes = [8, 64], strides = [1, 1]} : vector<8x256xf32> to vector<8x64xf32>
    %15 = arith.negf %14 : vector<8x64xf32>
    %16 = math.exp %15 : vector<8x64xf32>
    %cst_4 = arith.constant 1.000000e+00 : f32
    %17 = vector.broadcast %cst_4 : f32 to vector<8x64xf32>
    %18 = arith.addf %17, %16 : vector<8x64xf32>
    %19 = arith.divf %17, %18 : vector<8x64xf32>
    %20 = vector.extract_strided_slice %7 {offsets = [0, 128], sizes = [8, 64], strides = [1, 1]} : vector<8x256xf32> to vector<8x64xf32>
    %21 = math.tanh %20 : vector<8x64xf32>
    %22 = vector.extract_strided_slice %7 {offsets = [0, 192], sizes = [8, 64], strides = [1, 1]} : vector<8x256xf32> to vector<8x64xf32>
    %23 = arith.negf %22 : vector<8x64xf32>
    %24 = math.exp %23 : vector<8x64xf32>
    %cst_5 = arith.constant 1.000000e+00 : f32
    %25 = vector.broadcast %cst_5 : f32 to vector<8x64xf32>
    %26 = arith.addf %25, %24 : vector<8x64xf32>
    %27 = arith.divf %25, %26 : vector<8x64xf32>
    %28 = arith.mulf %19, %1 : vector<8x64xf32>
    %29 = arith.mulf %13, %21 : vector<8x64xf32>
    %30 = arith.addf %28, %29 : vector<8x64xf32>
    %31 = math.tanh %30 : vector<8x64xf32>
    %32 = arith.mulf %27, %31 : vector<8x64xf32>
    %33 = arith.index_cast %3 : i32 to index
    %c0_6 = arith.constant 0 : index
    %34 = vector.load %arg16[%33, %c0_6] : memref<64x64xf32, #tpu.memory_space<vmem>>, vector<8x64xf32>
    tpu.vector_store %arg16[%33, %c0_6], %32 {strides = array<i32>} : memref<64x64xf32, #tpu.memory_space<vmem>>, vector<8x64xf32>,
    %c1_i32 = arith.constant 1 : i32
    %c8_i32_7 = arith.constant 8 : i32
    %35 = arith.muli %c1_i32, %c8_i32_7 : i32
    %36 = tpu.assume_multiple %35, 8 : i32
    %37 = arith.index_cast %36 : i32 to index
    %c0_8 = arith.constant 0 : index
    %38 = vector.load %arg0[%37, %c0_8] : memref<64x256xf32, #tpu.memory_space<vmem>>, vector<8x256xf32>
    %cst_9 = arith.constant dense<0.000000e+00> : vector<8x256xf32>
    %39 = tpu.matmul %32, %0, %cst_9 {dimension_numbers = #tpu.dot_dimension_numbers<[1], [0], [0], [1], [0, 0, 1, 1], [], []>} : vector<8x64xf32>, vector<64x256xf32>, vector<8x256xf32> -> vector<8x256xf32>
    %40 = arith.addf %38, %39 : vector<8x256xf32>
    %41 = vector.extract_strided_slice %40 {offsets = [0, 0], sizes = [8, 64], strides = [1, 1]} : vector<8x256xf32> to vector<8x64xf32>
    %42 = arith.negf %41 : vector<8x64xf32>
    %43 = math.exp %42 : vector<8x64xf32>
    %cst_10 = arith.constant 1.000000e+00 : f32
    %44 = vector.broadcast %cst_10 : f32 to vector<8x64xf32>
    %45 = arith.addf %44, %43 : vector<8x64xf32>
    %46 = arith.divf %44, %45 : vector<8x64xf32>
    %47 = vector.extract_strided_slice %40 {offsets = [0, 64], sizes = [8, 64], strides = [1, 1]} : vector<8x256xf32> to vector<8x64xf32>
    %48 = arith.negf %47 : vector<8x64xf32>
    %49 = math.exp %48 : vector<8x64xf32>
    %cst_11 = arith.constant 1.000000e+00 : f32
    %50 = vector.broadcast %cst_11 : f32 to vector<8x64xf32>
    %51 = arith.addf %50, %49 : vector<8x64xf32>
    %52 = arith.divf %50, %51 : vector<8x64xf32>
    %53 = vector.extract_strided_slice %40 {offsets = [0, 128], sizes = [8, 64], strides = [1, 1]} : vector<8x256xf32> to vector<8x64xf32>
    %54 = math.tanh %53 : vector<8x64xf32>
    %55 = vector.extract_strided_slice %40 {offsets = [0, 192], sizes = [8, 64], strides = [1, 1]} : vector<8x256xf32> to vector<8x64xf32>
    %56 = arith.negf %55 : vector<8x64xf32>
    %57 = math.exp %56 : vector<8x64xf32>
    %cst_12 = arith.constant 1.000000e+00 : f32
    %58 = vector.broadcast %cst_12 : f32 to vector<8x64xf32>
    %59 = arith.addf %58, %57 : vector<8x64xf32>
    %60 = arith.divf %58, %59 : vector<8x64xf32>
    %61 = arith.mulf %52, %30 : vector<8x64xf32>
    %62 = arith.mulf %46, %54 : vector<8x64xf32>
    %63 = arith.addf %61, %62 : vector<8x64xf32>
    %64 = math.tanh %63 : vector<8x64xf32>
    %65 = arith.mulf %60, %64 : vector<8x64xf32>
    %66 = arith.index_cast %36 : i32 to index
    %c0_13 = arith.constant 0 : index
    %67 = vector.load %arg16[%66, %c0_13] : memref<64x64xf32, #tpu.memory_space<vmem>>, vector<8x64xf32>
    tpu.vector_store %arg16[%66, %c0_13], %65 {strides = array<i32>} : memref<64x64xf32, #tpu.memory_space<vmem>>, vector<8x64xf32>,
    %c2_i32 = arith.constant 2 : i32
    %c8_i32_14 = arith.constant 8 : i32
    %68 = arith.muli %c2_i32, %c8_i32_14 : i32
    %69 = tpu.assume_multiple %68, 8 : i32
    %70 = arith.index_cast %69 : i32 to index
    %c0_15 = arith.constant 0 : index
    %71 = vector.load %arg0[%70, %c0_15] : memref<64x256xf32, #tpu.memory_space<vmem>>, vector<8x256xf32>
    %cst_16 = arith.constant dense<0.000000e+00> : vector<8x256xf32>
    %72 = tpu.matmul %65, %0, %cst_16 {dimension_numbers = #tpu.dot_dimension_numbers<[1], [0], [0], [1], [0, 0, 1, 1], [], []>} : vector<8x64xf32>, vector<64x256xf32>, vector<8x256xf32> -> vector<8x256xf32>
    %73 = arith.addf %71, %72 : vector<8x256xf32>
    %74 = vector.extract_strided_slice %73 {offsets = [0, 0], sizes = [8, 64], strides = [1, 1]} : vector<8x256xf32> to vector<8x64xf32>
    %75 = arith.negf %74 : vector<8x64xf32>
    %76 = math.exp %75 : vector<8x64xf32>
    %cst_17 = arith.constant 1.000000e+00 : f32
    %77 = vector.broadcast %cst_17 : f32 to vector<8x64xf32>
    %78 = arith.addf %77, %76 : vector<8x64xf32>
    %79 = arith.divf %77, %78 : vector<8x64xf32>
    %80 = vector.extract_strided_slice %73 {offsets = [0, 64], sizes = [8, 64], strides = [1, 1]} : vector<8x256xf32> to vector<8x64xf32>
    %81 = arith.negf %80 : vector<8x64xf32>
    %82 = math.exp %81 : vector<8x64xf32>
    %cst_18 = arith.constant 1.000000e+00 : f32
    %83 = vector.broadcast %cst_18 : f32 to vector<8x64xf32>
    %84 = arith.addf %83, %82 : vector<8x64xf32>
    %85 = arith.divf %83, %84 : vector<8x64xf32>
    %86 = vector.extract_strided_slice %73 {offsets = [0, 128], sizes = [8, 64], strides = [1, 1]} : vector<8x256xf32> to vector<8x64xf32>
    %87 = math.tanh %86 : vector<8x64xf32>
    %88 = vector.extract_strided_slice %73 {offsets = [0, 192], sizes = [8, 64], strides = [1, 1]} : vector<8x256xf32> to vector<8x64xf32>
    %89 = arith.negf %88 : vector<8x64xf32>
    %90 = math.exp %89 : vector<8x64xf32>
    %cst_19 = arith.constant 1.000000e+00 : f32
    %91 = vector.broadcast %cst_19 : f32 to vector<8x64xf32>
    %92 = arith.addf %91, %90 : vector<8x64xf32>
    %93 = arith.divf %91, %92 : vector<8x64xf32>
    %94 = arith.mulf %85, %63 : vector<8x64xf32>
    %95 = arith.mulf %79, %87 : vector<8x64xf32>
    %96 = arith.addf %94, %95 : vector<8x64xf32>
    %97 = math.tanh %96 : vector<8x64xf32>
    %98 = arith.mulf %93, %97 : vector<8x64xf32>
    %99 = arith.index_cast %69 : i32 to index
    %c0_20 = arith.constant 0 : index
    %100 = vector.load %arg16[%99, %c0_20] : memref<64x64xf32, #tpu.memory_space<vmem>>, vector<8x64xf32>
    tpu.vector_store %arg16[%99, %c0_20], %98 {strides = array<i32>} : memref<64x64xf32, #tpu.memory_space<vmem>>, vector<8x64xf32>,
    %c3_i32 = arith.constant 3 : i32
    %c8_i32_21 = arith.constant 8 : i32
    %101 = arith.muli %c3_i32, %c8_i32_21 : i32
    %102 = tpu.assume_multiple %101, 8 : i32
    %103 = arith.index_cast %102 : i32 to index
    %c0_22 = arith.constant 0 : index
    %104 = vector.load %arg0[%103, %c0_22] : memref<64x256xf32, #tpu.memory_space<vmem>>, vector<8x256xf32>
    %cst_23 = arith.constant dense<0.000000e+00> : vector<8x256xf32>
    %105 = tpu.matmul %98, %0, %cst_23 {dimension_numbers = #tpu.dot_dimension_numbers<[1], [0], [0], [1], [0, 0, 1, 1], [], []>} : vector<8x64xf32>, vector<64x256xf32>, vector<8x256xf32> -> vector<8x256xf32>
    %106 = arith.addf %104, %105 : vector<8x256xf32>
    %107 = vector.extract_strided_slice %106 {offsets = [0, 0], sizes = [8, 64], strides = [1, 1]} : vector<8x256xf32> to vector<8x64xf32>
    %108 = arith.negf %107 : vector<8x64xf32>
    %109 = math.exp %108 : vector<8x64xf32>
    %cst_24 = arith.constant 1.000000e+00 : f32
    %110 = vector.broadcast %cst_24 : f32 to vector<8x64xf32>
    %111 = arith.addf %110, %109 : vector<8x64xf32>
    %112 = arith.divf %110, %111 : vector<8x64xf32>
    %113 = vector.extract_strided_slice %106 {offsets = [0, 64], sizes = [8, 64], strides = [1, 1]} : vector<8x256xf32> to vector<8x64xf32>
    %114 = arith.negf %113 : vector<8x64xf32>
    %115 = math.exp %114 : vector<8x64xf32>
    %cst_25 = arith.constant 1.000000e+00 : f32
    %116 = vector.broadcast %cst_25 : f32 to vector<8x64xf32>
    %117 = arith.addf %116, %115 : vector<8x64xf32>
    %118 = arith.divf %116, %117 : vector<8x64xf32>
    %119 = vector.extract_strided_slice %106 {offsets = [0, 128], sizes = [8, 64], strides = [1, 1]} : vector<8x256xf32> to vector<8x64xf32>
    %120 = math.tanh %119 : vector<8x64xf32>
    %121 = vector.extract_strided_slice %106 {offsets = [0, 192], sizes = [8, 64], strides = [1, 1]} : vector<8x256xf32> to vector<8x64xf32>
    %122 = arith.negf %121 : vector<8x64xf32>
    %123 = math.exp %122 : vector<8x64xf32>
    %cst_26 = arith.constant 1.000000e+00 : f32
    %124 = vector.broadcast %cst_26 : f32 to vector<8x64xf32>
    %125 = arith.addf %124, %123 : vector<8x64xf32>
    %126 = arith.divf %124, %125 : vector<8x64xf32>
    %127 = arith.mulf %118, %96 : vector<8x64xf32>
    %128 = arith.mulf %112, %120 : vector<8x64xf32>
    %129 = arith.addf %127, %128 : vector<8x64xf32>
    %130 = math.tanh %129 : vector<8x64xf32>
    %131 = arith.mulf %126, %130 : vector<8x64xf32>
    %132 = arith.index_cast %102 : i32 to index
    %c0_27 = arith.constant 0 : index
    %133 = vector.load %arg16[%132, %c0_27] : memref<64x64xf32, #tpu.memory_space<vmem>>, vector<8x64xf32>
    tpu.vector_store %arg16[%132, %c0_27], %131 {strides = array<i32>} : memref<64x64xf32, #tpu.memory_space<vmem>>, vector<8x64xf32>,
    %c4_i32 = arith.constant 4 : i32
    %c8_i32_28 = arith.constant 8 : i32
    %134 = arith.muli %c4_i32, %c8_i32_28 : i32
    %135 = tpu.assume_multiple %134, 8 : i32
    %136 = arith.index_cast %135 : i32 to index
    %c0_29 = arith.constant 0 : index
    %137 = vector.load %arg0[%136, %c0_29] : memref<64x256xf32, #tpu.memory_space<vmem>>, vector<8x256xf32>
    %cst_30 = arith.constant dense<0.000000e+00> : vector<8x256xf32>
    %138 = tpu.matmul %131, %0, %cst_30 {dimension_numbers = #tpu.dot_dimension_numbers<[1], [0], [0], [1], [0, 0, 1, 1], [], []>} : vector<8x64xf32>, vector<64x256xf32>, vector<8x256xf32> -> vector<8x256xf32>
    %139 = arith.addf %137, %138 : vector<8x256xf32>
    %140 = vector.extract_strided_slice %139 {offsets = [0, 0], sizes = [8, 64], strides = [1, 1]} : vector<8x256xf32> to vector<8x64xf32>
    %141 = arith.negf %140 : vector<8x64xf32>
    %142 = math.exp %141 : vector<8x64xf32>
    %cst_31 = arith.constant 1.000000e+00 : f32
    %143 = vector.broadcast %cst_31 : f32 to vector<8x64xf32>
    %144 = arith.addf %143, %142 : vector<8x64xf32>
    %145 = arith.divf %143, %144 : vector<8x64xf32>
    %146 = vector.extract_strided_slice %139 {offsets = [0, 64], sizes = [8, 64], strides = [1, 1]} : vector<8x256xf32> to vector<8x64xf32>
    %147 = arith.negf %146 : vector<8x64xf32>
    %148 = math.exp %147 : vector<8x64xf32>
    %cst_32 = arith.constant 1.000000e+00 : f32
    %149 = vector.broadcast %cst_32 : f32 to vector<8x64xf32>
    %150 = arith.addf %149, %148 : vector<8x64xf32>
    %151 = arith.divf %149, %150 : vector<8x64xf32>
    %152 = vector.extract_strided_slice %139 {offsets = [0, 128], sizes = [8, 64], strides = [1, 1]} : vector<8x256xf32> to vector<8x64xf32>
    %153 = math.tanh %152 : vector<8x64xf32>
    %154 = vector.extract_strided_slice %139 {offsets = [0, 192], sizes = [8, 64], strides = [1, 1]} : vector<8x256xf32> to vector<8x64xf32>
    %155 = arith.negf %154 : vector<8x64xf32>
    %156 = math.exp %155 : vector<8x64xf32>
    %cst_33 = arith.constant 1.000000e+00 : f32
    %157 = vector.broadcast %cst_33 : f32 to vector<8x64xf32>
    %158 = arith.addf %157, %156 : vector<8x64xf32>
    %159 = arith.divf %157, %158 : vector<8x64xf32>
    %160 = arith.mulf %151, %129 : vector<8x64xf32>
    %161 = arith.mulf %145, %153 : vector<8x64xf32>
    %162 = arith.addf %160, %161 : vector<8x64xf32>
    %163 = math.tanh %162 : vector<8x64xf32>
    %164 = arith.mulf %159, %163 : vector<8x64xf32>
    %165 = arith.index_cast %135 : i32 to index
    %c0_34 = arith.constant 0 : index
    %166 = vector.load %arg16[%165, %c0_34] : memref<64x64xf32, #tpu.memory_space<vmem>>, vector<8x64xf32>
    tpu.vector_store %arg16[%165, %c0_34], %164 {strides = array<i32>} : memref<64x64xf32, #tpu.memory_space<vmem>>, vector<8x64xf32>,
    %c5_i32 = arith.constant 5 : i32
    %c8_i32_35 = arith.constant 8 : i32
    %167 = arith.muli %c5_i32, %c8_i32_35 : i32
    %168 = tpu.assume_multiple %167, 8 : i32
    %169 = arith.index_cast %168 : i32 to index
    %c0_36 = arith.constant 0 : index
    %170 = vector.load %arg0[%169, %c0_36] : memref<64x256xf32, #tpu.memory_space<vmem>>, vector<8x256xf32>
    %cst_37 = arith.constant dense<0.000000e+00> : vector<8x256xf32>
    %171 = tpu.matmul %164, %0, %cst_37 {dimension_numbers = #tpu.dot_dimension_numbers<[1], [0], [0], [1], [0, 0, 1, 1], [], []>} : vector<8x64xf32>, vector<64x256xf32>, vector<8x256xf32> -> vector<8x256xf32>
    %172 = arith.addf %170, %171 : vector<8x256xf32>
    %173 = vector.extract_strided_slice %172 {offsets = [0, 0], sizes = [8, 64], strides = [1, 1]} : vector<8x256xf32> to vector<8x64xf32>
    %174 = arith.negf %173 : vector<8x64xf32>
    %175 = math.exp %174 : vector<8x64xf32>
    %cst_38 = arith.constant 1.000000e+00 : f32
    %176 = vector.broadcast %cst_38 : f32 to vector<8x64xf32>
    %177 = arith.addf %176, %175 : vector<8x64xf32>
    %178 = arith.divf %176, %177 : vector<8x64xf32>
    %179 = vector.extract_strided_slice %172 {offsets = [0, 64], sizes = [8, 64], strides = [1, 1]} : vector<8x256xf32> to vector<8x64xf32>
    %180 = arith.negf %179 : vector<8x64xf32>
    %181 = math.exp %180 : vector<8x64xf32>
    %cst_39 = arith.constant 1.000000e+00 : f32
    %182 = vector.broadcast %cst_39 : f32 to vector<8x64xf32>
    %183 = arith.addf %182, %181 : vector<8x64xf32>
    %184 = arith.divf %182, %183 : vector<8x64xf32>
    %185 = vector.extract_strided_slice %172 {offsets = [0, 128], sizes = [8, 64], strides = [1, 1]} : vector<8x256xf32> to vector<8x64xf32>
    %186 = math.tanh %185 : vector<8x64xf32>
    %187 = vector.extract_strided_slice %172 {offsets = [0, 192], sizes = [8, 64], strides = [1, 1]} : vector<8x256xf32> to vector<8x64xf32>
    %188 = arith.negf %187 : vector<8x64xf32>
    %189 = math.exp %188 : vector<8x64xf32>
    %cst_40 = arith.constant 1.000000e+00 : f32
    %190 = vector.broadcast %cst_40 : f32 to vector<8x64xf32>
    %191 = arith.addf %190, %189 : vector<8x64xf32>
    %192 = arith.divf %190, %191 : vector<8x64xf32>
    %193 = arith.mulf %184, %162 : vector<8x64xf32>
    %194 = arith.mulf %178, %186 : vector<8x64xf32>
    %195 = arith.addf %193, %194 : vector<8x64xf32>
    %196 = math.tanh %195 : vector<8x64xf32>
    %197 = arith.mulf %192, %196 : vector<8x64xf32>
    %198 = arith.index_cast %168 : i32 to index
    %c0_41 = arith.constant 0 : index
    %199 = vector.load %arg16[%198, %c0_41] : memref<64x64xf32, #tpu.memory_space<vmem>>, vector<8x64xf32>
    tpu.vector_store %arg16[%198, %c0_41], %197 {strides = array<i32>} : memref<64x64xf32, #tpu.memory_space<vmem>>, vector<8x64xf32>,
    %c6_i32 = arith.constant 6 : i32
    %c8_i32_42 = arith.constant 8 : i32
    %200 = arith.muli %c6_i32, %c8_i32_42 : i32
    %201 = tpu.assume_multiple %200, 8 : i32
    %202 = arith.index_cast %201 : i32 to index
    %c0_43 = arith.constant 0 : index
    %203 = vector.load %arg0[%202, %c0_43] : memref<64x256xf32, #tpu.memory_space<vmem>>, vector<8x256xf32>
    %cst_44 = arith.constant dense<0.000000e+00> : vector<8x256xf32>
    %204 = tpu.matmul %197, %0, %cst_44 {dimension_numbers = #tpu.dot_dimension_numbers<[1], [0], [0], [1], [0, 0, 1, 1], [], []>} : vector<8x64xf32>, vector<64x256xf32>, vector<8x256xf32> -> vector<8x256xf32>
    %205 = arith.addf %203, %204 : vector<8x256xf32>
    %206 = vector.extract_strided_slice %205 {offsets = [0, 0], sizes = [8, 64], strides = [1, 1]} : vector<8x256xf32> to vector<8x64xf32>
    %207 = arith.negf %206 : vector<8x64xf32>
    %208 = math.exp %207 : vector<8x64xf32>
    %cst_45 = arith.constant 1.000000e+00 : f32
    %209 = vector.broadcast %cst_45 : f32 to vector<8x64xf32>
    %210 = arith.addf %209, %208 : vector<8x64xf32>
    %211 = arith.divf %209, %210 : vector<8x64xf32>
    %212 = vector.extract_strided_slice %205 {offsets = [0, 64], sizes = [8, 64], strides = [1, 1]} : vector<8x256xf32> to vector<8x64xf32>
    %213 = arith.negf %212 : vector<8x64xf32>
    %214 = math.exp %213 : vector<8x64xf32>
    %cst_46 = arith.constant 1.000000e+00 : f32
    %215 = vector.broadcast %cst_46 : f32 to vector<8x64xf32>
    %216 = arith.addf %215, %214 : vector<8x64xf32>
    %217 = arith.divf %215, %216 : vector<8x64xf32>
    %218 = vector.extract_strided_slice %205 {offsets = [0, 128], sizes = [8, 64], strides = [1, 1]} : vector<8x256xf32> to vector<8x64xf32>
    %219 = math.tanh %218 : vector<8x64xf32>
    %220 = vector.extract_strided_slice %205 {offsets = [0, 192], sizes = [8, 64], strides = [1, 1]} : vector<8x256xf32> to vector<8x64xf32>
    %221 = arith.negf %220 : vector<8x64xf32>
    %222 = math.exp %221 : vector<8x64xf32>
    %cst_47 = arith.constant 1.000000e+00 : f32
    %223 = vector.broadcast %cst_47 : f32 to vector<8x64xf32>
    %224 = arith.addf %223, %222 : vector<8x64xf32>
    %225 = arith.divf %223, %224 : vector<8x64xf32>
    %226 = arith.mulf %217, %195 : vector<8x64xf32>
    %227 = arith.mulf %211, %219 : vector<8x64xf32>
    %228 = arith.addf %226, %227 : vector<8x64xf32>
    %229 = math.tanh %228 : vector<8x64xf32>
    %230 = arith.mulf %225, %229 : vector<8x64xf32>
    %231 = arith.index_cast %201 : i32 to index
    %c0_48 = arith.constant 0 : index
    %232 = vector.load %arg16[%231, %c0_48] : memref<64x64xf32, #tpu.memory_space<vmem>>, vector<8x64xf32>
    tpu.vector_store %arg16[%231, %c0_48], %230 {strides = array<i32>} : memref<64x64xf32, #tpu.memory_space<vmem>>, vector<8x64xf32>,
    %c7_i32 = arith.constant 7 : i32
    %c8_i32_49 = arith.constant 8 : i32
    %233 = arith.muli %c7_i32, %c8_i32_49 : i32
    %234 = tpu.assume_multiple %233, 8 : i32
    %235 = arith.index_cast %234 : i32 to index
    %c0_50 = arith.constant 0 : index
    %236 = vector.load %arg0[%235, %c0_50] : memref<64x256xf32, #tpu.memory_space<vmem>>, vector<8x256xf32>
    %cst_51 = arith.constant dense<0.000000e+00> : vector<8x256xf32>
    %237 = tpu.matmul %230, %0, %cst_51 {dimension_numbers = #tpu.dot_dimension_numbers<[1], [0], [0], [1], [0, 0, 1, 1], [], []>} : vector<8x64xf32>, vector<64x256xf32>, vector<8x256xf32> -> vector<8x256xf32>
    %238 = arith.addf %236, %237 : vector<8x256xf32>
    %239 = vector.extract_strided_slice %238 {offsets = [0, 0], sizes = [8, 64], strides = [1, 1]} : vector<8x256xf32> to vector<8x64xf32>
    %240 = arith.negf %239 : vector<8x64xf32>
    %241 = math.exp %240 : vector<8x64xf32>
    %cst_52 = arith.constant 1.000000e+00 : f32
    %242 = vector.broadcast %cst_52 : f32 to vector<8x64xf32>
    %243 = arith.addf %242, %241 : vector<8x64xf32>
    %244 = arith.divf %242, %243 : vector<8x64xf32>
    %245 = vector.extract_strided_slice %238 {offsets = [0, 64], sizes = [8, 64], strides = [1, 1]} : vector<8x256xf32> to vector<8x64xf32>
    %246 = arith.negf %245 : vector<8x64xf32>
    %247 = math.exp %246 : vector<8x64xf32>
    %cst_53 = arith.constant 1.000000e+00 : f32
    %248 = vector.broadcast %cst_53 : f32 to vector<8x64xf32>
    %249 = arith.addf %248, %247 : vector<8x64xf32>
    %250 = arith.divf %248, %249 : vector<8x64xf32>
    %251 = vector.extract_strided_slice %238 {offsets = [0, 128], sizes = [8, 64], strides = [1, 1]} : vector<8x256xf32> to vector<8x64xf32>
    %252 = math.tanh %251 : vector<8x64xf32>
    %253 = vector.extract_strided_slice %238 {offsets = [0, 192], sizes = [8, 64], strides = [1, 1]} : vector<8x256xf32> to vector<8x64xf32>
    %254 = arith.negf %253 : vector<8x64xf32>
    %255 = math.exp %254 : vector<8x64xf32>
    %cst_54 = arith.constant 1.000000e+00 : f32
    %256 = vector.broadcast %cst_54 : f32 to vector<8x64xf32>
    %257 = arith.addf %256, %255 : vector<8x64xf32>
    %258 = arith.divf %256, %257 : vector<8x64xf32>
    %259 = arith.mulf %250, %228 : vector<8x64xf32>
    %260 = arith.mulf %244, %252 : vector<8x64xf32>
    %261 = arith.addf %259, %260 : vector<8x64xf32>
    %262 = math.tanh %261 : vector<8x64xf32>
    %263 = arith.mulf %258, %262 : vector<8x64xf32>
    %264 = arith.index_cast %234 : i32 to index
    %c0_55 = arith.constant 0 : index
    %265 = vector.load %arg16[%264, %c0_55] : memref<64x64xf32, #tpu.memory_space<vmem>>, vector<8x64xf32>
    tpu.vector_store %arg16[%264, %c0_55], %263 {strides = array<i32>} : memref<64x64xf32, #tpu.memory_space<vmem>>, vector<8x64xf32>,
    %c8_i32_56 = arith.constant 8 : i32
    %c0_57 = arith.constant 0 : index
    %c0_58 = arith.constant 0 : index
    %266 = vector.load %arg3[%c0_57, %c0_58] : memref<64x256xf32, #tpu.memory_space<vmem>>, vector<64x256xf32>
    %cst_59 = arith.constant 0.000000e+00 : f32
    %267 = vector.broadcast %cst_59 : f32 to vector<8x64xf32>
    %c0_i32_60 = arith.constant 0 : i32
    %c7_i32_61 = arith.constant 7 : i32
    %268 = arith.subi %c7_i32_61, %c0_i32_60 : i32
    %c8_i32_62 = arith.constant 8 : i32
    %269 = arith.muli %268, %c8_i32_62 : i32
    %270 = tpu.assume_multiple %269, 8 : i32
    %271 = arith.index_cast %270 : i32 to index
    %c0_63 = arith.constant 0 : index
    %272 = vector.load %arg1[%271, %c0_63] : memref<64x256xf32, #tpu.memory_space<vmem>>, vector<8x256xf32>
    %cst_64 = arith.constant dense<0.000000e+00> : vector<8x256xf32>
    %273 = tpu.matmul %267, %266, %cst_64 {dimension_numbers = #tpu.dot_dimension_numbers<[1], [0], [0], [1], [0, 0, 1, 1], [], []>} : vector<8x64xf32>, vector<64x256xf32>, vector<8x256xf32> -> vector<8x256xf32>
    %274 = arith.addf %272, %273 : vector<8x256xf32>
    %275 = vector.extract_strided_slice %274 {offsets = [0, 0], sizes = [8, 64], strides = [1, 1]} : vector<8x256xf32> to vector<8x64xf32>
    %276 = arith.negf %275 : vector<8x64xf32>
    %277 = math.exp %276 : vector<8x64xf32>
    %cst_65 = arith.constant 1.000000e+00 : f32
    %278 = vector.broadcast %cst_65 : f32 to vector<8x64xf32>
    %279 = arith.addf %278, %277 : vector<8x64xf32>
    %280 = arith.divf %278, %279 : vector<8x64xf32>
    %281 = vector.extract_strided_slice %274 {offsets = [0, 64], sizes = [8, 64], strides = [1, 1]} : vector<8x256xf32> to vector<8x64xf32>
    %282 = arith.negf %281 : vector<8x64xf32>
    %283 = math.exp %282 : vector<8x64xf32>
    %cst_66 = arith.constant 1.000000e+00 : f32
    %284 = vector.broadcast %cst_66 : f32 to vector<8x64xf32>
    %285 = arith.addf %284, %283 : vector<8x64xf32>
    %286 = arith.divf %284, %285 : vector<8x64xf32>
    %287 = vector.extract_strided_slice %274 {offsets = [0, 128], sizes = [8, 64], strides = [1, 1]} : vector<8x256xf32> to vector<8x64xf32>
    %288 = math.tanh %287 : vector<8x64xf32>
    %289 = vector.extract_strided_slice %274 {offsets = [0, 192], sizes = [8, 64], strides = [1, 1]} : vector<8x256xf32> to vector<8x64xf32>
    %290 = arith.negf %289 : vector<8x64xf32>
    %291 = math.exp %290 : vector<8x64xf32>
    %cst_67 = arith.constant 1.000000e+00 : f32
    %292 = vector.broadcast %cst_67 : f32 to vector<8x64xf32>
    %293 = arith.addf %292, %291 : vector<8x64xf32>
    %294 = arith.divf %292, %293 : vector<8x64xf32>
    %295 = arith.mulf %286, %267 : vector<8x64xf32>
    %296 = arith.mulf %280, %288 : vector<8x64xf32>
    %297 = arith.addf %295, %296 : vector<8x64xf32>
    %298 = math.tanh %297 : vector<8x64xf32>
    %299 = arith.mulf %294, %298 : vector<8x64xf32>
    %300 = arith.index_cast %270 : i32 to index
    %c0_68 = arith.constant 0 : index
    %301 = vector.load %arg17[%300, %c0_68] : memref<64x64xf32, #tpu.memory_space<vmem>>, vector<8x64xf32>
    tpu.vector_store %arg17[%300, %c0_68], %299 {strides = array<i32>} : memref<64x64xf32, #tpu.memory_space<vmem>>, vector<8x64xf32>,
    %c1_i32_69 = arith.constant 1 : i32
    %c7_i32_70 = arith.constant 7 : i32
    %302 = arith.subi %c7_i32_70, %c1_i32_69 : i32
    %c8_i32_71 = arith.constant 8 : i32
    %303 = arith.muli %302, %c8_i32_71 : i32
    %304 = tpu.assume_multiple %303, 8 : i32
    %305 = arith.index_cast %304 : i32 to index
    %c0_72 = arith.constant 0 : index
    %306 = vector.load %arg1[%305, %c0_72] : memref<64x256xf32, #tpu.memory_space<vmem>>, vector<8x256xf32>
    %cst_73 = arith.constant dense<0.000000e+00> : vector<8x256xf32>
    %307 = tpu.matmul %299, %266, %cst_73 {dimension_numbers = #tpu.dot_dimension_numbers<[1], [0], [0], [1], [0, 0, 1, 1], [], []>} : vector<8x64xf32>, vector<64x256xf32>, vector<8x256xf32> -> vector<8x256xf32>
    %308 = arith.addf %306, %307 : vector<8x256xf32>
    %309 = vector.extract_strided_slice %308 {offsets = [0, 0], sizes = [8, 64], strides = [1, 1]} : vector<8x256xf32> to vector<8x64xf32>
    %310 = arith.negf %309 : vector<8x64xf32>
    %311 = math.exp %310 : vector<8x64xf32>
    %cst_74 = arith.constant 1.000000e+00 : f32
    %312 = vector.broadcast %cst_74 : f32 to vector<8x64xf32>
    %313 = arith.addf %312, %311 : vector<8x64xf32>
    %314 = arith.divf %312, %313 : vector<8x64xf32>
    %315 = vector.extract_strided_slice %308 {offsets = [0, 64], sizes = [8, 64], strides = [1, 1]} : vector<8x256xf32> to vector<8x64xf32>
    %316 = arith.negf %315 : vector<8x64xf32>
    %317 = math.exp %316 : vector<8x64xf32>
    %cst_75 = arith.constant 1.000000e+00 : f32
    %318 = vector.broadcast %cst_75 : f32 to vector<8x64xf32>
    %319 = arith.addf %318, %317 : vector<8x64xf32>
    %320 = arith.divf %318, %319 : vector<8x64xf32>
    %321 = vector.extract_strided_slice %308 {offsets = [0, 128], sizes = [8, 64], strides = [1, 1]} : vector<8x256xf32> to vector<8x64xf32>
    %322 = math.tanh %321 : vector<8x64xf32>
    %323 = vector.extract_strided_slice %308 {offsets = [0, 192], sizes = [8, 64], strides = [1, 1]} : vector<8x256xf32> to vector<8x64xf32>
    %324 = arith.negf %323 : vector<8x64xf32>
    %325 = math.exp %324 : vector<8x64xf32>
    %cst_76 = arith.constant 1.000000e+00 : f32
    %326 = vector.broadcast %cst_76 : f32 to vector<8x64xf32>
    %327 = arith.addf %326, %325 : vector<8x64xf32>
    %328 = arith.divf %326, %327 : vector<8x64xf32>
    %329 = arith.mulf %320, %297 : vector<8x64xf32>
    %330 = arith.mulf %314, %322 : vector<8x64xf32>
    %331 = arith.addf %329, %330 : vector<8x64xf32>
    %332 = math.tanh %331 : vector<8x64xf32>
    %333 = arith.mulf %328, %332 : vector<8x64xf32>
    %334 = arith.index_cast %304 : i32 to index
    %c0_77 = arith.constant 0 : index
    %335 = vector.load %arg17[%334, %c0_77] : memref<64x64xf32, #tpu.memory_space<vmem>>, vector<8x64xf32>
    tpu.vector_store %arg17[%334, %c0_77], %333 {strides = array<i32>} : memref<64x64xf32, #tpu.memory_space<vmem>>, vector<8x64xf32>,
    %c2_i32_78 = arith.constant 2 : i32
    %c7_i32_79 = arith.constant 7 : i32
    %336 = arith.subi %c7_i32_79, %c2_i32_78 : i32
    %c8_i32_80 = arith.constant 8 : i32
    %337 = arith.muli %336, %c8_i32_80 : i32
    %338 = tpu.assume_multiple %337, 8 : i32
    %339 = arith.index_cast %338 : i32 to index
    %c0_81 = arith.constant 0 : index
    %340 = vector.load %arg1[%339, %c0_81] : memref<64x256xf32, #tpu.memory_space<vmem>>, vector<8x256xf32>
    %cst_82 = arith.constant dense<0.000000e+00> : vector<8x256xf32>
    %341 = tpu.matmul %333, %266, %cst_82 {dimension_numbers = #tpu.dot_dimension_numbers<[1], [0], [0], [1], [0, 0, 1, 1], [], []>} : vector<8x64xf32>, vector<64x256xf32>, vector<8x256xf32> -> vector<8x256xf32>
    %342 = arith.addf %340, %341 : vector<8x256xf32>
    %343 = vector.extract_strided_slice %342 {offsets = [0, 0], sizes = [8, 64], strides = [1, 1]} : vector<8x256xf32> to vector<8x64xf32>
    %344 = arith.negf %343 : vector<8x64xf32>
    %345 = math.exp %344 : vector<8x64xf32>
    %cst_83 = arith.constant 1.000000e+00 : f32
    %346 = vector.broadcast %cst_83 : f32 to vector<8x64xf32>
    %347 = arith.addf %346, %345 : vector<8x64xf32>
    %348 = arith.divf %346, %347 : vector<8x64xf32>
    %349 = vector.extract_strided_slice %342 {offsets = [0, 64], sizes = [8, 64], strides = [1, 1]} : vector<8x256xf32> to vector<8x64xf32>
    %350 = arith.negf %349 : vector<8x64xf32>
    %351 = math.exp %350 : vector<8x64xf32>
    %cst_84 = arith.constant 1.000000e+00 : f32
    %352 = vector.broadcast %cst_84 : f32 to vector<8x64xf32>
    %353 = arith.addf %352, %351 : vector<8x64xf32>
    %354 = arith.divf %352, %353 : vector<8x64xf32>
    %355 = vector.extract_strided_slice %342 {offsets = [0, 128], sizes = [8, 64], strides = [1, 1]} : vector<8x256xf32> to vector<8x64xf32>
    %356 = math.tanh %355 : vector<8x64xf32>
    %357 = vector.extract_strided_slice %342 {offsets = [0, 192], sizes = [8, 64], strides = [1, 1]} : vector<8x256xf32> to vector<8x64xf32>
    %358 = arith.negf %357 : vector<8x64xf32>
    %359 = math.exp %358 : vector<8x64xf32>
    %cst_85 = arith.constant 1.000000e+00 : f32
    %360 = vector.broadcast %cst_85 : f32 to vector<8x64xf32>
    %361 = arith.addf %360, %359 : vector<8x64xf32>
    %362 = arith.divf %360, %361 : vector<8x64xf32>
    %363 = arith.mulf %354, %331 : vector<8x64xf32>
    %364 = arith.mulf %348, %356 : vector<8x64xf32>
    %365 = arith.addf %363, %364 : vector<8x64xf32>
    %366 = math.tanh %365 : vector<8x64xf32>
    %367 = arith.mulf %362, %366 : vector<8x64xf32>
    %368 = arith.index_cast %338 : i32 to index
    %c0_86 = arith.constant 0 : index
    %369 = vector.load %arg17[%368, %c0_86] : memref<64x64xf32, #tpu.memory_space<vmem>>, vector<8x64xf32>
    tpu.vector_store %arg17[%368, %c0_86], %367 {strides = array<i32>} : memref<64x64xf32, #tpu.memory_space<vmem>>, vector<8x64xf32>,
    %c3_i32_87 = arith.constant 3 : i32
    %c7_i32_88 = arith.constant 7 : i32
    %370 = arith.subi %c7_i32_88, %c3_i32_87 : i32
    %c8_i32_89 = arith.constant 8 : i32
    %371 = arith.muli %370, %c8_i32_89 : i32
    %372 = tpu.assume_multiple %371, 8 : i32
    %373 = arith.index_cast %372 : i32 to index
    %c0_90 = arith.constant 0 : index
    %374 = vector.load %arg1[%373, %c0_90] : memref<64x256xf32, #tpu.memory_space<vmem>>, vector<8x256xf32>
    %cst_91 = arith.constant dense<0.000000e+00> : vector<8x256xf32>
    %375 = tpu.matmul %367, %266, %cst_91 {dimension_numbers = #tpu.dot_dimension_numbers<[1], [0], [0], [1], [0, 0, 1, 1], [], []>} : vector<8x64xf32>, vector<64x256xf32>, vector<8x256xf32> -> vector<8x256xf32>
    %376 = arith.addf %374, %375 : vector<8x256xf32>
    %377 = vector.extract_strided_slice %376 {offsets = [0, 0], sizes = [8, 64], strides = [1, 1]} : vector<8x256xf32> to vector<8x64xf32>
    %378 = arith.negf %377 : vector<8x64xf32>
    %379 = math.exp %378 : vector<8x64xf32>
    %cst_92 = arith.constant 1.000000e+00 : f32
    %380 = vector.broadcast %cst_92 : f32 to vector<8x64xf32>
    %381 = arith.addf %380, %379 : vector<8x64xf32>
    %382 = arith.divf %380, %381 : vector<8x64xf32>
    %383 = vector.extract_strided_slice %376 {offsets = [0, 64], sizes = [8, 64], strides = [1, 1]} : vector<8x256xf32> to vector<8x64xf32>
    %384 = arith.negf %383 : vector<8x64xf32>
    %385 = math.exp %384 : vector<8x64xf32>
    %cst_93 = arith.constant 1.000000e+00 : f32
    %386 = vector.broadcast %cst_93 : f32 to vector<8x64xf32>
    %387 = arith.addf %386, %385 : vector<8x64xf32>
    %388 = arith.divf %386, %387 : vector<8x64xf32>
    %389 = vector.extract_strided_slice %376 {offsets = [0, 128], sizes = [8, 64], strides = [1, 1]} : vector<8x256xf32> to vector<8x64xf32>
    %390 = math.tanh %389 : vector<8x64xf32>
    %391 = vector.extract_strided_slice %376 {offsets = [0, 192], sizes = [8, 64], strides = [1, 1]} : vector<8x256xf32> to vector<8x64xf32>
    %392 = arith.negf %391 : vector<8x64xf32>
    %393 = math.exp %392 : vector<8x64xf32>
    %cst_94 = arith.constant 1.000000e+00 : f32
    %394 = vector.broadcast %cst_94 : f32 to vector<8x64xf32>
    %395 = arith.addf %394, %393 : vector<8x64xf32>
    %396 = arith.divf %394, %395 : vector<8x64xf32>
    %397 = arith.mulf %388, %365 : vector<8x64xf32>
    %398 = arith.mulf %382, %390 : vector<8x64xf32>
    %399 = arith.addf %397, %398 : vector<8x64xf32>
    %400 = math.tanh %399 : vector<8x64xf32>
    %401 = arith.mulf %396, %400 : vector<8x64xf32>
    %402 = arith.index_cast %372 : i32 to index
    %c0_95 = arith.constant 0 : index
    %403 = vector.load %arg17[%402, %c0_95] : memref<64x64xf32, #tpu.memory_space<vmem>>, vector<8x64xf32>
    tpu.vector_store %arg17[%402, %c0_95], %401 {strides = array<i32>} : memref<64x64xf32, #tpu.memory_space<vmem>>, vector<8x64xf32>,
    %c4_i32_96 = arith.constant 4 : i32
    %c7_i32_97 = arith.constant 7 : i32
    %404 = arith.subi %c7_i32_97, %c4_i32_96 : i32
    %c8_i32_98 = arith.constant 8 : i32
    %405 = arith.muli %404, %c8_i32_98 : i32
    %406 = tpu.assume_multiple %405, 8 : i32
    %407 = arith.index_cast %406 : i32 to index
    %c0_99 = arith.constant 0 : index
    %408 = vector.load %arg1[%407, %c0_99] : memref<64x256xf32, #tpu.memory_space<vmem>>, vector<8x256xf32>
    %cst_100 = arith.constant dense<0.000000e+00> : vector<8x256xf32>
    %409 = tpu.matmul %401, %266, %cst_100 {dimension_numbers = #tpu.dot_dimension_numbers<[1], [0], [0], [1], [0, 0, 1, 1], [], []>} : vector<8x64xf32>, vector<64x256xf32>, vector<8x256xf32> -> vector<8x256xf32>
    %410 = arith.addf %408, %409 : vector<8x256xf32>
    %411 = vector.extract_strided_slice %410 {offsets = [0, 0], sizes = [8, 64], strides = [1, 1]} : vector<8x256xf32> to vector<8x64xf32>
    %412 = arith.negf %411 : vector<8x64xf32>
    %413 = math.exp %412 : vector<8x64xf32>
    %cst_101 = arith.constant 1.000000e+00 : f32
    %414 = vector.broadcast %cst_101 : f32 to vector<8x64xf32>
    %415 = arith.addf %414, %413 : vector<8x64xf32>
    %416 = arith.divf %414, %415 : vector<8x64xf32>
    %417 = vector.extract_strided_slice %410 {offsets = [0, 64], sizes = [8, 64], strides = [1, 1]} : vector<8x256xf32> to vector<8x64xf32>
    %418 = arith.negf %417 : vector<8x64xf32>
    %419 = math.exp %418 : vector<8x64xf32>
    %cst_102 = arith.constant 1.000000e+00 : f32
    %420 = vector.broadcast %cst_102 : f32 to vector<8x64xf32>
    %421 = arith.addf %420, %419 : vector<8x64xf32>
    %422 = arith.divf %420, %421 : vector<8x64xf32>
    %423 = vector.extract_strided_slice %410 {offsets = [0, 128], sizes = [8, 64], strides = [1, 1]} : vector<8x256xf32> to vector<8x64xf32>
    %424 = math.tanh %423 : vector<8x64xf32>
    %425 = vector.extract_strided_slice %410 {offsets = [0, 192], sizes = [8, 64], strides = [1, 1]} : vector<8x256xf32> to vector<8x64xf32>
    %426 = arith.negf %425 : vector<8x64xf32>
    %427 = math.exp %426 : vector<8x64xf32>
    %cst_103 = arith.constant 1.000000e+00 : f32
    %428 = vector.broadcast %cst_103 : f32 to vector<8x64xf32>
    %429 = arith.addf %428, %427 : vector<8x64xf32>
    %430 = arith.divf %428, %429 : vector<8x64xf32>
    %431 = arith.mulf %422, %399 : vector<8x64xf32>
    %432 = arith.mulf %416, %424 : vector<8x64xf32>
    %433 = arith.addf %431, %432 : vector<8x64xf32>
    %434 = math.tanh %433 : vector<8x64xf32>
    %435 = arith.mulf %430, %434 : vector<8x64xf32>
    %436 = arith.index_cast %406 : i32 to index
    %c0_104 = arith.constant 0 : index
    %437 = vector.load %arg17[%436, %c0_104] : memref<64x64xf32, #tpu.memory_space<vmem>>, vector<8x64xf32>
    tpu.vector_store %arg17[%436, %c0_104], %435 {strides = array<i32>} : memref<64x64xf32, #tpu.memory_space<vmem>>, vector<8x64xf32>,
    %c5_i32_105 = arith.constant 5 : i32
    %c7_i32_106 = arith.constant 7 : i32
    %438 = arith.subi %c7_i32_106, %c5_i32_105 : i32
    %c8_i32_107 = arith.constant 8 : i32
    %439 = arith.muli %438, %c8_i32_107 : i32
    %440 = tpu.assume_multiple %439, 8 : i32
    %441 = arith.index_cast %440 : i32 to index
    %c0_108 = arith.constant 0 : index
    %442 = vector.load %arg1[%441, %c0_108] : memref<64x256xf32, #tpu.memory_space<vmem>>, vector<8x256xf32>
    %cst_109 = arith.constant dense<0.000000e+00> : vector<8x256xf32>
    %443 = tpu.matmul %435, %266, %cst_109 {dimension_numbers = #tpu.dot_dimension_numbers<[1], [0], [0], [1], [0, 0, 1, 1], [], []>} : vector<8x64xf32>, vector<64x256xf32>, vector<8x256xf32> -> vector<8x256xf32>
    %444 = arith.addf %442, %443 : vector<8x256xf32>
    %445 = vector.extract_strided_slice %444 {offsets = [0, 0], sizes = [8, 64], strides = [1, 1]} : vector<8x256xf32> to vector<8x64xf32>
    %446 = arith.negf %445 : vector<8x64xf32>
    %447 = math.exp %446 : vector<8x64xf32>
    %cst_110 = arith.constant 1.000000e+00 : f32
    %448 = vector.broadcast %cst_110 : f32 to vector<8x64xf32>
    %449 = arith.addf %448, %447 : vector<8x64xf32>
    %450 = arith.divf %448, %449 : vector<8x64xf32>
    %451 = vector.extract_strided_slice %444 {offsets = [0, 64], sizes = [8, 64], strides = [1, 1]} : vector<8x256xf32> to vector<8x64xf32>
    %452 = arith.negf %451 : vector<8x64xf32>
    %453 = math.exp %452 : vector<8x64xf32>
    %cst_111 = arith.constant 1.000000e+00 : f32
    %454 = vector.broadcast %cst_111 : f32 to vector<8x64xf32>
    %455 = arith.addf %454, %453 : vector<8x64xf32>
    %456 = arith.divf %454, %455 : vector<8x64xf32>
    %457 = vector.extract_strided_slice %444 {offsets = [0, 128], sizes = [8, 64], strides = [1, 1]} : vector<8x256xf32> to vector<8x64xf32>
    %458 = math.tanh %457 : vector<8x64xf32>
    %459 = vector.extract_strided_slice %444 {offsets = [0, 192], sizes = [8, 64], strides = [1, 1]} : vector<8x256xf32> to vector<8x64xf32>
    %460 = arith.negf %459 : vector<8x64xf32>
    %461 = math.exp %460 : vector<8x64xf32>
    %cst_112 = arith.constant 1.000000e+00 : f32
    %462 = vector.broadcast %cst_112 : f32 to vector<8x64xf32>
    %463 = arith.addf %462, %461 : vector<8x64xf32>
    %464 = arith.divf %462, %463 : vector<8x64xf32>
    %465 = arith.mulf %456, %433 : vector<8x64xf32>
    %466 = arith.mulf %450, %458 : vector<8x64xf32>
    %467 = arith.addf %465, %466 : vector<8x64xf32>
    %468 = math.tanh %467 : vector<8x64xf32>
    %469 = arith.mulf %464, %468 : vector<8x64xf32>
    %470 = arith.index_cast %440 : i32 to index
    %c0_113 = arith.constant 0 : index
    %471 = vector.load %arg17[%470, %c0_113] : memref<64x64xf32, #tpu.memory_space<vmem>>, vector<8x64xf32>
    tpu.vector_store %arg17[%470, %c0_113], %469 {strides = array<i32>} : memref<64x64xf32, #tpu.memory_space<vmem>>, vector<8x64xf32>,
    %c6_i32_114 = arith.constant 6 : i32
    %c7_i32_115 = arith.constant 7 : i32
    %472 = arith.subi %c7_i32_115, %c6_i32_114 : i32
    %c8_i32_116 = arith.constant 8 : i32
    %473 = arith.muli %472, %c8_i32_116 : i32
    %474 = tpu.assume_multiple %473, 8 : i32
    %475 = arith.index_cast %474 : i32 to index
    %c0_117 = arith.constant 0 : index
    %476 = vector.load %arg1[%475, %c0_117] : memref<64x256xf32, #tpu.memory_space<vmem>>, vector<8x256xf32>
    %cst_118 = arith.constant dense<0.000000e+00> : vector<8x256xf32>
    %477 = tpu.matmul %469, %266, %cst_118 {dimension_numbers = #tpu.dot_dimension_numbers<[1], [0], [0], [1], [0, 0, 1, 1], [], []>} : vector<8x64xf32>, vector<64x256xf32>, vector<8x256xf32> -> vector<8x256xf32>
    %478 = arith.addf %476, %477 : vector<8x256xf32>
    %479 = vector.extract_strided_slice %478 {offsets = [0, 0], sizes = [8, 64], strides = [1, 1]} : vector<8x256xf32> to vector<8x64xf32>
    %480 = arith.negf %479 : vector<8x64xf32>
    %481 = math.exp %480 : vector<8x64xf32>
    %cst_119 = arith.constant 1.000000e+00 : f32
    %482 = vector.broadcast %cst_119 : f32 to vector<8x64xf32>
    %483 = arith.addf %482, %481 : vector<8x64xf32>
    %484 = arith.divf %482, %483 : vector<8x64xf32>
    %485 = vector.extract_strided_slice %478 {offsets = [0, 64], sizes = [8, 64], strides = [1, 1]} : vector<8x256xf32> to vector<8x64xf32>
    %486 = arith.negf %485 : vector<8x64xf32>
    %487 = math.exp %486 : vector<8x64xf32>
    %cst_120 = arith.constant 1.000000e+00 : f32
    %488 = vector.broadcast %cst_120 : f32 to vector<8x64xf32>
    %489 = arith.addf %488, %487 : vector<8x64xf32>
    %490 = arith.divf %488, %489 : vector<8x64xf32>
    %491 = vector.extract_strided_slice %478 {offsets = [0, 128], sizes = [8, 64], strides = [1, 1]} : vector<8x256xf32> to vector<8x64xf32>
    %492 = math.tanh %491 : vector<8x64xf32>
    %493 = vector.extract_strided_slice %478 {offsets = [0, 192], sizes = [8, 64], strides = [1, 1]} : vector<8x256xf32> to vector<8x64xf32>
    %494 = arith.negf %493 : vector<8x64xf32>
    %495 = math.exp %494 : vector<8x64xf32>
    %cst_121 = arith.constant 1.000000e+00 : f32
    %496 = vector.broadcast %cst_121 : f32 to vector<8x64xf32>
    %497 = arith.addf %496, %495 : vector<8x64xf32>
    %498 = arith.divf %496, %497 : vector<8x64xf32>
    %499 = arith.mulf %490, %467 : vector<8x64xf32>
    %500 = arith.mulf %484, %492 : vector<8x64xf32>
    %501 = arith.addf %499, %500 : vector<8x64xf32>
    %502 = math.tanh %501 : vector<8x64xf32>
    %503 = arith.mulf %498, %502 : vector<8x64xf32>
    %504 = arith.index_cast %474 : i32 to index
    %c0_122 = arith.constant 0 : index
    %505 = vector.load %arg17[%504, %c0_122] : memref<64x64xf32, #tpu.memory_space<vmem>>, vector<8x64xf32>
    tpu.vector_store %arg17[%504, %c0_122], %503 {strides = array<i32>} : memref<64x64xf32, #tpu.memory_space<vmem>>, vector<8x64xf32>,
    %c7_i32_123 = arith.constant 7 : i32
    %c7_i32_124 = arith.constant 7 : i32
    %506 = arith.subi %c7_i32_124, %c7_i32_123 : i32
    %c8_i32_125 = arith.constant 8 : i32
    %507 = arith.muli %506, %c8_i32_125 : i32
    %508 = tpu.assume_multiple %507, 8 : i32
    %509 = arith.index_cast %508 : i32 to index
    %c0_126 = arith.constant 0 : index
    %510 = vector.load %arg1[%509, %c0_126] : memref<64x256xf32, #tpu.memory_space<vmem>>, vector<8x256xf32>
    %cst_127 = arith.constant dense<0.000000e+00> : vector<8x256xf32>
    %511 = tpu.matmul %503, %266, %cst_127 {dimension_numbers = #tpu.dot_dimension_numbers<[1], [0], [0], [1], [0, 0, 1, 1], [], []>} : vector<8x64xf32>, vector<64x256xf32>, vector<8x256xf32> -> vector<8x256xf32>
    %512 = arith.addf %510, %511 : vector<8x256xf32>
    %513 = vector.extract_strided_slice %512 {offsets = [0, 0], sizes = [8, 64], strides = [1, 1]} : vector<8x256xf32> to vector<8x64xf32>
    %514 = arith.negf %513 : vector<8x64xf32>
    %515 = math.exp %514 : vector<8x64xf32>
    %cst_128 = arith.constant 1.000000e+00 : f32
    %516 = vector.broadcast %cst_128 : f32 to vector<8x64xf32>
    %517 = arith.addf %516, %515 : vector<8x64xf32>
    %518 = arith.divf %516, %517 : vector<8x64xf32>
    %519 = vector.extract_strided_slice %512 {offsets = [0, 64], sizes = [8, 64], strides = [1, 1]} : vector<8x256xf32> to vector<8x64xf32>
    %520 = arith.negf %519 : vector<8x64xf32>
    %521 = math.exp %520 : vector<8x64xf32>
    %cst_129 = arith.constant 1.000000e+00 : f32
    %522 = vector.broadcast %cst_129 : f32 to vector<8x64xf32>
    %523 = arith.addf %522, %521 : vector<8x64xf32>
    %524 = arith.divf %522, %523 : vector<8x64xf32>
    %525 = vector.extract_strided_slice %512 {offsets = [0, 128], sizes = [8, 64], strides = [1, 1]} : vector<8x256xf32> to vector<8x64xf32>
    %526 = math.tanh %525 : vector<8x64xf32>
    %527 = vector.extract_strided_slice %512 {offsets = [0, 192], sizes = [8, 64], strides = [1, 1]} : vector<8x256xf32> to vector<8x64xf32>
    %528 = arith.negf %527 : vector<8x64xf32>
    %529 = math.exp %528 : vector<8x64xf32>
    %cst_130 = arith.constant 1.000000e+00 : f32
    %530 = vector.broadcast %cst_130 : f32 to vector<8x64xf32>
    %531 = arith.addf %530, %529 : vector<8x64xf32>
    %532 = arith.divf %530, %531 : vector<8x64xf32>
    %533 = arith.mulf %524, %501 : vector<8x64xf32>
    %534 = arith.mulf %518, %526 : vector<8x64xf32>
    %535 = arith.addf %533, %534 : vector<8x64xf32>
    %536 = math.tanh %535 : vector<8x64xf32>
    %537 = arith.mulf %532, %536 : vector<8x64xf32>
    %538 = arith.index_cast %508 : i32 to index
    %c0_131 = arith.constant 0 : index
    %539 = vector.load %arg17[%538, %c0_131] : memref<64x64xf32, #tpu.memory_space<vmem>>, vector<8x64xf32>
    tpu.vector_store %arg17[%538, %c0_131], %537 {strides = array<i32>} : memref<64x64xf32, #tpu.memory_space<vmem>>, vector<8x64xf32>,
    %c8_i32_132 = arith.constant 8 : i32
    %c0_133 = arith.constant 0 : index
    %c0_134 = arith.constant 0 : index
    %540 = vector.load %arg16[%c0_133, %c0_134] : memref<64x64xf32, #tpu.memory_space<vmem>>, vector<64x64xf32>
    %c0_135 = arith.constant 0 : index
    %c0_136 = arith.constant 0 : index
    %541 = vector.load %arg17[%c0_135, %c0_136] : memref<64x64xf32, #tpu.memory_space<vmem>>, vector<64x64xf32>
    %c0_137 = arith.constant 0 : index
    %c0_138 = arith.constant 0 : index
    %542 = vector.load %arg4[%c0_137, %c0_138] : memref<64x256xf32, #tpu.memory_space<vmem>>, vector<64x256xf32>
    %cst_139 = arith.constant dense<0.000000e+00> : vector<64x256xf32>
    %543 = tpu.matmul %540, %542, %cst_139 {dimension_numbers = #tpu.dot_dimension_numbers<[1], [0], [0], [1], [0, 0, 1, 1], [], []>} : vector<64x64xf32>, vector<64x256xf32>, vector<64x256xf32> -> vector<64x256xf32>
    %c0_140 = arith.constant 0 : index
    %c0_141 = arith.constant 0 : index
    %544 = vector.load %arg5[%c0_140, %c0_141] : memref<64x256xf32, #tpu.memory_space<vmem>>, vector<64x256xf32>
    %cst_142 = arith.constant dense<0.000000e+00> : vector<64x256xf32>
    %545 = tpu.matmul %541, %544, %cst_142 {dimension_numbers = #tpu.dot_dimension_numbers<[1], [0], [0], [1], [0, 0, 1, 1], [], []>} : vector<64x64xf32>, vector<64x256xf32>, vector<64x256xf32> -> vector<64x256xf32>
    %546 = arith.addf %543, %545 : vector<64x256xf32>
    %c0_143 = arith.constant 0 : index
    %c0_144 = arith.constant 0 : index
    %547 = vector.load %arg10[%c0_143, %c0_144] : memref<1x256xf32, #tpu.memory_space<vmem>>, vector<1x256xf32>
    %548 = vector.broadcast %547 : vector<1x256xf32> to vector<64x256xf32>
    %549 = arith.addf %546, %548 : vector<64x256xf32>
    %c0_145 = arith.constant 0 : index
    %c0_146 = arith.constant 0 : index
    %550 = vector.load %arg20[%c0_145, %c0_146] : memref<64x256xf32, #tpu.memory_space<vmem>>, vector<64x256xf32>
    tpu.vector_store %arg20[%c0_145, %c0_146], %549 {strides = array<i32>} : memref<64x256xf32, #tpu.memory_space<vmem>>, vector<64x256xf32>,
    %c0_147 = arith.constant 0 : index
    %c0_148 = arith.constant 0 : index
    %551 = vector.load %arg6[%c0_147, %c0_148] : memref<64x256xf32, #tpu.memory_space<vmem>>, vector<64x256xf32>
    %cst_149 = arith.constant dense<0.000000e+00> : vector<64x256xf32>
    %552 = tpu.matmul %540, %551, %cst_149 {dimension_numbers = #tpu.dot_dimension_numbers<[1], [0], [0], [1], [0, 0, 1, 1], [], []>} : vector<64x64xf32>, vector<64x256xf32>, vector<64x256xf32> -> vector<64x256xf32>
    %c0_150 = arith.constant 0 : index
    %c0_151 = arith.constant 0 : index
    %553 = vector.load %arg7[%c0_150, %c0_151] : memref<64x256xf32, #tpu.memory_space<vmem>>, vector<64x256xf32>
    %cst_152 = arith.constant dense<0.000000e+00> : vector<64x256xf32>
    %554 = tpu.matmul %541, %553, %cst_152 {dimension_numbers = #tpu.dot_dimension_numbers<[1], [0], [0], [1], [0, 0, 1, 1], [], []>} : vector<64x64xf32>, vector<64x256xf32>, vector<64x256xf32> -> vector<64x256xf32>
    %555 = arith.addf %552, %554 : vector<64x256xf32>
    %c0_153 = arith.constant 0 : index
    %c0_154 = arith.constant 0 : index
    %556 = vector.load %arg11[%c0_153, %c0_154] : memref<1x256xf32, #tpu.memory_space<vmem>>, vector<1x256xf32>
    %557 = vector.broadcast %556 : vector<1x256xf32> to vector<64x256xf32>
    %558 = arith.addf %555, %557 : vector<64x256xf32>
    %c0_155 = arith.constant 0 : index
    %c0_156 = arith.constant 0 : index
    %559 = vector.load %arg21[%c0_155, %c0_156] : memref<64x256xf32, #tpu.memory_space<vmem>>, vector<64x256xf32>
    tpu.vector_store %arg21[%c0_155, %c0_156], %558 {strides = array<i32>} : memref<64x256xf32, #tpu.memory_space<vmem>>, vector<64x256xf32>,
    %c0_157 = arith.constant 0 : index
    %c0_158 = arith.constant 0 : index
    %560 = vector.load %arg8[%c0_157, %c0_158] : memref<64x256xf32, #tpu.memory_space<vmem>>, vector<64x256xf32>
    %cst_159 = arith.constant 0.000000e+00 : f32
    %561 = vector.broadcast %cst_159 : f32 to vector<8x64xf32>
    %c0_i32_160 = arith.constant 0 : i32
    %c8_i32_161 = arith.constant 8 : i32
    %562 = arith.muli %c0_i32_160, %c8_i32_161 : i32
    %563 = tpu.assume_multiple %562, 8 : i32
    %564 = arith.index_cast %563 : i32 to index
    %c0_162 = arith.constant 0 : index
    %565 = vector.load %arg20[%564, %c0_162] : memref<64x256xf32, #tpu.memory_space<vmem>>, vector<8x256xf32>
    %cst_163 = arith.constant dense<0.000000e+00> : vector<8x256xf32>
    %566 = tpu.matmul %561, %560, %cst_163 {dimension_numbers = #tpu.dot_dimension_numbers<[1], [0], [0], [1], [0, 0, 1, 1], [], []>} : vector<8x64xf32>, vector<64x256xf32>, vector<8x256xf32> -> vector<8x256xf32>
    %567 = arith.addf %565, %566 : vector<8x256xf32>
    %568 = vector.extract_strided_slice %567 {offsets = [0, 0], sizes = [8, 64], strides = [1, 1]} : vector<8x256xf32> to vector<8x64xf32>
    %569 = arith.negf %568 : vector<8x64xf32>
    %570 = math.exp %569 : vector<8x64xf32>
    %cst_164 = arith.constant 1.000000e+00 : f32
    %571 = vector.broadcast %cst_164 : f32 to vector<8x64xf32>
    %572 = arith.addf %571, %570 : vector<8x64xf32>
    %573 = arith.divf %571, %572 : vector<8x64xf32>
    %574 = vector.extract_strided_slice %567 {offsets = [0, 64], sizes = [8, 64], strides = [1, 1]} : vector<8x256xf32> to vector<8x64xf32>
    %575 = arith.negf %574 : vector<8x64xf32>
    %576 = math.exp %575 : vector<8x64xf32>
    %cst_165 = arith.constant 1.000000e+00 : f32
    %577 = vector.broadcast %cst_165 : f32 to vector<8x64xf32>
    %578 = arith.addf %577, %576 : vector<8x64xf32>
    %579 = arith.divf %577, %578 : vector<8x64xf32>
    %580 = vector.extract_strided_slice %567 {offsets = [0, 128], sizes = [8, 64], strides = [1, 1]} : vector<8x256xf32> to vector<8x64xf32>
    %581 = math.tanh %580 : vector<8x64xf32>
    %582 = vector.extract_strided_slice %567 {offsets = [0, 192], sizes = [8, 64], strides = [1, 1]} : vector<8x256xf32> to vector<8x64xf32>
    %583 = arith.negf %582 : vector<8x64xf32>
    %584 = math.exp %583 : vector<8x64xf32>
    %cst_166 = arith.constant 1.000000e+00 : f32
    %585 = vector.broadcast %cst_166 : f32 to vector<8x64xf32>
    %586 = arith.addf %585, %584 : vector<8x64xf32>
    %587 = arith.divf %585, %586 : vector<8x64xf32>
    %588 = arith.mulf %579, %561 : vector<8x64xf32>
    %589 = arith.mulf %573, %581 : vector<8x64xf32>
    %590 = arith.addf %588, %589 : vector<8x64xf32>
    %591 = math.tanh %590 : vector<8x64xf32>
    %592 = arith.mulf %587, %591 : vector<8x64xf32>
    %593 = arith.index_cast %563 : i32 to index
    %c0_167 = arith.constant 0 : index
    %594 = vector.load %arg18[%593, %c0_167] : memref<64x64xf32, #tpu.memory_space<vmem>>, vector<8x64xf32>
    tpu.vector_store %arg18[%593, %c0_167], %592 {strides = array<i32>} : memref<64x64xf32, #tpu.memory_space<vmem>>, vector<8x64xf32>,
    %c1_i32_168 = arith.constant 1 : i32
    %c8_i32_169 = arith.constant 8 : i32
    %595 = arith.muli %c1_i32_168, %c8_i32_169 : i32
    %596 = tpu.assume_multiple %595, 8 : i32
    %597 = arith.index_cast %596 : i32 to index
    %c0_170 = arith.constant 0 : index
    %598 = vector.load %arg20[%597, %c0_170] : memref<64x256xf32, #tpu.memory_space<vmem>>, vector<8x256xf32>
    %cst_171 = arith.constant dense<0.000000e+00> : vector<8x256xf32>
    %599 = tpu.matmul %592, %560, %cst_171 {dimension_numbers = #tpu.dot_dimension_numbers<[1], [0], [0], [1], [0, 0, 1, 1], [], []>} : vector<8x64xf32>, vector<64x256xf32>, vector<8x256xf32> -> vector<8x256xf32>
    %600 = arith.addf %598, %599 : vector<8x256xf32>
    %601 = vector.extract_strided_slice %600 {offsets = [0, 0], sizes = [8, 64], strides = [1, 1]} : vector<8x256xf32> to vector<8x64xf32>
    %602 = arith.negf %601 : vector<8x64xf32>
    %603 = math.exp %602 : vector<8x64xf32>
    %cst_172 = arith.constant 1.000000e+00 : f32
    %604 = vector.broadcast %cst_172 : f32 to vector<8x64xf32>
    %605 = arith.addf %604, %603 : vector<8x64xf32>
    %606 = arith.divf %604, %605 : vector<8x64xf32>
    %607 = vector.extract_strided_slice %600 {offsets = [0, 64], sizes = [8, 64], strides = [1, 1]} : vector<8x256xf32> to vector<8x64xf32>
    %608 = arith.negf %607 : vector<8x64xf32>
    %609 = math.exp %608 : vector<8x64xf32>
    %cst_173 = arith.constant 1.000000e+00 : f32
    %610 = vector.broadcast %cst_173 : f32 to vector<8x64xf32>
    %611 = arith.addf %610, %609 : vector<8x64xf32>
    %612 = arith.divf %610, %611 : vector<8x64xf32>
    %613 = vector.extract_strided_slice %600 {offsets = [0, 128], sizes = [8, 64], strides = [1, 1]} : vector<8x256xf32> to vector<8x64xf32>
    %614 = math.tanh %613 : vector<8x64xf32>
    %615 = vector.extract_strided_slice %600 {offsets = [0, 192], sizes = [8, 64], strides = [1, 1]} : vector<8x256xf32> to vector<8x64xf32>
    %616 = arith.negf %615 : vector<8x64xf32>
    %617 = math.exp %616 : vector<8x64xf32>
    %cst_174 = arith.constant 1.000000e+00 : f32
    %618 = vector.broadcast %cst_174 : f32 to vector<8x64xf32>
    %619 = arith.addf %618, %617 : vector<8x64xf32>
    %620 = arith.divf %618, %619 : vector<8x64xf32>
    %621 = arith.mulf %612, %590 : vector<8x64xf32>
    %622 = arith.mulf %606, %614 : vector<8x64xf32>
    %623 = arith.addf %621, %622 : vector<8x64xf32>
    %624 = math.tanh %623 : vector<8x64xf32>
    %625 = arith.mulf %620, %624 : vector<8x64xf32>
    %626 = arith.index_cast %596 : i32 to index
    %c0_175 = arith.constant 0 : index
    %627 = vector.load %arg18[%626, %c0_175] : memref<64x64xf32, #tpu.memory_space<vmem>>, vector<8x64xf32>
    tpu.vector_store %arg18[%626, %c0_175], %625 {strides = array<i32>} : memref<64x64xf32, #tpu.memory_space<vmem>>, vector<8x64xf32>,
    %c2_i32_176 = arith.constant 2 : i32
    %c8_i32_177 = arith.constant 8 : i32
    %628 = arith.muli %c2_i32_176, %c8_i32_177 : i32
    %629 = tpu.assume_multiple %628, 8 : i32
    %630 = arith.index_cast %629 : i32 to index
    %c0_178 = arith.constant 0 : index
    %631 = vector.load %arg20[%630, %c0_178] : memref<64x256xf32, #tpu.memory_space<vmem>>, vector<8x256xf32>
    %cst_179 = arith.constant dense<0.000000e+00> : vector<8x256xf32>
    %632 = tpu.matmul %625, %560, %cst_179 {dimension_numbers = #tpu.dot_dimension_numbers<[1], [0], [0], [1], [0, 0, 1, 1], [], []>} : vector<8x64xf32>, vector<64x256xf32>, vector<8x256xf32> -> vector<8x256xf32>
    %633 = arith.addf %631, %632 : vector<8x256xf32>
    %634 = vector.extract_strided_slice %633 {offsets = [0, 0], sizes = [8, 64], strides = [1, 1]} : vector<8x256xf32> to vector<8x64xf32>
    %635 = arith.negf %634 : vector<8x64xf32>
    %636 = math.exp %635 : vector<8x64xf32>
    %cst_180 = arith.constant 1.000000e+00 : f32
    %637 = vector.broadcast %cst_180 : f32 to vector<8x64xf32>
    %638 = arith.addf %637, %636 : vector<8x64xf32>
    %639 = arith.divf %637, %638 : vector<8x64xf32>
    %640 = vector.extract_strided_slice %633 {offsets = [0, 64], sizes = [8, 64], strides = [1, 1]} : vector<8x256xf32> to vector<8x64xf32>
    %641 = arith.negf %640 : vector<8x64xf32>
    %642 = math.exp %641 : vector<8x64xf32>
    %cst_181 = arith.constant 1.000000e+00 : f32
    %643 = vector.broadcast %cst_181 : f32 to vector<8x64xf32>
    %644 = arith.addf %643, %642 : vector<8x64xf32>
    %645 = arith.divf %643, %644 : vector<8x64xf32>
    %646 = vector.extract_strided_slice %633 {offsets = [0, 128], sizes = [8, 64], strides = [1, 1]} : vector<8x256xf32> to vector<8x64xf32>
    %647 = math.tanh %646 : vector<8x64xf32>
    %648 = vector.extract_strided_slice %633 {offsets = [0, 192], sizes = [8, 64], strides = [1, 1]} : vector<8x256xf32> to vector<8x64xf32>
    %649 = arith.negf %648 : vector<8x64xf32>
    %650 = math.exp %649 : vector<8x64xf32>
    %cst_182 = arith.constant 1.000000e+00 : f32
    %651 = vector.broadcast %cst_182 : f32 to vector<8x64xf32>
    %652 = arith.addf %651, %650 : vector<8x64xf32>
    %653 = arith.divf %651, %652 : vector<8x64xf32>
    %654 = arith.mulf %645, %623 : vector<8x64xf32>
    %655 = arith.mulf %639, %647 : vector<8x64xf32>
    %656 = arith.addf %654, %655 : vector<8x64xf32>
    %657 = math.tanh %656 : vector<8x64xf32>
    %658 = arith.mulf %653, %657 : vector<8x64xf32>
    %659 = arith.index_cast %629 : i32 to index
    %c0_183 = arith.constant 0 : index
    %660 = vector.load %arg18[%659, %c0_183] : memref<64x64xf32, #tpu.memory_space<vmem>>, vector<8x64xf32>
    tpu.vector_store %arg18[%659, %c0_183], %658 {strides = array<i32>} : memref<64x64xf32, #tpu.memory_space<vmem>>, vector<8x64xf32>,
    %c3_i32_184 = arith.constant 3 : i32
    %c8_i32_185 = arith.constant 8 : i32
    %661 = arith.muli %c3_i32_184, %c8_i32_185 : i32
    %662 = tpu.assume_multiple %661, 8 : i32
    %663 = arith.index_cast %662 : i32 to index
    %c0_186 = arith.constant 0 : index
    %664 = vector.load %arg20[%663, %c0_186] : memref<64x256xf32, #tpu.memory_space<vmem>>, vector<8x256xf32>
    %cst_187 = arith.constant dense<0.000000e+00> : vector<8x256xf32>
    %665 = tpu.matmul %658, %560, %cst_187 {dimension_numbers = #tpu.dot_dimension_numbers<[1], [0], [0], [1], [0, 0, 1, 1], [], []>} : vector<8x64xf32>, vector<64x256xf32>, vector<8x256xf32> -> vector<8x256xf32>
    %666 = arith.addf %664, %665 : vector<8x256xf32>
    %667 = vector.extract_strided_slice %666 {offsets = [0, 0], sizes = [8, 64], strides = [1, 1]} : vector<8x256xf32> to vector<8x64xf32>
    %668 = arith.negf %667 : vector<8x64xf32>
    %669 = math.exp %668 : vector<8x64xf32>
    %cst_188 = arith.constant 1.000000e+00 : f32
    %670 = vector.broadcast %cst_188 : f32 to vector<8x64xf32>
    %671 = arith.addf %670, %669 : vector<8x64xf32>
    %672 = arith.divf %670, %671 : vector<8x64xf32>
    %673 = vector.extract_strided_slice %666 {offsets = [0, 64], sizes = [8, 64], strides = [1, 1]} : vector<8x256xf32> to vector<8x64xf32>
    %674 = arith.negf %673 : vector<8x64xf32>
    %675 = math.exp %674 : vector<8x64xf32>
    %cst_189 = arith.constant 1.000000e+00 : f32
    %676 = vector.broadcast %cst_189 : f32 to vector<8x64xf32>
    %677 = arith.addf %676, %675 : vector<8x64xf32>
    %678 = arith.divf %676, %677 : vector<8x64xf32>
    %679 = vector.extract_strided_slice %666 {offsets = [0, 128], sizes = [8, 64], strides = [1, 1]} : vector<8x256xf32> to vector<8x64xf32>
    %680 = math.tanh %679 : vector<8x64xf32>
    %681 = vector.extract_strided_slice %666 {offsets = [0, 192], sizes = [8, 64], strides = [1, 1]} : vector<8x256xf32> to vector<8x64xf32>
    %682 = arith.negf %681 : vector<8x64xf32>
    %683 = math.exp %682 : vector<8x64xf32>
    %cst_190 = arith.constant 1.000000e+00 : f32
    %684 = vector.broadcast %cst_190 : f32 to vector<8x64xf32>
    %685 = arith.addf %684, %683 : vector<8x64xf32>
    %686 = arith.divf %684, %685 : vector<8x64xf32>
    %687 = arith.mulf %678, %656 : vector<8x64xf32>
    %688 = arith.mulf %672, %680 : vector<8x64xf32>
    %689 = arith.addf %687, %688 : vector<8x64xf32>
    %690 = math.tanh %689 : vector<8x64xf32>
    %691 = arith.mulf %686, %690 : vector<8x64xf32>
    %692 = arith.index_cast %662 : i32 to index
    %c0_191 = arith.constant 0 : index
    %693 = vector.load %arg18[%692, %c0_191] : memref<64x64xf32, #tpu.memory_space<vmem>>, vector<8x64xf32>
    tpu.vector_store %arg18[%692, %c0_191], %691 {strides = array<i32>} : memref<64x64xf32, #tpu.memory_space<vmem>>, vector<8x64xf32>,
    %c4_i32_192 = arith.constant 4 : i32
    %c8_i32_193 = arith.constant 8 : i32
    %694 = arith.muli %c4_i32_192, %c8_i32_193 : i32
    %695 = tpu.assume_multiple %694, 8 : i32
    %696 = arith.index_cast %695 : i32 to index
    %c0_194 = arith.constant 0 : index
    %697 = vector.load %arg20[%696, %c0_194] : memref<64x256xf32, #tpu.memory_space<vmem>>, vector<8x256xf32>
    %cst_195 = arith.constant dense<0.000000e+00> : vector<8x256xf32>
    %698 = tpu.matmul %691, %560, %cst_195 {dimension_numbers = #tpu.dot_dimension_numbers<[1], [0], [0], [1], [0, 0, 1, 1], [], []>} : vector<8x64xf32>, vector<64x256xf32>, vector<8x256xf32> -> vector<8x256xf32>
    %699 = arith.addf %697, %698 : vector<8x256xf32>
    %700 = vector.extract_strided_slice %699 {offsets = [0, 0], sizes = [8, 64], strides = [1, 1]} : vector<8x256xf32> to vector<8x64xf32>
    %701 = arith.negf %700 : vector<8x64xf32>
    %702 = math.exp %701 : vector<8x64xf32>
    %cst_196 = arith.constant 1.000000e+00 : f32
    %703 = vector.broadcast %cst_196 : f32 to vector<8x64xf32>
    %704 = arith.addf %703, %702 : vector<8x64xf32>
    %705 = arith.divf %703, %704 : vector<8x64xf32>
    %706 = vector.extract_strided_slice %699 {offsets = [0, 64], sizes = [8, 64], strides = [1, 1]} : vector<8x256xf32> to vector<8x64xf32>
    %707 = arith.negf %706 : vector<8x64xf32>
    %708 = math.exp %707 : vector<8x64xf32>
    %cst_197 = arith.constant 1.000000e+00 : f32
    %709 = vector.broadcast %cst_197 : f32 to vector<8x64xf32>
    %710 = arith.addf %709, %708 : vector<8x64xf32>
    %711 = arith.divf %709, %710 : vector<8x64xf32>
    %712 = vector.extract_strided_slice %699 {offsets = [0, 128], sizes = [8, 64], strides = [1, 1]} : vector<8x256xf32> to vector<8x64xf32>
    %713 = math.tanh %712 : vector<8x64xf32>
    %714 = vector.extract_strided_slice %699 {offsets = [0, 192], sizes = [8, 64], strides = [1, 1]} : vector<8x256xf32> to vector<8x64xf32>
    %715 = arith.negf %714 : vector<8x64xf32>
    %716 = math.exp %715 : vector<8x64xf32>
    %cst_198 = arith.constant 1.000000e+00 : f32
    %717 = vector.broadcast %cst_198 : f32 to vector<8x64xf32>
    %718 = arith.addf %717, %716 : vector<8x64xf32>
    %719 = arith.divf %717, %718 : vector<8x64xf32>
    %720 = arith.mulf %711, %689 : vector<8x64xf32>
    %721 = arith.mulf %705, %713 : vector<8x64xf32>
    %722 = arith.addf %720, %721 : vector<8x64xf32>
    %723 = math.tanh %722 : vector<8x64xf32>
    %724 = arith.mulf %719, %723 : vector<8x64xf32>
    %725 = arith.index_cast %695 : i32 to index
    %c0_199 = arith.constant 0 : index
    %726 = vector.load %arg18[%725, %c0_199] : memref<64x64xf32, #tpu.memory_space<vmem>>, vector<8x64xf32>
    tpu.vector_store %arg18[%725, %c0_199], %724 {strides = array<i32>} : memref<64x64xf32, #tpu.memory_space<vmem>>, vector<8x64xf32>,
    %c5_i32_200 = arith.constant 5 : i32
    %c8_i32_201 = arith.constant 8 : i32
    %727 = arith.muli %c5_i32_200, %c8_i32_201 : i32
    %728 = tpu.assume_multiple %727, 8 : i32
    %729 = arith.index_cast %728 : i32 to index
    %c0_202 = arith.constant 0 : index
    %730 = vector.load %arg20[%729, %c0_202] : memref<64x256xf32, #tpu.memory_space<vmem>>, vector<8x256xf32>
    %cst_203 = arith.constant dense<0.000000e+00> : vector<8x256xf32>
    %731 = tpu.matmul %724, %560, %cst_203 {dimension_numbers = #tpu.dot_dimension_numbers<[1], [0], [0], [1], [0, 0, 1, 1], [], []>} : vector<8x64xf32>, vector<64x256xf32>, vector<8x256xf32> -> vector<8x256xf32>
    %732 = arith.addf %730, %731 : vector<8x256xf32>
    %733 = vector.extract_strided_slice %732 {offsets = [0, 0], sizes = [8, 64], strides = [1, 1]} : vector<8x256xf32> to vector<8x64xf32>
    %734 = arith.negf %733 : vector<8x64xf32>
    %735 = math.exp %734 : vector<8x64xf32>
    %cst_204 = arith.constant 1.000000e+00 : f32
    %736 = vector.broadcast %cst_204 : f32 to vector<8x64xf32>
    %737 = arith.addf %736, %735 : vector<8x64xf32>
    %738 = arith.divf %736, %737 : vector<8x64xf32>
    %739 = vector.extract_strided_slice %732 {offsets = [0, 64], sizes = [8, 64], strides = [1, 1]} : vector<8x256xf32> to vector<8x64xf32>
    %740 = arith.negf %739 : vector<8x64xf32>
    %741 = math.exp %740 : vector<8x64xf32>
    %cst_205 = arith.constant 1.000000e+00 : f32
    %742 = vector.broadcast %cst_205 : f32 to vector<8x64xf32>
    %743 = arith.addf %742, %741 : vector<8x64xf32>
    %744 = arith.divf %742, %743 : vector<8x64xf32>
    %745 = vector.extract_strided_slice %732 {offsets = [0, 128], sizes = [8, 64], strides = [1, 1]} : vector<8x256xf32> to vector<8x64xf32>
    %746 = math.tanh %745 : vector<8x64xf32>
    %747 = vector.extract_strided_slice %732 {offsets = [0, 192], sizes = [8, 64], strides = [1, 1]} : vector<8x256xf32> to vector<8x64xf32>
    %748 = arith.negf %747 : vector<8x64xf32>
    %749 = math.exp %748 : vector<8x64xf32>
    %cst_206 = arith.constant 1.000000e+00 : f32
    %750 = vector.broadcast %cst_206 : f32 to vector<8x64xf32>
    %751 = arith.addf %750, %749 : vector<8x64xf32>
    %752 = arith.divf %750, %751 : vector<8x64xf32>
    %753 = arith.mulf %744, %722 : vector<8x64xf32>
    %754 = arith.mulf %738, %746 : vector<8x64xf32>
    %755 = arith.addf %753, %754 : vector<8x64xf32>
    %756 = math.tanh %755 : vector<8x64xf32>
    %757 = arith.mulf %752, %756 : vector<8x64xf32>
    %758 = arith.index_cast %728 : i32 to index
    %c0_207 = arith.constant 0 : index
    %759 = vector.load %arg18[%758, %c0_207] : memref<64x64xf32, #tpu.memory_space<vmem>>, vector<8x64xf32>
    tpu.vector_store %arg18[%758, %c0_207], %757 {strides = array<i32>} : memref<64x64xf32, #tpu.memory_space<vmem>>, vector<8x64xf32>,
    %c6_i32_208 = arith.constant 6 : i32
    %c8_i32_209 = arith.constant 8 : i32
    %760 = arith.muli %c6_i32_208, %c8_i32_209 : i32
    %761 = tpu.assume_multiple %760, 8 : i32
    %762 = arith.index_cast %761 : i32 to index
    %c0_210 = arith.constant 0 : index
    %763 = vector.load %arg20[%762, %c0_210] : memref<64x256xf32, #tpu.memory_space<vmem>>, vector<8x256xf32>
    %cst_211 = arith.constant dense<0.000000e+00> : vector<8x256xf32>
    %764 = tpu.matmul %757, %560, %cst_211 {dimension_numbers = #tpu.dot_dimension_numbers<[1], [0], [0], [1], [0, 0, 1, 1], [], []>} : vector<8x64xf32>, vector<64x256xf32>, vector<8x256xf32> -> vector<8x256xf32>
    %765 = arith.addf %763, %764 : vector<8x256xf32>
    %766 = vector.extract_strided_slice %765 {offsets = [0, 0], sizes = [8, 64], strides = [1, 1]} : vector<8x256xf32> to vector<8x64xf32>
    %767 = arith.negf %766 : vector<8x64xf32>
    %768 = math.exp %767 : vector<8x64xf32>
    %cst_212 = arith.constant 1.000000e+00 : f32
    %769 = vector.broadcast %cst_212 : f32 to vector<8x64xf32>
    %770 = arith.addf %769, %768 : vector<8x64xf32>
    %771 = arith.divf %769, %770 : vector<8x64xf32>
    %772 = vector.extract_strided_slice %765 {offsets = [0, 64], sizes = [8, 64], strides = [1, 1]} : vector<8x256xf32> to vector<8x64xf32>
    %773 = arith.negf %772 : vector<8x64xf32>
    %774 = math.exp %773 : vector<8x64xf32>
    %cst_213 = arith.constant 1.000000e+00 : f32
    %775 = vector.broadcast %cst_213 : f32 to vector<8x64xf32>
    %776 = arith.addf %775, %774 : vector<8x64xf32>
    %777 = arith.divf %775, %776 : vector<8x64xf32>
    %778 = vector.extract_strided_slice %765 {offsets = [0, 128], sizes = [8, 64], strides = [1, 1]} : vector<8x256xf32> to vector<8x64xf32>
    %779 = math.tanh %778 : vector<8x64xf32>
    %780 = vector.extract_strided_slice %765 {offsets = [0, 192], sizes = [8, 64], strides = [1, 1]} : vector<8x256xf32> to vector<8x64xf32>
    %781 = arith.negf %780 : vector<8x64xf32>
    %782 = math.exp %781 : vector<8x64xf32>
    %cst_214 = arith.constant 1.000000e+00 : f32
    %783 = vector.broadcast %cst_214 : f32 to vector<8x64xf32>
    %784 = arith.addf %783, %782 : vector<8x64xf32>
    %785 = arith.divf %783, %784 : vector<8x64xf32>
    %786 = arith.mulf %777, %755 : vector<8x64xf32>
    %787 = arith.mulf %771, %779 : vector<8x64xf32>
    %788 = arith.addf %786, %787 : vector<8x64xf32>
    %789 = math.tanh %788 : vector<8x64xf32>
    %790 = arith.mulf %785, %789 : vector<8x64xf32>
    %791 = arith.index_cast %761 : i32 to index
    %c0_215 = arith.constant 0 : index
    %792 = vector.load %arg18[%791, %c0_215] : memref<64x64xf32, #tpu.memory_space<vmem>>, vector<8x64xf32>
    tpu.vector_store %arg18[%791, %c0_215], %790 {strides = array<i32>} : memref<64x64xf32, #tpu.memory_space<vmem>>, vector<8x64xf32>,
    %c7_i32_216 = arith.constant 7 : i32
    %c8_i32_217 = arith.constant 8 : i32
    %793 = arith.muli %c7_i32_216, %c8_i32_217 : i32
    %794 = tpu.assume_multiple %793, 8 : i32
    %795 = arith.index_cast %794 : i32 to index
    %c0_218 = arith.constant 0 : index
    %796 = vector.load %arg20[%795, %c0_218] : memref<64x256xf32, #tpu.memory_space<vmem>>, vector<8x256xf32>
    %cst_219 = arith.constant dense<0.000000e+00> : vector<8x256xf32>
    %797 = tpu.matmul %790, %560, %cst_219 {dimension_numbers = #tpu.dot_dimension_numbers<[1], [0], [0], [1], [0, 0, 1, 1], [], []>} : vector<8x64xf32>, vector<64x256xf32>, vector<8x256xf32> -> vector<8x256xf32>
    %798 = arith.addf %796, %797 : vector<8x256xf32>
    %799 = vector.extract_strided_slice %798 {offsets = [0, 0], sizes = [8, 64], strides = [1, 1]} : vector<8x256xf32> to vector<8x64xf32>
    %800 = arith.negf %799 : vector<8x64xf32>
    %801 = math.exp %800 : vector<8x64xf32>
    %cst_220 = arith.constant 1.000000e+00 : f32
    %802 = vector.broadcast %cst_220 : f32 to vector<8x64xf32>
    %803 = arith.addf %802, %801 : vector<8x64xf32>
    %804 = arith.divf %802, %803 : vector<8x64xf32>
    %805 = vector.extract_strided_slice %798 {offsets = [0, 64], sizes = [8, 64], strides = [1, 1]} : vector<8x256xf32> to vector<8x64xf32>
    %806 = arith.negf %805 : vector<8x64xf32>
    %807 = math.exp %806 : vector<8x64xf32>
    %cst_221 = arith.constant 1.000000e+00 : f32
    %808 = vector.broadcast %cst_221 : f32 to vector<8x64xf32>
    %809 = arith.addf %808, %807 : vector<8x64xf32>
    %810 = arith.divf %808, %809 : vector<8x64xf32>
    %811 = vector.extract_strided_slice %798 {offsets = [0, 128], sizes = [8, 64], strides = [1, 1]} : vector<8x256xf32> to vector<8x64xf32>
    %812 = math.tanh %811 : vector<8x64xf32>
    %813 = vector.extract_strided_slice %798 {offsets = [0, 192], sizes = [8, 64], strides = [1, 1]} : vector<8x256xf32> to vector<8x64xf32>
    %814 = arith.negf %813 : vector<8x64xf32>
    %815 = math.exp %814 : vector<8x64xf32>
    %cst_222 = arith.constant 1.000000e+00 : f32
    %816 = vector.broadcast %cst_222 : f32 to vector<8x64xf32>
    %817 = arith.addf %816, %815 : vector<8x64xf32>
    %818 = arith.divf %816, %817 : vector<8x64xf32>
    %819 = arith.mulf %810, %788 : vector<8x64xf32>
    %820 = arith.mulf %804, %812 : vector<8x64xf32>
    %821 = arith.addf %819, %820 : vector<8x64xf32>
    %822 = math.tanh %821 : vector<8x64xf32>
    %823 = arith.mulf %818, %822 : vector<8x64xf32>
    %824 = arith.index_cast %794 : i32 to index
    %c0_223 = arith.constant 0 : index
    %825 = vector.load %arg18[%824, %c0_223] : memref<64x64xf32, #tpu.memory_space<vmem>>, vector<8x64xf32>
    tpu.vector_store %arg18[%824, %c0_223], %823 {strides = array<i32>} : memref<64x64xf32, #tpu.memory_space<vmem>>, vector<8x64xf32>,
    %c8_i32_224 = arith.constant 8 : i32
    %c0_225 = arith.constant 0 : index
    %c0_226 = arith.constant 0 : index
    %826 = vector.load %arg9[%c0_225, %c0_226] : memref<64x256xf32, #tpu.memory_space<vmem>>, vector<64x256xf32>
    %cst_227 = arith.constant 0.000000e+00 : f32
    %827 = vector.broadcast %cst_227 : f32 to vector<8x64xf32>
    %c0_i32_228 = arith.constant 0 : i32
    %c7_i32_229 = arith.constant 7 : i32
    %828 = arith.subi %c7_i32_229, %c0_i32_228 : i32
    %c8_i32_230 = arith.constant 8 : i32
    %829 = arith.muli %828, %c8_i32_230 : i32
    %830 = tpu.assume_multiple %829, 8 : i32
    %831 = arith.index_cast %830 : i32 to index
    %c0_231 = arith.constant 0 : index
    %832 = vector.load %arg21[%831, %c0_231] : memref<64x256xf32, #tpu.memory_space<vmem>>, vector<8x256xf32>
    %cst_232 = arith.constant dense<0.000000e+00> : vector<8x256xf32>
    %833 = tpu.matmul %827, %826, %cst_232 {dimension_numbers = #tpu.dot_dimension_numbers<[1], [0], [0], [1], [0, 0, 1, 1], [], []>} : vector<8x64xf32>, vector<64x256xf32>, vector<8x256xf32> -> vector<8x256xf32>
    %834 = arith.addf %832, %833 : vector<8x256xf32>
    %835 = vector.extract_strided_slice %834 {offsets = [0, 0], sizes = [8, 64], strides = [1, 1]} : vector<8x256xf32> to vector<8x64xf32>
    %836 = arith.negf %835 : vector<8x64xf32>
    %837 = math.exp %836 : vector<8x64xf32>
    %cst_233 = arith.constant 1.000000e+00 : f32
    %838 = vector.broadcast %cst_233 : f32 to vector<8x64xf32>
    %839 = arith.addf %838, %837 : vector<8x64xf32>
    %840 = arith.divf %838, %839 : vector<8x64xf32>
    %841 = vector.extract_strided_slice %834 {offsets = [0, 64], sizes = [8, 64], strides = [1, 1]} : vector<8x256xf32> to vector<8x64xf32>
    %842 = arith.negf %841 : vector<8x64xf32>
    %843 = math.exp %842 : vector<8x64xf32>
    %cst_234 = arith.constant 1.000000e+00 : f32
    %844 = vector.broadcast %cst_234 : f32 to vector<8x64xf32>
    %845 = arith.addf %844, %843 : vector<8x64xf32>
    %846 = arith.divf %844, %845 : vector<8x64xf32>
    %847 = vector.extract_strided_slice %834 {offsets = [0, 128], sizes = [8, 64], strides = [1, 1]} : vector<8x256xf32> to vector<8x64xf32>
    %848 = math.tanh %847 : vector<8x64xf32>
    %849 = vector.extract_strided_slice %834 {offsets = [0, 192], sizes = [8, 64], strides = [1, 1]} : vector<8x256xf32> to vector<8x64xf32>
    %850 = arith.negf %849 : vector<8x64xf32>
    %851 = math.exp %850 : vector<8x64xf32>
    %cst_235 = arith.constant 1.000000e+00 : f32
    %852 = vector.broadcast %cst_235 : f32 to vector<8x64xf32>
    %853 = arith.addf %852, %851 : vector<8x64xf32>
    %854 = arith.divf %852, %853 : vector<8x64xf32>
    %855 = arith.mulf %846, %827 : vector<8x64xf32>
    %856 = arith.mulf %840, %848 : vector<8x64xf32>
    %857 = arith.addf %855, %856 : vector<8x64xf32>
    %858 = math.tanh %857 : vector<8x64xf32>
    %859 = arith.mulf %854, %858 : vector<8x64xf32>
    %860 = arith.index_cast %830 : i32 to index
    %c0_236 = arith.constant 0 : index
    %861 = vector.load %arg19[%860, %c0_236] : memref<64x64xf32, #tpu.memory_space<vmem>>, vector<8x64xf32>
    tpu.vector_store %arg19[%860, %c0_236], %859 {strides = array<i32>} : memref<64x64xf32, #tpu.memory_space<vmem>>, vector<8x64xf32>,
    %c1_i32_237 = arith.constant 1 : i32
    %c7_i32_238 = arith.constant 7 : i32
    %862 = arith.subi %c7_i32_238, %c1_i32_237 : i32
    %c8_i32_239 = arith.constant 8 : i32
    %863 = arith.muli %862, %c8_i32_239 : i32
    %864 = tpu.assume_multiple %863, 8 : i32
    %865 = arith.index_cast %864 : i32 to index
    %c0_240 = arith.constant 0 : index
    %866 = vector.load %arg21[%865, %c0_240] : memref<64x256xf32, #tpu.memory_space<vmem>>, vector<8x256xf32>
    %cst_241 = arith.constant dense<0.000000e+00> : vector<8x256xf32>
    %867 = tpu.matmul %859, %826, %cst_241 {dimension_numbers = #tpu.dot_dimension_numbers<[1], [0], [0], [1], [0, 0, 1, 1], [], []>} : vector<8x64xf32>, vector<64x256xf32>, vector<8x256xf32> -> vector<8x256xf32>
    %868 = arith.addf %866, %867 : vector<8x256xf32>
    %869 = vector.extract_strided_slice %868 {offsets = [0, 0], sizes = [8, 64], strides = [1, 1]} : vector<8x256xf32> to vector<8x64xf32>
    %870 = arith.negf %869 : vector<8x64xf32>
    %871 = math.exp %870 : vector<8x64xf32>
    %cst_242 = arith.constant 1.000000e+00 : f32
    %872 = vector.broadcast %cst_242 : f32 to vector<8x64xf32>
    %873 = arith.addf %872, %871 : vector<8x64xf32>
    %874 = arith.divf %872, %873 : vector<8x64xf32>
    %875 = vector.extract_strided_slice %868 {offsets = [0, 64], sizes = [8, 64], strides = [1, 1]} : vector<8x256xf32> to vector<8x64xf32>
    %876 = arith.negf %875 : vector<8x64xf32>
    %877 = math.exp %876 : vector<8x64xf32>
    %cst_243 = arith.constant 1.000000e+00 : f32
    %878 = vector.broadcast %cst_243 : f32 to vector<8x64xf32>
    %879 = arith.addf %878, %877 : vector<8x64xf32>
    %880 = arith.divf %878, %879 : vector<8x64xf32>
    %881 = vector.extract_strided_slice %868 {offsets = [0, 128], sizes = [8, 64], strides = [1, 1]} : vector<8x256xf32> to vector<8x64xf32>
    %882 = math.tanh %881 : vector<8x64xf32>
    %883 = vector.extract_strided_slice %868 {offsets = [0, 192], sizes = [8, 64], strides = [1, 1]} : vector<8x256xf32> to vector<8x64xf32>
    %884 = arith.negf %883 : vector<8x64xf32>
    %885 = math.exp %884 : vector<8x64xf32>
    %cst_244 = arith.constant 1.000000e+00 : f32
    %886 = vector.broadcast %cst_244 : f32 to vector<8x64xf32>
    %887 = arith.addf %886, %885 : vector<8x64xf32>
    %888 = arith.divf %886, %887 : vector<8x64xf32>
    %889 = arith.mulf %880, %857 : vector<8x64xf32>
    %890 = arith.mulf %874, %882 : vector<8x64xf32>
    %891 = arith.addf %889, %890 : vector<8x64xf32>
    %892 = math.tanh %891 : vector<8x64xf32>
    %893 = arith.mulf %888, %892 : vector<8x64xf32>
    %894 = arith.index_cast %864 : i32 to index
    %c0_245 = arith.constant 0 : index
    %895 = vector.load %arg19[%894, %c0_245] : memref<64x64xf32, #tpu.memory_space<vmem>>, vector<8x64xf32>
    tpu.vector_store %arg19[%894, %c0_245], %893 {strides = array<i32>} : memref<64x64xf32, #tpu.memory_space<vmem>>, vector<8x64xf32>,
    %c2_i32_246 = arith.constant 2 : i32
    %c7_i32_247 = arith.constant 7 : i32
    %896 = arith.subi %c7_i32_247, %c2_i32_246 : i32
    %c8_i32_248 = arith.constant 8 : i32
    %897 = arith.muli %896, %c8_i32_248 : i32
    %898 = tpu.assume_multiple %897, 8 : i32
    %899 = arith.index_cast %898 : i32 to index
    %c0_249 = arith.constant 0 : index
    %900 = vector.load %arg21[%899, %c0_249] : memref<64x256xf32, #tpu.memory_space<vmem>>, vector<8x256xf32>
    %cst_250 = arith.constant dense<0.000000e+00> : vector<8x256xf32>
    %901 = tpu.matmul %893, %826, %cst_250 {dimension_numbers = #tpu.dot_dimension_numbers<[1], [0], [0], [1], [0, 0, 1, 1], [], []>} : vector<8x64xf32>, vector<64x256xf32>, vector<8x256xf32> -> vector<8x256xf32>
    %902 = arith.addf %900, %901 : vector<8x256xf32>
    %903 = vector.extract_strided_slice %902 {offsets = [0, 0], sizes = [8, 64], strides = [1, 1]} : vector<8x256xf32> to vector<8x64xf32>
    %904 = arith.negf %903 : vector<8x64xf32>
    %905 = math.exp %904 : vector<8x64xf32>
    %cst_251 = arith.constant 1.000000e+00 : f32
    %906 = vector.broadcast %cst_251 : f32 to vector<8x64xf32>
    %907 = arith.addf %906, %905 : vector<8x64xf32>
    %908 = arith.divf %906, %907 : vector<8x64xf32>
    %909 = vector.extract_strided_slice %902 {offsets = [0, 64], sizes = [8, 64], strides = [1, 1]} : vector<8x256xf32> to vector<8x64xf32>
    %910 = arith.negf %909 : vector<8x64xf32>
    %911 = math.exp %910 : vector<8x64xf32>
    %cst_252 = arith.constant 1.000000e+00 : f32
    %912 = vector.broadcast %cst_252 : f32 to vector<8x64xf32>
    %913 = arith.addf %912, %911 : vector<8x64xf32>
    %914 = arith.divf %912, %913 : vector<8x64xf32>
    %915 = vector.extract_strided_slice %902 {offsets = [0, 128], sizes = [8, 64], strides = [1, 1]} : vector<8x256xf32> to vector<8x64xf32>
    %916 = math.tanh %915 : vector<8x64xf32>
    %917 = vector.extract_strided_slice %902 {offsets = [0, 192], sizes = [8, 64], strides = [1, 1]} : vector<8x256xf32> to vector<8x64xf32>
    %918 = arith.negf %917 : vector<8x64xf32>
    %919 = math.exp %918 : vector<8x64xf32>
    %cst_253 = arith.constant 1.000000e+00 : f32
    %920 = vector.broadcast %cst_253 : f32 to vector<8x64xf32>
    %921 = arith.addf %920, %919 : vector<8x64xf32>
    %922 = arith.divf %920, %921 : vector<8x64xf32>
    %923 = arith.mulf %914, %891 : vector<8x64xf32>
    %924 = arith.mulf %908, %916 : vector<8x64xf32>
    %925 = arith.addf %923, %924 : vector<8x64xf32>
    %926 = math.tanh %925 : vector<8x64xf32>
    %927 = arith.mulf %922, %926 : vector<8x64xf32>
    %928 = arith.index_cast %898 : i32 to index
    %c0_254 = arith.constant 0 : index
    %929 = vector.load %arg19[%928, %c0_254] : memref<64x64xf32, #tpu.memory_space<vmem>>, vector<8x64xf32>
    tpu.vector_store %arg19[%928, %c0_254], %927 {strides = array<i32>} : memref<64x64xf32, #tpu.memory_space<vmem>>, vector<8x64xf32>,
    %c3_i32_255 = arith.constant 3 : i32
    %c7_i32_256 = arith.constant 7 : i32
    %930 = arith.subi %c7_i32_256, %c3_i32_255 : i32
    %c8_i32_257 = arith.constant 8 : i32
    %931 = arith.muli %930, %c8_i32_257 : i32
    %932 = tpu.assume_multiple %931, 8 : i32
    %933 = arith.index_cast %932 : i32 to index
    %c0_258 = arith.constant 0 : index
    %934 = vector.load %arg21[%933, %c0_258] : memref<64x256xf32, #tpu.memory_space<vmem>>, vector<8x256xf32>
    %cst_259 = arith.constant dense<0.000000e+00> : vector<8x256xf32>
    %935 = tpu.matmul %927, %826, %cst_259 {dimension_numbers = #tpu.dot_dimension_numbers<[1], [0], [0], [1], [0, 0, 1, 1], [], []>} : vector<8x64xf32>, vector<64x256xf32>, vector<8x256xf32> -> vector<8x256xf32>
    %936 = arith.addf %934, %935 : vector<8x256xf32>
    %937 = vector.extract_strided_slice %936 {offsets = [0, 0], sizes = [8, 64], strides = [1, 1]} : vector<8x256xf32> to vector<8x64xf32>
    %938 = arith.negf %937 : vector<8x64xf32>
    %939 = math.exp %938 : vector<8x64xf32>
    %cst_260 = arith.constant 1.000000e+00 : f32
    %940 = vector.broadcast %cst_260 : f32 to vector<8x64xf32>
    %941 = arith.addf %940, %939 : vector<8x64xf32>
    %942 = arith.divf %940, %941 : vector<8x64xf32>
    %943 = vector.extract_strided_slice %936 {offsets = [0, 64], sizes = [8, 64], strides = [1, 1]} : vector<8x256xf32> to vector<8x64xf32>
    %944 = arith.negf %943 : vector<8x64xf32>
    %945 = math.exp %944 : vector<8x64xf32>
    %cst_261 = arith.constant 1.000000e+00 : f32
    %946 = vector.broadcast %cst_261 : f32 to vector<8x64xf32>
    %947 = arith.addf %946, %945 : vector<8x64xf32>
    %948 = arith.divf %946, %947 : vector<8x64xf32>
    %949 = vector.extract_strided_slice %936 {offsets = [0, 128], sizes = [8, 64], strides = [1, 1]} : vector<8x256xf32> to vector<8x64xf32>
    %950 = math.tanh %949 : vector<8x64xf32>
    %951 = vector.extract_strided_slice %936 {offsets = [0, 192], sizes = [8, 64], strides = [1, 1]} : vector<8x256xf32> to vector<8x64xf32>
    %952 = arith.negf %951 : vector<8x64xf32>
    %953 = math.exp %952 : vector<8x64xf32>
    %cst_262 = arith.constant 1.000000e+00 : f32
    %954 = vector.broadcast %cst_262 : f32 to vector<8x64xf32>
    %955 = arith.addf %954, %953 : vector<8x64xf32>
    %956 = arith.divf %954, %955 : vector<8x64xf32>
    %957 = arith.mulf %948, %925 : vector<8x64xf32>
    %958 = arith.mulf %942, %950 : vector<8x64xf32>
    %959 = arith.addf %957, %958 : vector<8x64xf32>
    %960 = math.tanh %959 : vector<8x64xf32>
    %961 = arith.mulf %956, %960 : vector<8x64xf32>
    %962 = arith.index_cast %932 : i32 to index
    %c0_263 = arith.constant 0 : index
    %963 = vector.load %arg19[%962, %c0_263] : memref<64x64xf32, #tpu.memory_space<vmem>>, vector<8x64xf32>
    tpu.vector_store %arg19[%962, %c0_263], %961 {strides = array<i32>} : memref<64x64xf32, #tpu.memory_space<vmem>>, vector<8x64xf32>,
    %c4_i32_264 = arith.constant 4 : i32
    %c7_i32_265 = arith.constant 7 : i32
    %964 = arith.subi %c7_i32_265, %c4_i32_264 : i32
    %c8_i32_266 = arith.constant 8 : i32
    %965 = arith.muli %964, %c8_i32_266 : i32
    %966 = tpu.assume_multiple %965, 8 : i32
    %967 = arith.index_cast %966 : i32 to index
    %c0_267 = arith.constant 0 : index
    %968 = vector.load %arg21[%967, %c0_267] : memref<64x256xf32, #tpu.memory_space<vmem>>, vector<8x256xf32>
    %cst_268 = arith.constant dense<0.000000e+00> : vector<8x256xf32>
    %969 = tpu.matmul %961, %826, %cst_268 {dimension_numbers = #tpu.dot_dimension_numbers<[1], [0], [0], [1], [0, 0, 1, 1], [], []>} : vector<8x64xf32>, vector<64x256xf32>, vector<8x256xf32> -> vector<8x256xf32>
    %970 = arith.addf %968, %969 : vector<8x256xf32>
    %971 = vector.extract_strided_slice %970 {offsets = [0, 0], sizes = [8, 64], strides = [1, 1]} : vector<8x256xf32> to vector<8x64xf32>
    %972 = arith.negf %971 : vector<8x64xf32>
    %973 = math.exp %972 : vector<8x64xf32>
    %cst_269 = arith.constant 1.000000e+00 : f32
    %974 = vector.broadcast %cst_269 : f32 to vector<8x64xf32>
    %975 = arith.addf %974, %973 : vector<8x64xf32>
    %976 = arith.divf %974, %975 : vector<8x64xf32>
    %977 = vector.extract_strided_slice %970 {offsets = [0, 64], sizes = [8, 64], strides = [1, 1]} : vector<8x256xf32> to vector<8x64xf32>
    %978 = arith.negf %977 : vector<8x64xf32>
    %979 = math.exp %978 : vector<8x64xf32>
    %cst_270 = arith.constant 1.000000e+00 : f32
    %980 = vector.broadcast %cst_270 : f32 to vector<8x64xf32>
    %981 = arith.addf %980, %979 : vector<8x64xf32>
    %982 = arith.divf %980, %981 : vector<8x64xf32>
    %983 = vector.extract_strided_slice %970 {offsets = [0, 128], sizes = [8, 64], strides = [1, 1]} : vector<8x256xf32> to vector<8x64xf32>
    %984 = math.tanh %983 : vector<8x64xf32>
    %985 = vector.extract_strided_slice %970 {offsets = [0, 192], sizes = [8, 64], strides = [1, 1]} : vector<8x256xf32> to vector<8x64xf32>
    %986 = arith.negf %985 : vector<8x64xf32>
    %987 = math.exp %986 : vector<8x64xf32>
    %cst_271 = arith.constant 1.000000e+00 : f32
    %988 = vector.broadcast %cst_271 : f32 to vector<8x64xf32>
    %989 = arith.addf %988, %987 : vector<8x64xf32>
    %990 = arith.divf %988, %989 : vector<8x64xf32>
    %991 = arith.mulf %982, %959 : vector<8x64xf32>
    %992 = arith.mulf %976, %984 : vector<8x64xf32>
    %993 = arith.addf %991, %992 : vector<8x64xf32>
    %994 = math.tanh %993 : vector<8x64xf32>
    %995 = arith.mulf %990, %994 : vector<8x64xf32>
    %996 = arith.index_cast %966 : i32 to index
    %c0_272 = arith.constant 0 : index
    %997 = vector.load %arg19[%996, %c0_272] : memref<64x64xf32, #tpu.memory_space<vmem>>, vector<8x64xf32>
    tpu.vector_store %arg19[%996, %c0_272], %995 {strides = array<i32>} : memref<64x64xf32, #tpu.memory_space<vmem>>, vector<8x64xf32>,
    %c5_i32_273 = arith.constant 5 : i32
    %c7_i32_274 = arith.constant 7 : i32
    %998 = arith.subi %c7_i32_274, %c5_i32_273 : i32
    %c8_i32_275 = arith.constant 8 : i32
    %999 = arith.muli %998, %c8_i32_275 : i32
    %1000 = tpu.assume_multiple %999, 8 : i32
    %1001 = arith.index_cast %1000 : i32 to index
    %c0_276 = arith.constant 0 : index
    %1002 = vector.load %arg21[%1001, %c0_276] : memref<64x256xf32, #tpu.memory_space<vmem>>, vector<8x256xf32>
    %cst_277 = arith.constant dense<0.000000e+00> : vector<8x256xf32>
    %1003 = tpu.matmul %995, %826, %cst_277 {dimension_numbers = #tpu.dot_dimension_numbers<[1], [0], [0], [1], [0, 0, 1, 1], [], []>} : vector<8x64xf32>, vector<64x256xf32>, vector<8x256xf32> -> vector<8x256xf32>
    %1004 = arith.addf %1002, %1003 : vector<8x256xf32>
    %1005 = vector.extract_strided_slice %1004 {offsets = [0, 0], sizes = [8, 64], strides = [1, 1]} : vector<8x256xf32> to vector<8x64xf32>
    %1006 = arith.negf %1005 : vector<8x64xf32>
    %1007 = math.exp %1006 : vector<8x64xf32>
    %cst_278 = arith.constant 1.000000e+00 : f32
    %1008 = vector.broadcast %cst_278 : f32 to vector<8x64xf32>
    %1009 = arith.addf %1008, %1007 : vector<8x64xf32>
    %1010 = arith.divf %1008, %1009 : vector<8x64xf32>
    %1011 = vector.extract_strided_slice %1004 {offsets = [0, 64], sizes = [8, 64], strides = [1, 1]} : vector<8x256xf32> to vector<8x64xf32>
    %1012 = arith.negf %1011 : vector<8x64xf32>
    %1013 = math.exp %1012 : vector<8x64xf32>
    %cst_279 = arith.constant 1.000000e+00 : f32
    %1014 = vector.broadcast %cst_279 : f32 to vector<8x64xf32>
    %1015 = arith.addf %1014, %1013 : vector<8x64xf32>
    %1016 = arith.divf %1014, %1015 : vector<8x64xf32>
    %1017 = vector.extract_strided_slice %1004 {offsets = [0, 128], sizes = [8, 64], strides = [1, 1]} : vector<8x256xf32> to vector<8x64xf32>
    %1018 = math.tanh %1017 : vector<8x64xf32>
    %1019 = vector.extract_strided_slice %1004 {offsets = [0, 192], sizes = [8, 64], strides = [1, 1]} : vector<8x256xf32> to vector<8x64xf32>
    %1020 = arith.negf %1019 : vector<8x64xf32>
    %1021 = math.exp %1020 : vector<8x64xf32>
    %cst_280 = arith.constant 1.000000e+00 : f32
    %1022 = vector.broadcast %cst_280 : f32 to vector<8x64xf32>
    %1023 = arith.addf %1022, %1021 : vector<8x64xf32>
    %1024 = arith.divf %1022, %1023 : vector<8x64xf32>
    %1025 = arith.mulf %1016, %993 : vector<8x64xf32>
    %1026 = arith.mulf %1010, %1018 : vector<8x64xf32>
    %1027 = arith.addf %1025, %1026 : vector<8x64xf32>
    %1028 = math.tanh %1027 : vector<8x64xf32>
    %1029 = arith.mulf %1024, %1028 : vector<8x64xf32>
    %1030 = arith.index_cast %1000 : i32 to index
    %c0_281 = arith.constant 0 : index
    %1031 = vector.load %arg19[%1030, %c0_281] : memref<64x64xf32, #tpu.memory_space<vmem>>, vector<8x64xf32>
    tpu.vector_store %arg19[%1030, %c0_281], %1029 {strides = array<i32>} : memref<64x64xf32, #tpu.memory_space<vmem>>, vector<8x64xf32>,
    %c6_i32_282 = arith.constant 6 : i32
    %c7_i32_283 = arith.constant 7 : i32
    %1032 = arith.subi %c7_i32_283, %c6_i32_282 : i32
    %c8_i32_284 = arith.constant 8 : i32
    %1033 = arith.muli %1032, %c8_i32_284 : i32
    %1034 = tpu.assume_multiple %1033, 8 : i32
    %1035 = arith.index_cast %1034 : i32 to index
    %c0_285 = arith.constant 0 : index
    %1036 = vector.load %arg21[%1035, %c0_285] : memref<64x256xf32, #tpu.memory_space<vmem>>, vector<8x256xf32>
    %cst_286 = arith.constant dense<0.000000e+00> : vector<8x256xf32>
    %1037 = tpu.matmul %1029, %826, %cst_286 {dimension_numbers = #tpu.dot_dimension_numbers<[1], [0], [0], [1], [0, 0, 1, 1], [], []>} : vector<8x64xf32>, vector<64x256xf32>, vector<8x256xf32> -> vector<8x256xf32>
    %1038 = arith.addf %1036, %1037 : vector<8x256xf32>
    %1039 = vector.extract_strided_slice %1038 {offsets = [0, 0], sizes = [8, 64], strides = [1, 1]} : vector<8x256xf32> to vector<8x64xf32>
    %1040 = arith.negf %1039 : vector<8x64xf32>
    %1041 = math.exp %1040 : vector<8x64xf32>
    %cst_287 = arith.constant 1.000000e+00 : f32
    %1042 = vector.broadcast %cst_287 : f32 to vector<8x64xf32>
    %1043 = arith.addf %1042, %1041 : vector<8x64xf32>
    %1044 = arith.divf %1042, %1043 : vector<8x64xf32>
    %1045 = vector.extract_strided_slice %1038 {offsets = [0, 64], sizes = [8, 64], strides = [1, 1]} : vector<8x256xf32> to vector<8x64xf32>
    %1046 = arith.negf %1045 : vector<8x64xf32>
    %1047 = math.exp %1046 : vector<8x64xf32>
    %cst_288 = arith.constant 1.000000e+00 : f32
    %1048 = vector.broadcast %cst_288 : f32 to vector<8x64xf32>
    %1049 = arith.addf %1048, %1047 : vector<8x64xf32>
    %1050 = arith.divf %1048, %1049 : vector<8x64xf32>
    %1051 = vector.extract_strided_slice %1038 {offsets = [0, 128], sizes = [8, 64], strides = [1, 1]} : vector<8x256xf32> to vector<8x64xf32>
    %1052 = math.tanh %1051 : vector<8x64xf32>
    %1053 = vector.extract_strided_slice %1038 {offsets = [0, 192], sizes = [8, 64], strides = [1, 1]} : vector<8x256xf32> to vector<8x64xf32>
    %1054 = arith.negf %1053 : vector<8x64xf32>
    %1055 = math.exp %1054 : vector<8x64xf32>
    %cst_289 = arith.constant 1.000000e+00 : f32
    %1056 = vector.broadcast %cst_289 : f32 to vector<8x64xf32>
    %1057 = arith.addf %1056, %1055 : vector<8x64xf32>
    %1058 = arith.divf %1056, %1057 : vector<8x64xf32>
    %1059 = arith.mulf %1050, %1027 : vector<8x64xf32>
    %1060 = arith.mulf %1044, %1052 : vector<8x64xf32>
    %1061 = arith.addf %1059, %1060 : vector<8x64xf32>
    %1062 = math.tanh %1061 : vector<8x64xf32>
    %1063 = arith.mulf %1058, %1062 : vector<8x64xf32>
    %1064 = arith.index_cast %1034 : i32 to index
    %c0_290 = arith.constant 0 : index
    %1065 = vector.load %arg19[%1064, %c0_290] : memref<64x64xf32, #tpu.memory_space<vmem>>, vector<8x64xf32>
    tpu.vector_store %arg19[%1064, %c0_290], %1063 {strides = array<i32>} : memref<64x64xf32, #tpu.memory_space<vmem>>, vector<8x64xf32>,
    %c7_i32_291 = arith.constant 7 : i32
    %c7_i32_292 = arith.constant 7 : i32
    %1066 = arith.subi %c7_i32_292, %c7_i32_291 : i32
    %c8_i32_293 = arith.constant 8 : i32
    %1067 = arith.muli %1066, %c8_i32_293 : i32
    %1068 = tpu.assume_multiple %1067, 8 : i32
    %1069 = arith.index_cast %1068 : i32 to index
    %c0_294 = arith.constant 0 : index
    %1070 = vector.load %arg21[%1069, %c0_294] : memref<64x256xf32, #tpu.memory_space<vmem>>, vector<8x256xf32>
    %cst_295 = arith.constant dense<0.000000e+00> : vector<8x256xf32>
    %1071 = tpu.matmul %1063, %826, %cst_295 {dimension_numbers = #tpu.dot_dimension_numbers<[1], [0], [0], [1], [0, 0, 1, 1], [], []>} : vector<8x64xf32>, vector<64x256xf32>, vector<8x256xf32> -> vector<8x256xf32>
    %1072 = arith.addf %1070, %1071 : vector<8x256xf32>
    %1073 = vector.extract_strided_slice %1072 {offsets = [0, 0], sizes = [8, 64], strides = [1, 1]} : vector<8x256xf32> to vector<8x64xf32>
    %1074 = arith.negf %1073 : vector<8x64xf32>
    %1075 = math.exp %1074 : vector<8x64xf32>
    %cst_296 = arith.constant 1.000000e+00 : f32
    %1076 = vector.broadcast %cst_296 : f32 to vector<8x64xf32>
    %1077 = arith.addf %1076, %1075 : vector<8x64xf32>
    %1078 = arith.divf %1076, %1077 : vector<8x64xf32>
    %1079 = vector.extract_strided_slice %1072 {offsets = [0, 64], sizes = [8, 64], strides = [1, 1]} : vector<8x256xf32> to vector<8x64xf32>
    %1080 = arith.negf %1079 : vector<8x64xf32>
    %1081 = math.exp %1080 : vector<8x64xf32>
    %cst_297 = arith.constant 1.000000e+00 : f32
    %1082 = vector.broadcast %cst_297 : f32 to vector<8x64xf32>
    %1083 = arith.addf %1082, %1081 : vector<8x64xf32>
    %1084 = arith.divf %1082, %1083 : vector<8x64xf32>
    %1085 = vector.extract_strided_slice %1072 {offsets = [0, 128], sizes = [8, 64], strides = [1, 1]} : vector<8x256xf32> to vector<8x64xf32>
    %1086 = math.tanh %1085 : vector<8x64xf32>
    %1087 = vector.extract_strided_slice %1072 {offsets = [0, 192], sizes = [8, 64], strides = [1, 1]} : vector<8x256xf32> to vector<8x64xf32>
    %1088 = arith.negf %1087 : vector<8x64xf32>
    %1089 = math.exp %1088 : vector<8x64xf32>
    %cst_298 = arith.constant 1.000000e+00 : f32
    %1090 = vector.broadcast %cst_298 : f32 to vector<8x64xf32>
    %1091 = arith.addf %1090, %1089 : vector<8x64xf32>
    %1092 = arith.divf %1090, %1091 : vector<8x64xf32>
    %1093 = arith.mulf %1084, %1061 : vector<8x64xf32>
    %1094 = arith.mulf %1078, %1086 : vector<8x64xf32>
    %1095 = arith.addf %1093, %1094 : vector<8x64xf32>
    %1096 = math.tanh %1095 : vector<8x64xf32>
    %1097 = arith.mulf %1092, %1096 : vector<8x64xf32>
    %1098 = arith.index_cast %1068 : i32 to index
    %c0_299 = arith.constant 0 : index
    %1099 = vector.load %arg19[%1098, %c0_299] : memref<64x64xf32, #tpu.memory_space<vmem>>, vector<8x64xf32>
    tpu.vector_store %arg19[%1098, %c0_299], %1097 {strides = array<i32>} : memref<64x64xf32, #tpu.memory_space<vmem>>, vector<8x64xf32>,
    %c8_i32_300 = arith.constant 8 : i32
    %c0_301 = arith.constant 0 : index
    %c0_302 = arith.constant 0 : index
    %1100 = vector.load %arg18[%c0_301, %c0_302] : memref<64x64xf32, #tpu.memory_space<vmem>>, vector<64x64xf32>
    %c0_303 = arith.constant 0 : index
    %c0_304 = arith.constant 0 : index
    %1101 = vector.load %arg12[%c0_303, %c0_304] : memref<64x1xf32, #tpu.memory_space<vmem>>, vector<64x1xf32>
    %cst_305 = arith.constant dense<0.000000e+00> : vector<64x1xf32>
    %1102 = tpu.matmul %1100, %1101, %cst_305 {dimension_numbers = #tpu.dot_dimension_numbers<[1], [0], [0], [1], [0, 0, 1, 1], [], []>} : vector<64x64xf32>, vector<64x1xf32>, vector<64x1xf32> -> vector<64x1xf32>
    %c0_306 = arith.constant 0 : index
    %c0_307 = arith.constant 0 : index
    %1103 = vector.load %arg19[%c0_306, %c0_307] : memref<64x64xf32, #tpu.memory_space<vmem>>, vector<64x64xf32>
    %c0_308 = arith.constant 0 : index
    %c0_309 = arith.constant 0 : index
    %1104 = vector.load %arg13[%c0_308, %c0_309] : memref<64x1xf32, #tpu.memory_space<vmem>>, vector<64x1xf32>
    %cst_310 = arith.constant dense<0.000000e+00> : vector<64x1xf32>
    %1105 = tpu.matmul %1103, %1104, %cst_310 {dimension_numbers = #tpu.dot_dimension_numbers<[1], [0], [0], [1], [0, 0, 1, 1], [], []>} : vector<64x64xf32>, vector<64x1xf32>, vector<64x1xf32> -> vector<64x1xf32>
    %1106 = arith.addf %1102, %1105 : vector<64x1xf32>
    %c0_311 = arith.constant 0 : index
    %c0_312 = arith.constant 0 : index
    %1107 = vector.load %arg14[%c0_311, %c0_312] : memref<1x1xf32, #tpu.memory_space<vmem>>, vector<1x1xf32>
    %1108 = vector.broadcast %1107 : vector<1x1xf32> to vector<64x1xf32>
    %1109 = arith.addf %1106, %1108 : vector<64x1xf32>
    %c0_313 = arith.constant 0 : index
    %c0_314 = arith.constant 0 : index
    %1110 = vector.load %arg15[%c0_313, %c0_314] : memref<64x1xf32, #tpu.memory_space<vmem>>, vector<64x1xf32>
    tpu.vector_store %arg15[%c0_313, %c0_314], %1109 {strides = array<i32>} : memref<64x1xf32, #tpu.memory_space<vmem>>, vector<64x1xf32>,
    return
  }
}

</mosaic_0001>

<bundles_post_ra>
// kernel: tpu_custom_call.1
= control target key start
LH: loop header
LB: loop body
LE: loop exit
PB: predicated region body
PF: predicated region fallthrough
CT: control target
= control target key end

     0   :  { %s7317_s0 = inlined_call_operand.vmem [shape: f32[64,256], index: 0, kind: input, shape index: {}]   ;;  %s7318_s1 = inlined_call_operand.hbm [shape: f32[64,256], index: 1, kind: input, shape index: {}]   ;;  %s7319_s2 = inlined_call_operand.hbm [shape: f32[64,256], index: 2, kind: input, shape index: {}]   ;;  %s7320_s3 = inlined_call_operand.hbm [shape: f32[64,256], index: 3, kind: input, shape index: {}]   ;;  %s7321_s4 = inlined_call_operand.hbm [shape: f32[64,256], index: 4, kind: input, shape index: {}]   ;;  %s7322_s5 = inlined_call_operand.hbm [shape: f32[64,256], index: 5, kind: input, shape index: {}]   ;;  %s7323_s6 = inlined_call_operand.hbm [shape: f32[64,256], index: 6, kind: input, shape index: {}]   ;;  %s7324_s7 = inlined_call_operand.hbm [shape: f32[64,256], index: 7, kind: input, shape index: {}]   ;;  %s7325_s8 = inlined_call_operand.hbm [shape: f32[64,256], index: 8, kind: input, shape index: {}]   ;;  %s7326_s9 = inlined_call_operand.hbm [shape: f32[64,256], index: 9, kind: input, shape index: {}]   ;;  %s7327_s10 = inlined_call_operand.vmem [shape: f32[1,256], index: 10, kind: input, shape index: {}]   ;;  %s7328_s11 = inlined_call_operand.vmem [shape: f32[1,256], index: 11, kind: input, shape index: {}]   ;;  %s7329_s12 = inlined_call_operand.vmem [shape: f32[64,1], index: 12, kind: input, shape index: {}]   ;;  %s7330_s13 = inlined_call_operand.vmem [shape: f32[64,1], index: 13, kind: input, shape index: {}]   ;;  %s7331_s14 = inlined_call_operand.<no memory space> [shape: f32[1,1], index: 14, kind: input, shape index: {}]   ;;  %s7332_s15 = inlined_call_operand.vmem [shape: f32[64,1], index: 15, kind: output, shape index: {}]  }
   0x1   :  { %v20_v0 = vstv %s7331_s14 }
   0x2   :  { %21 = vst [vmem:[#allocation8] sm:$0x1] %v20_v0 }
   0x3   :  { %22 = vsyncpa [#allocation10], 0 }
   0x4   :  { %23 = vsyncpa [#allocation12], 0 }
   0x5   :  { %24 = vsyncpa [#allocation15], 0 }
   0x6   :  { %25 = vsyncpa [#allocation18], 0 }
   0x7   :  { %26 = vsyncpa [#allocation21], 0  ;;  %s6241_s20 = smov [#allocation11]   ;;  %s6242_s22 = smov [#allocation14]  }
   0x8   :  { %s46_s21 = sshll.u32 %s6241_s20, 4  ;;  %s70_s23 = sshll.u32 %s6242_s22, 4  ;;  %s47_s21 = int_to_ptr.vmem [resolvable:$true] %s46_s21  ;;  %s6337_s23 = int_to_ptr.vmem [resolvable:$true] %s70_s23 }
   0x9   :  { %s6033_s26 = scalar_lea.hbm %s7319_s2, 2048 }
   0xa   :  { %p6034_p0 = scmp.ne.s32.totalorder %s7319_s2, %s6033_s26  ;;  %p6037_p1 = scmp.lt.u32.totalorder %s6033_s26, %s7319_s2 }
   0xc   :  { %p6039_p2 = pnand %p6037_p1, %p6034_p0 }
   0xe   :  { %6042 = shalt.err (!%p6039_p2)
}
   0xf   :  { %s6043_s30 = scalar_lea.vmem %s47_s21, 2048  ;;  %p6048_p4 = scmp.lt.s32.totalorder %s47_s21, %s47_s21 }
  0x10   :  { %p6044_p3 = scmp.ne.s32.totalorder %s47_s21, %s6043_s30  ;;  %p6049_p5 = scmp.lt.s32.totalorder %s6043_s30, %s6043_s30 }
  0x12   :  { %p6050_p6 = por %p6049_p5, %p6048_p4 }
  0x14   :  { %p6051_p7 = pnand %p6050_p6, %p6044_p3 }
  0x16   :  { %6054 = shalt.err (!%p6051_p7)
}
  0x17   :  { %s6243_s16 = smov 256   ;;  %s6244_s17 = smov 16  }
  0x18   :  { %52 = dma.hbm_to_vmem [thread:$0]  %s7319_s2, 2048, %s47_s21, [#allocation12], %s6243_s16, %s6243_s16, %s6244_s17  }
  0x19   :  { %s6055_s24 = scalar_lea.hbm %s7321_s4, 2048 }
  0x1a   :  { %p6056_p8 = scmp.ne.s32.totalorder %s7321_s4, %s6055_s24  ;;  %p6059_p9 = scmp.lt.u32.totalorder %s6055_s24, %s7321_s4 }
  0x1c   :  { %p6061_p10 = pnand %p6059_p9, %p6056_p8 }
  0x1e   :  { %6064 = shalt.err (!%p6061_p10)
}
  0x1f   :  { %s6065_s14 = scalar_lea.vmem %s6337_s23, 2048  ;;  %p6070_p12 = scmp.lt.s32.totalorder %s6337_s23, %s6337_s23 }
  0x20   :  { %p6066_p11 = scmp.ne.s32.totalorder %s6337_s23, %s6065_s14  ;;  %p6071_p13 = scmp.lt.s32.totalorder %s6065_s14, %s6065_s14 }
  0x22   :  { %p6072_p0 = por %p6071_p13, %p6070_p12 }
  0x24   :  { %p6073_p1 = pnand %p6072_p0, %p6066_p11 }
  0x26   :  { %6076 = shalt.err (!%p6073_p1)
}
  0x27   :  { %76 = dma.hbm_to_vmem [thread:$0]  %s7321_s4, 2048, %s6337_s23, [#allocation15], %s6243_s16, %s6243_s16, %s6244_s17  }
  0x28   :  { %s6245_s29 = smov [#allocation17]   ;;  %s6246_s18 = smov [#allocation20]  }
  0x29   :  { %s94_s30 = sshll.u32 %s6245_s29, 4  ;;  %s118_s19 = sshll.u32 %s6246_s18, 4  ;;  %s95_s30 = int_to_ptr.vmem [resolvable:$true] %s94_s30  ;;  %s6374_s19 = int_to_ptr.vmem [resolvable:$true] %s118_s19 }
  0x2a   :  { %s6077_s24 = scalar_lea.hbm %s7323_s6, 2048 }
  0x2b   :  { %p6078_p2 = scmp.ne.s32.totalorder %s7323_s6, %s6077_s24  ;;  %p6081_p3 = scmp.lt.u32.totalorder %s6077_s24, %s7323_s6 }
  0x2d   :  { %p6083_p4 = pnand %p6081_p3, %p6078_p2 }
  0x2f   :  { %6086 = shalt.err (!%p6083_p4)
}
  0x30   :  { %s6087_s4 = scalar_lea.vmem %s95_s30, 2048  ;;  %p6092_p6 = scmp.lt.s32.totalorder %s95_s30, %s95_s30 }
  0x31   :  { %p6088_p5 = scmp.ne.s32.totalorder %s95_s30, %s6087_s4  ;;  %p6093_p7 = scmp.lt.s32.totalorder %s6087_s4, %s6087_s4 }
  0x33   :  { %p6094_p8 = por %p6093_p7, %p6092_p6 }
  0x35   :  { %p6095_p9 = pnand %p6094_p8, %p6088_p5 }
  0x37   :  { %6098 = shalt.err (!%p6095_p9)
}
  0x38   :  { %100 = dma.hbm_to_vmem [thread:$0]  %s7323_s6, 2048, %s95_s30, [#allocation18], %s6243_s16, %s6243_s16, %s6244_s17  }
  0x39   :  { %s6099_s29 = scalar_lea.hbm %s7325_s8, 2048 }
  0x3a   :  { %p6100_p10 = scmp.ne.s32.totalorder %s7325_s8, %s6099_s29  ;;  %p6103_p11 = scmp.lt.u32.totalorder %s6099_s29, %s7325_s8 }
  0x3c   :  { %p6105_p12 = pnand %p6103_p11, %p6100_p10 }
  0x3e   :  { %6108 = shalt.err (!%p6105_p12)
}
  0x3f   :  { %s6109_s25 = scalar_lea.vmem %s6374_s19, 2048  ;;  %p6114_p0 = scmp.lt.s32.totalorder %s6374_s19, %s6374_s19 }
  0x40   :  { %p6110_p13 = scmp.ne.s32.totalorder %s6374_s19, %s6109_s25  ;;  %p6115_p1 = scmp.lt.s32.totalorder %s6109_s25, %s6109_s25 }
  0x42   :  { %p6116_p2 = por %p6115_p1, %p6114_p0 }
  0x44   :  { %p6117_p3 = pnand %p6116_p2, %p6110_p13 }
  0x46   :  { %6120 = shalt.err (!%p6117_p3)
}
  0x47   :  { %124 = dma.hbm_to_vmem [thread:$0]  %s7325_s8, 2048, %s6374_s19, [#allocation21], %s6243_s16, %s6243_s16, %s6244_s17  }
  0x48   :  { %s6247_s26 = smov [#allocation9]   ;;  %s6248_s28 = smov [#allocation13]  }
  0x49   :  { %s34_s27 = sshll.u32 %s6247_s26, 4  ;;  %s58_s4 = sshll.u32 %s6248_s28, 4  ;;  %s35_s27 = int_to_ptr.vmem [resolvable:$true] %s34_s27  ;;  %s6411_s4 = int_to_ptr.vmem [resolvable:$true] %s58_s4 }
  0x4a   :  { %s6121_s2 = scalar_lea.hbm %s7318_s1, 2048 }
  0x4b   :  { %p6122_p4 = scmp.ne.s32.totalorder %s7318_s1, %s6121_s2  ;;  %p6125_p5 = scmp.lt.u32.totalorder %s6121_s2, %s7318_s1 }
  0x4d   :  { %p6127_p6 = pnand %p6125_p5, %p6122_p4 }
  0x4f   :  { %6130 = shalt.err (!%p6127_p6)
}
  0x50   :  { %s6131_s8 = scalar_lea.vmem %s35_s27, 2048  ;;  %p6136_p8 = scmp.lt.s32.totalorder %s35_s27, %s35_s27 }
  0x51   :  { %p6132_p7 = scmp.ne.s32.totalorder %s35_s27, %s6131_s8  ;;  %p6137_p9 = scmp.lt.s32.totalorder %s6131_s8, %s6131_s8 }
  0x53   :  { %p6138_p10 = por %p6137_p9, %p6136_p8 }
  0x55   :  { %p6139_p11 = pnand %p6138_p10, %p6132_p7 }
  0x57   :  { %6142 = shalt.err (!%p6139_p11)
}
  0x58   :  { %40 = dma.hbm_to_vmem [thread:$0]  %s7318_s1, 2048, %s35_s27, [#allocation10], %s6243_s16, %s6243_s16, %s6244_s17  }
  0x59   :  { %s6143_s6 = scalar_lea.hbm %s7320_s3, 2048 }
  0x5a   :  { %p6144_p12 = scmp.ne.s32.totalorder %s7320_s3, %s6143_s6  ;;  %p6147_p13 = scmp.lt.u32.totalorder %s6143_s6, %s7320_s3 }
  0x5c   :  { %p6149_p0 = pnand %p6147_p13, %p6144_p12 }
  0x5e   :  { %6152 = shalt.err (!%p6149_p0)
}
  0x5f   :  { %s6153_s14 = scalar_lea.vmem %s6411_s4, 2048  ;;  %p6158_p2 = scmp.lt.s32.totalorder %s6411_s4, %s6411_s4 }
  0x60   :  { %p6154_p1 = scmp.ne.s32.totalorder %s6411_s4, %s6153_s14  ;;  %p6159_p3 = scmp.lt.s32.totalorder %s6153_s14, %s6153_s14 }
  0x62   :  { %p6160_p4 = por %p6159_p3, %p6158_p2 }
  0x64   :  { %p6161_p5 = pnand %p6160_p4, %p6154_p1 }
  0x66   :  { %6164 = shalt.err (!%p6161_p5)
}
  0x67   :  { %64 = dma.hbm_to_vmem [thread:$0]  %s7320_s3, 2048, %s6411_s4, [#allocation12], %s6243_s16, %s6243_s16, %s6244_s17  }
  0x68   :  { %s6249_s2 = smov [#allocation16]   ;;  %s6250_s29 = smov [#allocation19]  }
  0x69   :  { %s82_s21 = sshll.u32 %s6249_s2, 4  ;;  %s106_s18 = sshll.u32 %s6250_s29, 4  ;;  %s83_s21 = int_to_ptr.vmem [resolvable:$true] %s82_s21  ;;  %s6448_s18 = int_to_ptr.vmem [resolvable:$true] %s106_s18 }
  0x6a   :  { %s6165_s19 = scalar_lea.hbm %s7322_s5, 2048 }
  0x6b   :  { %p6166_p6 = scmp.ne.s32.totalorder %s7322_s5, %s6165_s19  ;;  %p6169_p7 = scmp.lt.u32.totalorder %s6165_s19, %s7322_s5 }
  0x6d   :  { %p6171_p8 = pnand %p6169_p7, %p6166_p6 }
  0x6f   :  { %6174 = shalt.err (!%p6171_p8)
}
  0x70   :  { %s6175_s3 = scalar_lea.vmem %s83_s21, 2048  ;;  %p6180_p10 = scmp.lt.s32.totalorder %s83_s21, %s83_s21 }
  0x71   :  { %p6176_p9 = scmp.ne.s32.totalorder %s83_s21, %s6175_s3  ;;  %p6181_p11 = scmp.lt.s32.totalorder %s6175_s3, %s6175_s3 }
  0x73   :  { %p6182_p12 = por %p6181_p11, %p6180_p10 }
  0x75   :  { %p6183_p13 = pnand %p6182_p12, %p6176_p9 }
  0x77   :  { %6186 = shalt.err (!%p6183_p13)
}
  0x78   :  { %88 = dma.hbm_to_vmem [thread:$0]  %s7322_s5, 2048, %s83_s21, [#allocation15], %s6243_s16, %s6243_s16, %s6244_s17  }
  0x79   :  { %s6187_s23 = scalar_lea.hbm %s7324_s7, 2048 }
  0x7a   :  { %p6188_p0 = scmp.ne.s32.totalorder %s7324_s7, %s6187_s23  ;;  %p6191_p1 = scmp.lt.u32.totalorder %s6187_s23, %s7324_s7 }
  0x7c   :  { %p6193_p2 = pnand %p6191_p1, %p6188_p0 }
  0x7e   :  { %6196 = shalt.err (!%p6193_p2)
}
  0x7f   :  { %s6197_s29 = scalar_lea.vmem %s6448_s18, 2048  ;;  %p6202_p4 = scmp.lt.s32.totalorder %s6448_s18, %s6448_s18 }
  0x80   :  { %p6198_p3 = scmp.ne.s32.totalorder %s6448_s18, %s6197_s29  ;;  %p6203_p5 = scmp.lt.s32.totalorder %s6197_s29, %s6197_s29 }
  0x82   :  { %p6204_p6 = por %p6203_p5, %p6202_p4 }
  0x84   :  { %p6205_p7 = pnand %p6204_p6, %p6198_p3 }
  0x86   :  { %6208 = shalt.err (!%p6205_p7)
}
  0x87   :  { %112 = dma.hbm_to_vmem [thread:$0]  %s7324_s7, 2048, %s6448_s18, [#allocation18], %s6243_s16, %s6243_s16, %s6244_s17  }
  0x88   :  { %s6251_s20 = smov [#allocation22]   ;;  %s6209_s24 = scalar_lea.hbm %s7326_s9, 2048 }
  0x89   :  { %s130_s8 = sshll.u32 %s6251_s20, 4  ;;  %p6210_p8 = scmp.ne.s32.totalorder %s7326_s9, %s6209_s24  ;;  %s131_s8 = int_to_ptr.vmem [resolvable:$true] %s130_s8 }
  0x8a   :  { %p6213_p9 = scmp.lt.u32.totalorder %s6209_s24, %s7326_s9 }
  0x8c   :  { %p6215_p10 = pnand %p6213_p9, %p6210_p8 }
  0x8e   :  { %6218 = shalt.err (!%p6215_p10)
}
  0x8f   :  { %s6219_s30 = scalar_lea.vmem %s131_s8, 2048  ;;  %p6224_p12 = scmp.lt.s32.totalorder %s131_s8, %s131_s8 }
  0x90   :  { %p6220_p11 = scmp.ne.s32.totalorder %s131_s8, %s6219_s30  ;;  %p6225_p13 = scmp.lt.s32.totalorder %s6219_s30, %s6219_s30 }
  0x92   :  { %p6226_p0 = por %p6225_p13, %p6224_p12 }
  0x94   :  { %p6227_p1 = pnand %p6226_p0, %p6220_p11 }
  0x96   :  { %6230 = shalt.err (!%p6227_p1)
}
  0x97   :  { %136 = dma.hbm_to_vmem [thread:$0]  %s7326_s9, 2048, %s131_s8, [#allocation21], %s6243_s16, %s6243_s16, %s6244_s17  }
  0x98   :  { %6231 = dma.done.wait [#allocation10], 2048  }
  0x99   :  { %6232 = vsyncadd [#allocation10], 4294965248 }
  0x9a   :  { %6233 = dma.done.wait [#allocation12], 4096  }
  0x9b   :  { %6234 = vsyncadd [#allocation12], 4294963200 }
  0x9c   :  { %6235 = dma.done.wait [#allocation15], 4096  }
  0x9d   :  { %6236 = vsyncadd [#allocation15], 4294963200 }
  0x9e   :  { %6237 = dma.done.wait [#allocation18], 4096  }
  0x9f   :  { %6238 = vsyncadd [#allocation18], 4294963200 }
  0xa0   :  { %6239 = dma.done.wait [#allocation21], 4096  }
  0xa1   :  { %6240 = vsyncadd [#allocation21], 4294963200  ;;  %v6252_v1 = vmov 0.0   ;;  %v175_v2 = vld [vmem:[#allocation11 + $0x8] sm:$0xff]  ;;  %v177_v3 = vld [vmem:[#allocation11 + $0x18] sm:$0xff]  ;;  %s6253_s28 = smov 64  }
  0xa2   :  { %263 = vmatprep.mubr.f32.mxu1 %v6252_v1  ;;  %478 = vmatprep.mubr.f32.mxu0 %v6252_v1  ;;  %v174_v4 = vld [vmem:[#allocation11] sm:$0xff]  ;;  %v6502_v5 = vpack.c.bf16 %v177_v3, %v175_v2  ;;  %v176_v6 = vld [vmem:[#allocation11 + $0x10] sm:$0xff]  ;;  %v179_v7 = vld [vmem:[#allocation11 + $0x28] sm:$0xff]  ;;  %vm195_vm0 = vcmask 523264   ;;  %vm4635_vm1 = vcmask 7168  }
  0xa3   :  { %v181_v8 = vld [vmem:[#allocation11 + $0x38] sm:$0xff]  ;;  %v6504_v9 = vpack.c.bf16 %v176_v6, %v174_v4  ;;  %v178_v11 = vld [vmem:[#allocation11 + $0x20] sm:$0xff]  ;;  %v180_v12 = vld [vmem:[#allocation11 + $0x30] sm:$0xff] }
  0xa4   :  { %v6506_v10 = vpack.c.bf16 %v181_v8, %v179_v7  ;;  %v183_v13 = vld [vmem:[#allocation11 + $0x48] sm:$0xff]  ;;  %4925 = vmatprep.subr.bf16.mxu1 %v6502_v5  ;;  %v185_v14 = vld [vmem:[#allocation11 + $0x58] sm:$0xff]  ;;  %4957 = vmatprep.subr.bf16.mxu0 %v6502_v5  ;;  %v6511_v15 = vpack.c.bf16 %v180_v12, %v178_v11  ;;  %v182_v17 = vld [vmem:[#allocation11 + $0x40] sm:$0xff] }
  0xa5   :  { %4927 = vmatpush1.bf16.msra.mxu1 %v6504_v9  ;;  %4959 = vmatpush1.bf16.msra.mxu0 %v6504_v9  ;;  %v6515_v16 = vpack.c.bf16 %v185_v14, %v183_v13  ;;  %v184_v18 = vld [vmem:[#allocation11 + $0x50] sm:$0xff]  ;;  %v187_v19 = vld [vmem:[#allocation11 + $0x68] sm:$0xff]  ;;  %v189_v20 = vld [vmem:[#allocation11 + $0x78] sm:$0xff] }
  0xa6   :  { %4929 = vmatprep.subr.bf16.mxu1 %v6506_v10  ;;  %4961 = vmatprep.subr.bf16.mxu0 %v6506_v10  ;;  %v6519_v21 = vpack.c.bf16 %v184_v18, %v182_v17  ;;  %v6523_v22 = vpack.c.bf16 %v189_v20, %v187_v19  ;;  %v186_v23 = vld [vmem:[#allocation11 + $0x60] sm:$0xff]  ;;  %v188_v24 = vld [vmem:[#allocation11 + $0x70] sm:$0xff] }
  0xa7   :  { %v6527_v25 = vpack.c.bf16 %v188_v24, %v186_v23  ;;  %v193_v26 = vld [vmem:[%s7317_s0] sm:$0xff]  ;;  %v194_v31 = vld [vmem:[%s7317_s0 + $0x8] sm:$0xff]  ;;  %v4683_v48 = vld [vmem:[%s7317_s0 + $0x10] sm:$0xff] }
  0xa8   :  { %v4684_v53 = vld [vmem:[%s7317_s0 + $0x18] sm:$0xff]  ;;  %v4688_v8 = vld [vmem:[%s7317_s0 + $0x20] sm:$0xff]  ;;  %v4689_v17 = vld [vmem:[%s7317_s0 + $0x28] sm:$0xff] }
  0xa9   :  { %4931 = vmatpush1.bf16.msra.mxu1 %v6511_v15  ;;  %4963 = vmatpush1.bf16.msra.mxu0 %v6511_v15 }
  0xaa   :  { %4933 = vmatprep.subr.bf16.mxu1 %v6515_v16  ;;  %4965 = vmatprep.subr.bf16.mxu0 %v6515_v16 }
  0xad   :  { %4935 = vmatpush1.bf16.msra.mxu1 %v6519_v21  ;;  %4967 = vmatpush1.bf16.msra.mxu0 %v6519_v21 }
  0xae   :  { %4937 = vmatprep.subr.bf16.mxu1 %v6523_v22  ;;  %4969 = vmatprep.subr.bf16.mxu0 %v6523_v22 }
  0xb1   :  { %4939 = vmatpush1.bf16.msra.mxu1 %v6527_v25  ;;  %4971 = vmatpush1.bf16.msra.mxu0 %v6527_v25 }
  0xb2   :  { %4941 = vmatprep.subr.bf16.mxu1 %v6502_v5  ;;  %4989 = vmatprep.subr.bf16.mxu0 %v6502_v5 }
  0xb4   :  { %264 = vmatmul.mubr.f32.vlgmr.msra.gmra.mrb[0].mxu1 %v6252_v1 }
  0xb5   :  { %4943 = vmatpush1.bf16.msra.mxu1 %v6504_v9  ;;  %370 = vmatprep.mubr.f32.mxu1 %v6252_v1 }
  0xb6   :  { %4945 = vmatprep.subr.bf16.mxu1 %v6506_v10 }
  0xb9   :  { %4947 = vmatpush1.bf16.msra.mxu1 %v6511_v15 }
  0xba   :  { %4949 = vmatprep.subr.bf16.mxu1 %v6515_v16 }
  0xbd   :  { %4951 = vmatpush1.bf16.msra.mxu1 %v6519_v21 }
  0xbe   :  { %4953 = vmatprep.subr.bf16.mxu1 %v6523_v22 }
  0xc1   :  { %4955 = vmatpush1.bf16.msra.mxu1 %v6527_v25 }
  0xc2   :  { %4973 = vmatprep.subr.bf16.mxu1 %v6502_v5 }
 0x187   :  { %v265_v27 = vpop.f32.mrb[0].mxu1 }
 0x188   :  { %v270_v28 = vadd.f32 %v265_v27, %v193_v26  ;;  %v267_v29 = vpop.f32.mrb[1].mxu1 }
 0x189   :  { %v271_v32 = vadd.f32 %v267_v29, %v194_v31 }
 0x18a   :  { %v4681_v30 = vmul.f32 -1.442695, %v270_v28 }
 0x18b   :  { %v4682_v38 = vmul.f32 -1.442695, %v271_v32 }
 0x18c   :  { %5649 = vpow2.f32 %v4681_v30 }
 0x18d   :  { %5651 = vtanh.f32 %v271_v32 }
 0x196   :  { %v5650_v33 = vpop.eup %5649 }
 0x197   :  { %v275_v34 = vadd.f32 1.0, %v5650_v33  ;;  %v5652_v35 = vpop.eup %5651 }
 0x199   :  { %5653 = vrcp.f32 %v275_v34 }
 0x19a   :  { %5655 = vpow2.f32 %v4682_v38 }
 0x1a3   :  { %v5654_v36 = vpop.eup %5653 }
 0x1a4   :  { %v286_v37 = vmul.f32 %v5654_v36, %v5652_v35  ;;  %v5656_v39 = vpop.eup %5655  ;;  %v285_v41 = vmul.f32 0.0, %v5654_v36 }
 0x1a5   :  { %v282_v40 = vadd.f32 1.0, %v5656_v39 }
 0x1a6   :  { %288 = vrot.lane.b32.xlu0 %v286_v37, %s6253_s28  ;;  %v4693_v37 = vld [vmem:[%s7317_s0 + $0x30] sm:$0xff] }
 0x1a7   :  { %5657 = vrcp.f32 %v282_v40 }
 0x1b1   :  { %v5658_v44 = vpop.eup %5657 }
 0x218   :  { %v289_v42 = vpop.permute.xlu0 %288 }
 0x219   :  { %v291_v43 = vadd.f32 %v289_v42, %v285_v41  ;;  %v4694_v42 = vld [vmem:[%s7317_s0 + $0x38] sm:$0xff] }
 0x21b   :  { %5659 = vtanh.f32 %v291_v43 }
 0x225   :  { %v5660_v45 = vpop.eup %5659 }
 0x226   :  { %v293_v46 = vmul.f32 %v5660_v45, %v5658_v44 }
 0x228   :  { %295 = vrot.lane.b32.xlu0 %v293_v46, %s6253_s28 }
 0x29a   :  { %v296_v47 = vpop.permute.xlu0 %295 }
 0x29b   :  { %298 = vst.msk [vmem:[#allocation2] sm:$0xff] %vm195_vm0, %v296_v47  ;;  %4685 = vmatmul.mubr.msk.f32.vlgmr.msra.gmra.mrb[2].mxu1 %vm195_vm0, %v296_v47 }
 0x29c   :  { %4975 = vmatpush1.bf16.msra.mxu1 %v6504_v9  ;;  %586 = vmatprep.mubr.f32.mxu1 %v6252_v1 }
 0x29d   :  { %4977 = vmatprep.subr.bf16.mxu1 %v6506_v10 }
 0x2a0   :  { %4979 = vmatpush1.bf16.msra.mxu1 %v6511_v15 }
 0x2a1   :  { %4981 = vmatprep.subr.bf16.mxu1 %v6515_v16 }
 0x2a4   :  { %4983 = vmatpush1.bf16.msra.mxu1 %v6519_v21 }
 0x2a5   :  { %4985 = vmatprep.subr.bf16.mxu1 %v6523_v22 }
 0x2a8   :  { %4987 = vmatpush1.bf16.msra.mxu1 %v6527_v25 }
 0x2a9   :  { %5005 = vmatprep.subr.bf16.mxu1 %v6502_v5 }
 0x36e   :  { %v372_v49 = vpop.f32.mrb[2].mxu1 }
 0x36f   :  { %v377_v50 = vadd.f32 %v4683_v48, %v372_v49  ;;  %v374_v51 = vpop.f32.mrb[3].mxu1 }
 0x370   :  { %v378_v54 = vadd.f32 %v4684_v53, %v374_v51 }
 0x371   :  { %v4686_v52 = vmul.f32 -1.442695, %v377_v50 }
 0x372   :  { %v4687_v60 = vmul.f32 -1.442695, %v378_v54 }
 0x373   :  { %5661 = vpow2.f32 %v4686_v52 }
 0x374   :  { %5663 = vtanh.f32 %v378_v54 }
 0x37d   :  { %v5662_v55 = vpop.eup %5661 }
 0x37e   :  { %v382_v56 = vadd.f32 1.0, %v5662_v55  ;;  %v5664_v57 = vpop.eup %5663 }
 0x380   :  { %5665 = vrcp.f32 %v382_v56 }
 0x381   :  { %5667 = vpow2.f32 %v4687_v60 }
 0x38a   :  { %v5666_v58 = vpop.eup %5665 }
 0x38b   :  { %v393_v59 = vmul.f32 %v5666_v58, %v5664_v57  ;;  %v5668_v61 = vpop.eup %5667  ;;  %v392_v63 = vmul.f32 %v5666_v58, %v291_v43  ;;  %v4698_v58 = vld [vmem:[%s7317_s0 + $0x40] sm:$0xff] }
 0x38c   :  { %v389_v62 = vadd.f32 1.0, %v5668_v61 }
 0x38d   :  { %395 = vrot.lane.b32.xlu1 %v393_v59, %s6253_s28 }
 0x38e   :  { %5669 = vrcp.f32 %v389_v62 }
 0x398   :  { %v5670_v3 = vpop.eup %5669 }
 0x3ff   :  { %v396_v0 = vpop.permute.xlu1 %395 }
 0x400   :  { %v398_v2 = vadd.f32 %v396_v0, %v392_v63  ;;  %v4699_v63 = vld [vmem:[%s7317_s0 + $0x48] sm:$0xff] }
 0x402   :  { %5671 = vtanh.f32 %v398_v2 }
 0x40c   :  { %v5672_v4 = vpop.eup %5671 }
 0x40d   :  { %v400_v6 = vmul.f32 %v5672_v4, %v5670_v3 }
 0x40f   :  { %402 = vrot.lane.b32.xlu1 %v400_v6, %s6253_s28 }
 0x481   :  { %v403_v7 = vpop.permute.xlu1 %402 }
 0x482   :  { %406 = vst.msk [vmem:[#allocation2 + $0x8] sm:$0xff] %vm195_vm0, %v403_v7  ;;  %4690 = vmatmul.mubr.msk.f32.vlgmr.msra.gmra.mrb[0].mxu0 %vm195_vm0, %v403_v7 }
 0x483   :  { %4991 = vmatpush1.bf16.msra.mxu0 %v6504_v9  ;;  %694 = vmatprep.mubr.f32.mxu0 %v6252_v1 }
 0x484   :  { %4993 = vmatprep.subr.bf16.mxu0 %v6506_v10 }
 0x487   :  { %4995 = vmatpush1.bf16.msra.mxu0 %v6511_v15 }
 0x488   :  { %4997 = vmatprep.subr.bf16.mxu0 %v6515_v16 }
 0x48b   :  { %4999 = vmatpush1.bf16.msra.mxu0 %v6519_v21 }
 0x48c   :  { %5001 = vmatprep.subr.bf16.mxu0 %v6523_v22 }
 0x48f   :  { %5003 = vmatpush1.bf16.msra.mxu0 %v6527_v25 }
 0x490   :  { %5021 = vmatprep.subr.bf16.mxu0 %v6502_v5 }
 0x555   :  { %v480_v11 = vpop.f32.mrb[0].mxu0 }
 0x556   :  { %v485_v12 = vadd.f32 %v4688_v8, %v480_v11  ;;  %v482_v13 = vpop.f32.mrb[1].mxu0 }
 0x557   :  { %v486_v18 = vadd.f32 %v4689_v17, %v482_v13 }
 0x558   :  { %v4691_v14 = vmul.f32 -1.442695, %v485_v12 }
 0x559   :  { %v4692_v27 = vmul.f32 -1.442695, %v486_v18 }
 0x55a   :  { %5673 = vpow2.f32 %v4691_v14 }
 0x55b   :  { %5675 = vtanh.f32 %v486_v18 }
 0x564   :  { %v5674_v19 = vpop.eup %5673 }
 0x565   :  { %v490_v20 = vadd.f32 1.0, %v5674_v19  ;;  %v5676_v23 = vpop.eup %5675 }
 0x567   :  { %5677 = vrcp.f32 %v490_v20 }
 0x568   :  { %5679 = vpow2.f32 %v4692_v27 }
 0x571   :  { %v5678_v24 = vpop.eup %5677 }
 0x572   :  { %v501_v26 = vmul.f32 %v5678_v24, %v5676_v23  ;;  %v5680_v28 = vpop.eup %5679  ;;  %v500_v30 = vmul.f32 %v5678_v24, %v398_v2  ;;  %v4703_v24 = vld [vmem:[%s7317_s0 + $0x50] sm:$0xff] }
 0x573   :  { %v497_v29 = vadd.f32 1.0, %v5680_v28 }
 0x574   :  { %503 = vrot.lane.b32.xlu0 %v501_v26, %s6253_s28 }
 0x575   :  { %5681 = vrcp.f32 %v497_v29 }
 0x57f   :  { %v5682_v33 = vpop.eup %5681 }
 0x5e6   :  { %v504_v31 = vpop.permute.xlu0 %503 }
 0x5e7   :  { %v506_v32 = vadd.f32 %v504_v31, %v500_v30  ;;  %v1056_v30 = vld [vmem:[#allocation13 + $0x8] sm:$0xff]  ;;  %v1058_v31 = vld [vmem:[#allocation13 + $0x18] sm:$0xff] }
 0x5e9   :  { %5683 = vtanh.f32 %v506_v32 }
 0x5f3   :  { %v5684_v34 = vpop.eup %5683 }
 0x5f4   :  { %v508_v35 = vmul.f32 %v5684_v34, %v5682_v33 }
 0x5f6   :  { %510 = vrot.lane.b32.xlu1 %v508_v35, %s6253_s28 }
 0x668   :  { %v511_v36 = vpop.permute.xlu1 %510 }
 0x669   :  { %514 = vst.msk [vmem:[#allocation2 + $0x10] sm:$0xff] %vm195_vm0, %v511_v36  ;;  %4695 = vmatmul.mubr.msk.f32.vlgmr.msra.gmra.mrb[4].mxu1 %vm195_vm0, %v511_v36 }
 0x66a   :  { %5007 = vmatpush1.bf16.msra.mxu1 %v6504_v9  ;;  %802 = vmatprep.mubr.f32.mxu1 %v6252_v1 }
 0x66b   :  { %5009 = vmatprep.subr.bf16.mxu1 %v6506_v10 }
 0x66e   :  { %5011 = vmatpush1.bf16.msra.mxu1 %v6511_v15 }
 0x66f   :  { %5013 = vmatprep.subr.bf16.mxu1 %v6515_v16 }
 0x672   :  { %5015 = vmatpush1.bf16.msra.mxu1 %v6519_v21 }
 0x673   :  { %5017 = vmatprep.subr.bf16.mxu1 %v6523_v22 }
 0x676   :  { %5019 = vmatpush1.bf16.msra.mxu1 %v6527_v25 }
 0x677   :  { %5037 = vmatprep.subr.bf16.mxu1 %v6502_v5 }
 0x73c   :  { %v588_v38 = vpop.f32.mrb[4].mxu1 }
 0x73d   :  { %v593_v39 = vadd.f32 %v4693_v37, %v588_v38  ;;  %v590_v40 = vpop.f32.mrb[5].mxu1 }
 0x73e   :  { %v594_v43 = vadd.f32 %v4694_v42, %v590_v40  ;;  %v1055_v42 = vld [vmem:[#allocation13] sm:$0xff] }
 0x73f   :  { %v4696_v41 = vmul.f32 -1.442695, %v593_v39 }
 0x740   :  { %v4697_v48 = vmul.f32 -1.442695, %v594_v43 }
 0x741   :  { %5685 = vpow2.f32 %v4696_v41 }
 0x742   :  { %5687 = vtanh.f32 %v594_v43  ;;  %v1057_v43 = vld [vmem:[#allocation13 + $0x10] sm:$0xff] }
 0x74b   :  { %v5686_v44 = vpop.eup %5685 }
 0x74c   :  { %v598_v45 = vadd.f32 1.0, %v5686_v44  ;;  %v5688_v46 = vpop.eup %5687  ;;  %v1060_v44 = vld [vmem:[#allocation13 + $0x28] sm:$0xff] }
 0x74e   :  { %5689 = vrcp.f32 %v598_v45  ;;  %v1062_v45 = vld [vmem:[#allocation13 + $0x38] sm:$0xff] }
 0x74f   :  { %5691 = vpow2.f32 %v4697_v48  ;;  %v1061_v48 = vld [vmem:[#allocation13 + $0x30] sm:$0xff] }
 0x758   :  { %v5690_v5 = vpop.eup %5689 }
 0x759   :  { %v609_v47 = vmul.f32 %v5690_v5, %v5688_v46  ;;  %v5692_v49 = vpop.eup %5691  ;;  %v608_v51 = vmul.f32 %v5690_v5, %v506_v32  ;;  %v6646_v32 = vpack.c.bf16 %v1058_v31, %v1056_v30  ;;  %v6654_v46 = vpack.c.bf16 %v1057_v43, %v1055_v42 }
 0x75a   :  { %v605_v50 = vadd.f32 1.0, %v5692_v49  ;;  %v6656_v5 = vpack.c.bf16 %v1062_v45, %v1060_v44 }
 0x75b   :  { %611 = vrot.lane.b32.xlu0 %v609_v47, %s6253_s28  ;;  %v1059_v47 = vld [vmem:[#allocation13 + $0x20] sm:$0xff] }
 0x75c   :  { %5693 = vrcp.f32 %v605_v50  ;;  %v1064_v50 = vld [vmem:[#allocation13 + $0x48] sm:$0xff] }
 0x766   :  { %v5694_v54 = vpop.eup %5693 }
 0x7cd   :  { %v612_v52 = vpop.permute.xlu0 %611 }
 0x7ce   :  { %v614_v53 = vadd.f32 %v612_v52, %v608_v51  ;;  %v1066_v51 = vld [vmem:[#allocation13 + $0x58] sm:$0xff]  ;;  %v6661_v52 = vpack.c.bf16 %v1061_v48, %v1059_v47  ;;  %v4713_v47 = vld [vmem:[%s7317_s0 + $0x70] sm:$0xff] }
 0x7d0   :  { %5695 = vtanh.f32 %v614_v53 }
 0x7da   :  { %v5696_v55 = vpop.eup %5695 }
 0x7db   :  { %v616_v56 = vmul.f32 %v5696_v55, %v5694_v54  ;;  %v1063_v54 = vld [vmem:[#allocation13 + $0x40] sm:$0xff]  ;;  %v1065_v55 = vld [vmem:[#allocation13 + $0x50] sm:$0xff] }
 0x7dd   :  { %618 = vrot.lane.b32.xlu1 %v616_v56, %s6253_s28  ;;  %v1068_v56 = vld [vmem:[#allocation13 + $0x68] sm:$0xff] }
 0x84f   :  { %v619_v57 = vpop.permute.xlu1 %618 }
 0x850   :  { %622 = vst.msk [vmem:[#allocation2 + $0x18] sm:$0xff] %vm195_vm0, %v619_v57  ;;  %4700 = vmatmul.mubr.msk.f32.vlgmr.msra.gmra.mrb[2].mxu0 %vm195_vm0, %v619_v57  ;;  %v1070_v57 = vld [vmem:[#allocation13 + $0x78] sm:$0xff] }
 0x851   :  { %5023 = vmatpush1.bf16.msra.mxu0 %v6504_v9  ;;  %910 = vmatprep.mubr.f32.mxu0 %v6252_v1 }
 0x852   :  { %5025 = vmatprep.subr.bf16.mxu0 %v6506_v10 }
 0x855   :  { %5027 = vmatpush1.bf16.msra.mxu0 %v6511_v15 }
 0x856   :  { %5029 = vmatprep.subr.bf16.mxu0 %v6515_v16 }
 0x859   :  { %5031 = vmatpush1.bf16.msra.mxu0 %v6519_v21 }
 0x85a   :  { %5033 = vmatprep.subr.bf16.mxu0 %v6523_v22 }
 0x85d   :  { %5035 = vmatpush1.bf16.msra.mxu0 %v6527_v25 }
 0x85e   :  { %5053 = vmatprep.subr.bf16.mxu0 %v6646_v32 }
 0x923   :  { %v696_v59 = vpop.f32.mrb[2].mxu0 }
 0x924   :  { %v701_v60 = vadd.f32 %v4698_v58, %v696_v59  ;;  %v698_v61 = vpop.f32.mrb[3].mxu0  ;;  %v6668_v58 = vpack.c.bf16 %v1065_v55, %v1063_v54  ;;  %v6671_v59 = vpack.c.bf16 %v1070_v57, %v1068_v56  ;;  %v4714_v54 = vld [vmem:[%s7317_s0 + $0x78] sm:$0xff]  ;;  %v1178_v56 = vld [vmem:[#allocation9 + $0x60] sm:$0xff] }
 0x925   :  { %v702_v0 = vadd.f32 %v4699_v63, %v698_v61  ;;  %v1069_v61 = vld [vmem:[#allocation13 + $0x70] sm:$0xff]  ;;  %v4708_v63 = vld [vmem:[%s7317_s0 + $0x60] sm:$0xff] }
 0x926   :  { %v4701_v62 = vmul.f32 -1.442695, %v701_v60  ;;  %v1067_v60 = vld [vmem:[#allocation13 + $0x60] sm:$0xff] }
 0x927   :  { %v4702_v8 = vmul.f32 -1.442695, %v702_v0 }
 0x928   :  { %5697 = vpow2.f32 %v4701_v62  ;;  %v6674_v62 = vpack.c.bf16 %v1069_v61, %v1067_v60 }
 0x929   :  { %5699 = vtanh.f32 %v702_v0 }
 0x932   :  { %v5698_v2 = vpop.eup %5697 }
 0x933   :  { %v706_v3 = vadd.f32 1.0, %v5698_v2  ;;  %v5700_v4 = vpop.eup %5699 }
 0x935   :  { %5701 = vrcp.f32 %v706_v3 }
 0x936   :  { %5703 = vpow2.f32 %v4702_v8  ;;  %v1073_v8 = vld [vmem:[#allocation9 + $0x70] sm:$0xff] }
 0x93f   :  { %v5702_v6 = vpop.eup %5701 }
 0x940   :  { %v717_v7 = vmul.f32 %v5702_v6, %v5700_v4  ;;  %v5704_v11 = vpop.eup %5703  ;;  %v716_v13 = vmul.f32 %v5702_v6, %v614_v53  ;;  %v6665_v53 = vpack.c.bf16 %v1066_v51, %v1064_v50  ;;  %v4709_v6 = vld [vmem:[%s7317_s0 + $0x68] sm:$0xff] }
 0x941   :  { %v713_v12 = vadd.f32 1.0, %v5704_v11 }
 0x942   :  { %719 = vrot.lane.b32.xlu0 %v717_v7, %s6253_s28 }
 0x943   :  { %5705 = vrcp.f32 %v713_v12 }
 0x94d   :  { %v5706_v18 = vpop.eup %5705 }
 0x9b4   :  { %v720_v14 = vpop.permute.xlu0 %719 }
 0x9b5   :  { %v722_v17 = vadd.f32 %v720_v14, %v716_v13 }
 0x9b7   :  { %5707 = vtanh.f32 %v722_v17 }
 0x9c1   :  { %v5708_v19 = vpop.eup %5707 }
 0x9c2   :  { %v724_v20 = vmul.f32 %v5708_v19, %v5706_v18  ;;  %v1074_v19 = vld [vmem:[#allocation9 + $0x78] sm:$0xff] }
 0x9c4   :  { %726 = vrot.lane.b32.xlu1 %v724_v20, %s6253_s28 }
 0xa36   :  { %v727_v23 = vpop.permute.xlu1 %726 }
 0xa37   :  { %730 = vst.msk [vmem:[#allocation2 + $0x20] sm:$0xff] %vm195_vm0, %v727_v23  ;;  %4705 = vmatmul.mubr.msk.f32.vlgmr.msra.gmra.mrb[6].mxu1 %vm195_vm0, %v727_v23 }
 0xa38   :  { %5039 = vmatpush1.bf16.msra.mxu1 %v6504_v9  ;;  %1018 = vmatprep.mubr.f32.mxu1 %v6252_v1 }
 0xa39   :  { %5041 = vmatprep.subr.bf16.mxu1 %v6506_v10  ;;  %v4704_v10 = vld [vmem:[%s7317_s0 + $0x58] sm:$0xff] }
 0xa3c   :  { %5043 = vmatpush1.bf16.msra.mxu1 %v6511_v15 }
 0xa3d   :  { %5045 = vmatprep.subr.bf16.mxu1 %v6515_v16 }
 0xa40   :  { %5047 = vmatpush1.bf16.msra.mxu1 %v6519_v21 }
 0xa41   :  { %5049 = vmatprep.subr.bf16.mxu1 %v6523_v22 }
 0xa44   :  { %5051 = vmatpush1.bf16.msra.mxu1 %v6527_v25 }
 0xa45   :  { %5069 = vmatprep.subr.bf16.mxu1 %v6646_v32 }
 0xb0a   :  { %v804_v26 = vpop.f32.mrb[6].mxu1 }
 0xb0b   :  { %v809_v9 = vadd.f32 %v4703_v24, %v804_v26  ;;  %v806_v27 = vpop.f32.mrb[7].mxu1 }
 0xb0c   :  { %v810_v15 = vadd.f32 %v4704_v10, %v806_v27 }
 0xb0d   :  { %v4706_v28 = vmul.f32 -1.442695, %v809_v9 }
 0xb0e   :  { %v4707_v33 = vmul.f32 -1.442695, %v810_v15 }
 0xb0f   :  { %5709 = vpow2.f32 %v4706_v28 }
 0xb10   :  { %5711 = vtanh.f32 %v810_v15 }
 0xb19   :  { %v5710_v16 = vpop.eup %5709 }
 0xb1a   :  { %v814_v21 = vadd.f32 1.0, %v5710_v16  ;;  %v5712_v22 = vpop.eup %5711 }
 0xb1c   :  { %5713 = vrcp.f32 %v814_v21 }
 0xb1d   :  { %5715 = vpow2.f32 %v4707_v33 }
 0xb26   :  { %v5714_v25 = vpop.eup %5713 }
 0xb27   :  { %v825_v29 = vmul.f32 %v5714_v25, %v5712_v22  ;;  %v5716_v34 = vpop.eup %5715  ;;  %v824_v36 = vmul.f32 %v5714_v25, %v722_v17 }
 0xb28   :  { %v821_v35 = vadd.f32 1.0, %v5716_v34 }
 0xb29   :  { %827 = vrot.lane.b32.xlu0 %v825_v29, %s6253_s28 }
 0xb2a   :  { %5717 = vrcp.f32 %v821_v35 }
 0xb34   :  { %v5718_v39 = vpop.eup %5717 }
 0xb9b   :  { %v828_v37 = vpop.permute.xlu0 %827 }
 0xb9c   :  { %v6650_v38 = vadd.f32 %v828_v37, %v824_v36 }
 0xb9e   :  { %5719 = vtanh.f32 %v6650_v38 }
 0xba8   :  { %v5720_v40 = vpop.eup %5719 }
 0xba9   :  { %v832_v41 = vmul.f32 %v5720_v40, %v5718_v39 }
 0xbab   :  { %834 = vrot.lane.b32.xlu1 %v832_v41, %s6253_s28 }
 0xc1d   :  { %v835_v49 = vpop.permute.xlu1 %834 }
 0xc1e   :  { %838 = vst.msk [vmem:[#allocation2 + $0x28] sm:$0xff] %vm195_vm0, %v835_v49  ;;  %4710 = vmatmul.mubr.msk.f32.vlgmr.msra.gmra.mrb[4].mxu0 %vm195_vm0, %v835_v49 }
 0xc1f   :  { %5055 = vmatpush1.bf16.msra.mxu0 %v6654_v46  ;;  %1139 = vmatprep.mubr.f32.mxu0 %v6252_v1 }
 0xc20   :  { %5057 = vmatprep.subr.bf16.mxu0 %v6656_v5 }
 0xc23   :  { %5059 = vmatpush1.bf16.msra.mxu0 %v6661_v52 }
 0xc24   :  { %5061 = vmatprep.subr.bf16.mxu0 %v6665_v53 }
 0xc27   :  { %5063 = vmatpush1.bf16.msra.mxu0 %v6668_v58 }
 0xc28   :  { %5065 = vmatprep.subr.bf16.mxu0 %v6671_v59 }
 0xc2b   :  { %5067 = vmatpush1.bf16.msra.mxu0 %v6674_v62 }
 0xc2c   :  { %5085 = vmatprep.subr.bf16.mxu0 %v6646_v32 }
 0xc2e   :  { %1140 = vmatmul.mubr.f32.vlgmr.msra.gmra.mrb[6].mxu0 %v6252_v1 }
 0xc2f   :  { %5087 = vmatpush1.bf16.msra.mxu0 %v6654_v46  ;;  %1353 = vmatprep.mubr.f32.mxu0 %v6252_v1 }
 0xc30   :  { %5089 = vmatprep.subr.bf16.mxu0 %v6656_v5 }
 0xc33   :  { %5091 = vmatpush1.bf16.msra.mxu0 %v6661_v52 }
 0xc34   :  { %5093 = vmatprep.subr.bf16.mxu0 %v6665_v53 }
 0xc37   :  { %5095 = vmatpush1.bf16.msra.mxu0 %v6668_v58 }
 0xc38   :  { %5097 = vmatprep.subr.bf16.mxu0 %v6671_v59 }
 0xc3b   :  { %5099 = vmatpush1.bf16.msra.mxu0 %v6674_v62 }
 0xc3c   :  { %5117 = vmatprep.subr.bf16.mxu0 %v6646_v32 }
 0xcf1   :  { %v912_v0 = vpop.f32.mrb[4].mxu0 }
 0xcf2   :  { %v917_v2 = vadd.f32 %v4708_v63, %v912_v0  ;;  %v914_v3 = vpop.f32.mrb[5].mxu0 }
 0xcf3   :  { %v918_v7 = vadd.f32 %v4709_v6, %v914_v3  ;;  %v1179_v3 = vld [vmem:[#allocation9 + $0x68] sm:$0xff] }
 0xcf4   :  { %v4711_v4 = vmul.f32 -1.442695, %v917_v2 }
 0xcf5   :  { %v4712_v16 = vmul.f32 -1.442695, %v918_v7 }
 0xcf6   :  { %5721 = vpow2.f32 %v4711_v4 }
 0xcf7   :  { %5723 = vtanh.f32 %v918_v7 }
 0xd00   :  { %v5722_v11 = vpop.eup %5721 }
 0xd01   :  { %v922_v12 = vadd.f32 1.0, %v5722_v11  ;;  %v1141_v13 = vpop.f32.mrb[6].mxu0  ;;  %v5724_v20 = vpop.eup %5723 }
 0xd02   :  { %v1146_v14 = vadd.f32 %v1141_v13, %v1073_v8  ;;  %v1143_v17 = vpop.f32.mrb[7].mxu0 }
 0xd03   :  { %5725 = vrcp.f32 %v922_v12  ;;  %v1147_v24 = vadd.f32 %v1143_v17, %v1074_v19 }
 0xd04   :  { %v4718_v18 = vmul.f32 -1.442695, %v1146_v14 }
 0xd05   :  { %v4719_v22 = vmul.f32 -1.442695, %v1147_v24 }
 0xd06   :  { %5727 = vpow2.f32 %v4718_v18 }
 0xd07   :  { %5729 = vtanh.f32 %v1147_v24 }
 0xd0d   :  { %v5726_v23 = vpop.eup %5725 }
 0xd0e   :  { %v933_v26 = vmul.f32 %v5726_v23, %v5724_v20  ;;  %v932_v29 = vmul.f32 %v5726_v23, %v6650_v38 }
 0xd10   :  { %v5728_v9 = vpop.eup %5727  ;;  %935 = vrot.lane.b32.xlu0 %v933_v26, %s6253_s28 }
 0xd11   :  { %v1151_v27 = vadd.f32 1.0, %v5728_v9  ;;  %v5730_v28 = vpop.eup %5729 }
 0xd13   :  { %5731 = vrcp.f32 %v1151_v27 }
 0xd14   :  { %5733 = vpow2.f32 %v4712_v16 }
 0xd15   :  { %5735 = vpow2.f32 %v4719_v22 }
 0xd1d   :  { %v5732_v10 = vpop.eup %5731 }
 0xd1e   :  { %v1162_v15 = vmul.f32 %v5732_v10, %v5730_v28  ;;  %v5734_v21 = vpop.eup %5733  ;;  %v1161_v39 = vmul.f32 0.0, %v5732_v10 }
 0xd1f   :  { %v929_v25 = vadd.f32 1.0, %v5734_v21  ;;  %v5736_v33 = vpop.eup %5735 }
 0xd20   :  { %1164 = vrot.lane.b32.xlu1 %v1162_v15, %s6253_s28  ;;  %v1158_v36 = vadd.f32 1.0, %v5736_v33  ;;  %v1285_v15 = vld [vmem:[#allocation9 + $0x50] sm:$0xff] }
 0xd21   :  { %5737 = vrcp.f32 %v929_v25 }
 0xd2b   :  { %v5738_v34 = vpop.eup %5737 }
 0xd82   :  { %v936_v30 = vpop.permute.xlu0 %935 }
 0xd83   :  { %v6698_v31 = vadd.f32 %v936_v30, %v932_v29  ;;  %v1286_v29 = vld [vmem:[#allocation9 + $0x58] sm:$0xff] }
 0xd85   :  { %5739 = vtanh.f32 %v6698_v31 }
 0xd86   :  { %5741 = vrcp.f32 %v1158_v36 }
 0xd8f   :  { %v5740_v35 = vpop.eup %5739 }
 0xd90   :  { %v940_v37 = vmul.f32 %v5740_v35, %v5738_v34  ;;  %v5742_v38 = vpop.eup %5741 }
 0xd92   :  { %v1165_v40 = vpop.permute.xlu1 %1164  ;;  %942 = vrot.lane.b32.xlu0 %v940_v37, %s6253_s28 }
 0xd93   :  { %v6702_v41 = vadd.f32 %v1165_v40, %v1161_v39 }
 0xd95   :  { %5743 = vtanh.f32 %v6702_v41 }
 0xd9f   :  { %v5744_v42 = vpop.eup %5743 }
 0xda0   :  { %v1169_v43 = vmul.f32 %v5744_v42, %v5742_v38 }
 0xda2   :  { %1171 = vrot.lane.b32.xlu1 %v1169_v43, %s6253_s28 }
 0xe04   :  { %v943_v44 = vpop.permute.xlu0 %942 }
 0xe05   :  { %946 = vst.msk [vmem:[#allocation2 + $0x30] sm:$0xff] %vm195_vm0, %v943_v44  ;;  %4715 = vmatmul.mubr.msk.f32.vlgmr.msra.gmra.mrb[8].mxu1 %vm195_vm0, %v943_v44 }
 0xe06   :  { %5071 = vmatpush1.bf16.msra.mxu1 %v6654_v46  ;;  %1246 = vmatprep.mubr.f32.mxu1 %v6252_v1 }
 0xe07   :  { %5073 = vmatprep.subr.bf16.mxu1 %v6656_v5 }
 0xe0a   :  { %5075 = vmatpush1.bf16.msra.mxu1 %v6661_v52 }
 0xe0b   :  { %5077 = vmatprep.subr.bf16.mxu1 %v6665_v53 }
 0xe0e   :  { %5079 = vmatpush1.bf16.msra.mxu1 %v6668_v58 }
 0xe0f   :  { %5081 = vmatprep.subr.bf16.mxu1 %v6671_v59 }
 0xe12   :  { %5083 = vmatpush1.bf16.msra.mxu1 %v6674_v62 }
 0xe13   :  { %5101 = vmatprep.subr.bf16.mxu1 %v6646_v32 }
 0xe14   :  { %v1172_v45 = vpop.permute.xlu1 %1171 }
 0xe15   :  { %1175 = vst.msk [vmem:[#allocation3 + $0x38] sm:$0xff] %vm195_vm0, %v1172_v45  ;;  %4720 = vmatmul.mubr.msk.f32.vlgmr.msra.gmra.mrb[10].mxu1 %vm195_vm0, %v1172_v45 }
 0xe16   :  { %5103 = vmatpush1.bf16.msra.mxu1 %v6654_v46  ;;  %1460 = vmatprep.mubr.f32.mxu1 %v6252_v1 }
 0xe17   :  { %5105 = vmatprep.subr.bf16.mxu1 %v6656_v5 }
 0xe1a   :  { %5107 = vmatpush1.bf16.msra.mxu1 %v6661_v52 }
 0xe1b   :  { %5109 = vmatprep.subr.bf16.mxu1 %v6665_v53 }
 0xe1e   :  { %5111 = vmatpush1.bf16.msra.mxu1 %v6668_v58 }
 0xe1f   :  { %5113 = vmatprep.subr.bf16.mxu1 %v6671_v59 }
 0xe22   :  { %5115 = vmatpush1.bf16.msra.mxu1 %v6674_v62 }
 0xe23   :  { %5133 = vmatprep.subr.bf16.mxu1 %v6646_v32 }
 0xed8   :  { %v1020_v48 = vpop.f32.mrb[8].mxu1 }
 0xed9   :  { %v1025_v49 = vadd.f32 %v4713_v47, %v1020_v48  ;;  %v1022_v50 = vpop.f32.mrb[9].mxu1 }
 0xeda   :  { %v6734_v55 = vadd.f32 %v4714_v54, %v1022_v50 }
 0xedb   :  { %v4716_v51 = vmul.f32 -1.442695, %v1025_v49  ;;  %v1392_v49 = vld [vmem:[#allocation9 + $0x40] sm:$0xff] }
 0xedd   :  { %5745 = vpow2.f32 %v4716_v51 }
 0xede   :  { %5747 = vtanh.f32 %v6734_v55 }
 0xee7   :  { %v5746_v57 = vpop.eup %5745 }
 0xee8   :  { %v1030_v60 = vadd.f32 1.0, %v5746_v57  ;;  %v1248_v61 = vpop.f32.mrb[10].mxu1  ;;  %v5748_v4 = vpop.eup %5747  ;;  %v1393_v57 = vld [vmem:[#allocation9 + $0x48] sm:$0xff] }
 0xee9   :  { %v1253_v63 = vadd.f32 %v1248_v61, %v1178_v56  ;;  %v1250_v0 = vpop.f32.mrb[11].mxu1 }
 0xeea   :  { %5749 = vrcp.f32 %v1030_v60  ;;  %v1254_v7 = vadd.f32 %v1250_v0, %v1179_v3 }
 0xeeb   :  { %v4721_v2 = vmul.f32 -1.442695, %v1253_v63 }
 0xeec   :  { %v4722_v18 = vmul.f32 -1.442695, %v1254_v7 }
 0xeed   :  { %5751 = vpow2.f32 %v4721_v2 }
 0xeee   :  { %5753 = vtanh.f32 %v1254_v7 }
 0xef4   :  { %v6737_v6 = vpop.eup %5749 }
 0xef5   :  { %v6740_v8 = vmul.f32 %v6737_v6, %v5748_v4 }
 0xef7   :  { %v5752_v11 = vpop.eup %5751 }
 0xef8   :  { %v1258_v12 = vadd.f32 1.0, %v5752_v11  ;;  %v5754_v13 = vpop.eup %5753 }
 0xefa   :  { %5755 = vrcp.f32 %v1258_v12 }
 0xefb   :  { %5757 = vpow2.f32 %v4722_v18 }
 0xf04   :  { %v5756_v14 = vpop.eup %5755 }
 0xf05   :  { %v1269_v17 = vmul.f32 %v5756_v14, %v5754_v13  ;;  %v5758_v19 = vpop.eup %5757  ;;  %v1268_v23 = vmul.f32 %v5756_v14, %v6702_v41 }
 0xf06   :  { %v1265_v20 = vadd.f32 1.0, %v5758_v19 }
 0xf07   :  { %1271 = vrot.lane.b32.xlu0 %v1269_v17, %s6253_s28 }
 0xf08   :  { %5759 = vrcp.f32 %v1265_v20  ;;  %v1499_v20 = vld [vmem:[#allocation9 + $0x30] sm:$0xff] }
 0xf12   :  { %v5760_v9 = vpop.eup %5759 }
 0xf79   :  { %v1272_v24 = vpop.permute.xlu0 %1271 }
 0xf7a   :  { %v1274_v26 = vadd.f32 %v1272_v24, %v1268_v23 }
 0xf7c   :  { %5761 = vtanh.f32 %v1274_v26 }
 0xf86   :  { %v5762_v27 = vpop.eup %5761 }
 0xf87   :  { %v1276_v28 = vmul.f32 %v5762_v27, %v5760_v9  ;;  %v1500_v27 = vld [vmem:[#allocation9 + $0x38] sm:$0xff] }
 0xf89   :  { %1278 = vrot.lane.b32.xlu1 %v1276_v28, %s6253_s28 }
 0xffb   :  { %v1279_v10 = vpop.permute.xlu1 %1278 }
 0xffc   :  { %1282 = vst.msk [vmem:[#allocation3 + $0x30] sm:$0xff] %vm195_vm0, %v1279_v10  ;;  %4723 = vmatmul.mubr.msk.f32.vlgmr.msra.gmra.mrb[8].mxu0 %vm195_vm0, %v1279_v10 }
 0xffd   :  { %5119 = vmatpush1.bf16.msra.mxu0 %v6654_v46  ;;  %1567 = vmatprep.mubr.f32.mxu0 %v6252_v1 }
 0xffe   :  { %5121 = vmatprep.subr.bf16.mxu0 %v6656_v5 }
0x1001   :  { %5123 = vmatpush1.bf16.msra.mxu0 %v6661_v52 }
0x1002   :  { %5125 = vmatprep.subr.bf16.mxu0 %v6665_v53 }
0x1005   :  { %5127 = vmatpush1.bf16.msra.mxu0 %v6668_v58 }
0x1006   :  { %5129 = vmatprep.subr.bf16.mxu0 %v6671_v59 }
0x1009   :  { %5131 = vmatpush1.bf16.msra.mxu0 %v6674_v62 }
0x100a   :  { %5149 = vmatprep.subr.bf16.mxu0 %v6646_v32 }
0x10cf   :  { %v1355_v16 = vpop.f32.mrb[8].mxu0 }
0x10d0   :  { %v1360_v21 = vadd.f32 %v1355_v16, %v1285_v15  ;;  %v1357_v22 = vpop.f32.mrb[9].mxu0 }
0x10d1   :  { %v1361_v30 = vadd.f32 %v1357_v22, %v1286_v29 }
0x10d2   :  { %v4724_v25 = vmul.f32 -1.442695, %v1360_v21 }
0x10d3   :  { %v4725_v39 = vmul.f32 -1.442695, %v1361_v30 }
0x10d4   :  { %5763 = vpow2.f32 %v4724_v25 }
0x10d5   :  { %5765 = vtanh.f32 %v1361_v30 }
0x10de   :  { %v5764_v33 = vpop.eup %5763 }
0x10df   :  { %v1365_v34 = vadd.f32 1.0, %v5764_v33  ;;  %v5766_v35 = vpop.eup %5765 }
0x10e1   :  { %5767 = vrcp.f32 %v1365_v34 }
0x10e2   :  { %5769 = vpow2.f32 %v4725_v39 }
0x10eb   :  { %v5768_v36 = vpop.eup %5767 }
0x10ec   :  { %v1376_v37 = vmul.f32 %v5768_v36, %v5766_v35  ;;  %v5770_v40 = vpop.eup %5769  ;;  %v1375_v38 = vmul.f32 %v5768_v36, %v1274_v26 }
0x10ed   :  { %v1372_v41 = vadd.f32 1.0, %v5770_v40 }
0x10ee   :  { %1378 = vrot.lane.b32.xlu0 %v1376_v37, %s6253_s28 }
0x10ef   :  { %5771 = vrcp.f32 %v1372_v41  ;;  %v1606_v41 = vld [vmem:[#allocation9 + $0x20] sm:$0xff] }
0x10f9   :  { %v5772_v44 = vpop.eup %5771 }
0x1160   :  { %v1379_v42 = vpop.permute.xlu0 %1378 }
0x1161   :  { %v1381_v43 = vadd.f32 %v1379_v42, %v1375_v38 }
0x1163   :  { %5773 = vtanh.f32 %v1381_v43 }
0x116d   :  { %v5774_v45 = vpop.eup %5773 }
0x116e   :  { %v1383_v47 = vmul.f32 %v5774_v45, %v5772_v44 }
0x1170   :  { %1385 = vrot.lane.b32.xlu1 %v1383_v47, %s6253_s28 }
0x11e2   :  { %v1386_v48 = vpop.permute.xlu1 %1385 }
0x11e3   :  { %1389 = vst.msk [vmem:[#allocation3 + $0x28] sm:$0xff] %vm195_vm0, %v1386_v48  ;;  %4726 = vmatmul.mubr.msk.f32.vlgmr.msra.gmra.mrb[12].mxu1 %vm195_vm0, %v1386_v48 }
0x11e4   :  { %5135 = vmatpush1.bf16.msra.mxu1 %v6654_v46  ;;  %1674 = vmatprep.mubr.f32.mxu1 %v6252_v1 }
0x11e5   :  { %5137 = vmatprep.subr.bf16.mxu1 %v6656_v5 }
0x11e8   :  { %5139 = vmatpush1.bf16.msra.mxu1 %v6661_v52 }
0x11e9   :  { %5141 = vmatprep.subr.bf16.mxu1 %v6665_v53 }
0x11ec   :  { %5143 = vmatpush1.bf16.msra.mxu1 %v6668_v58 }
0x11ed   :  { %5145 = vmatprep.subr.bf16.mxu1 %v6671_v59 }
0x11f0   :  { %5147 = vmatpush1.bf16.msra.mxu1 %v6674_v62 }
0x11f1   :  { %5165 = vmatprep.subr.bf16.mxu1 %v6646_v32 }
0x12b6   :  { %v1462_v50 = vpop.f32.mrb[12].mxu1 }
0x12b7   :  { %v1467_v51 = vadd.f32 %v1462_v50, %v1392_v49  ;;  %v1464_v54 = vpop.f32.mrb[13].mxu1 }
0x12b8   :  { %v1468_v60 = vadd.f32 %v1464_v54, %v1393_v57 }
0x12b9   :  { %v4727_v56 = vmul.f32 -1.442695, %v1467_v51 }
0x12ba   :  { %v4728_v4 = vmul.f32 -1.442695, %v1468_v60 }
0x12bb   :  { %5775 = vpow2.f32 %v4727_v56 }
0x12bc   :  { %5777 = vtanh.f32 %v1468_v60 }
0x12c5   :  { %v5776_v61 = vpop.eup %5775 }
0x12c6   :  { %v1472_v63 = vadd.f32 1.0, %v5776_v61  ;;  %v5778_v0 = vpop.eup %5777  ;;  %v1713_v61 = vld [vmem:[#allocation9 + $0x10] sm:$0xff] }
0x12c8   :  { %5779 = vrcp.f32 %v1472_v63 }
0x12c9   :  { %5781 = vpow2.f32 %v4728_v4  ;;  %v1714_v4 = vld [vmem:[#allocation9 + $0x18] sm:$0xff] }
0x12d2   :  { %v5780_v2 = vpop.eup %5779 }
0x12d3   :  { %v1483_v3 = vmul.f32 %v5780_v2, %v5778_v0  ;;  %v5782_v32 = vpop.eup %5781  ;;  %v1482_v11 = vmul.f32 %v5780_v2, %v1381_v43 }
0x12d4   :  { %v1479_v7 = vadd.f32 1.0, %v5782_v32 }
0x12d5   :  { %1485 = vrot.lane.b32.xlu0 %v1483_v3, %s6253_s28 }
0x12d6   :  { %5783 = vrcp.f32 %v1479_v7 }
0x12e0   :  { %v5784_v14 = vpop.eup %5783 }
0x1347   :  { %v1486_v12 = vpop.permute.xlu0 %1485 }
0x1348   :  { %v1488_v13 = vadd.f32 %v1486_v12, %v1482_v11 }
0x134a   :  { %5785 = vtanh.f32 %v1488_v13 }
0x1354   :  { %v5786_v17 = vpop.eup %5785 }
0x1355   :  { %v1490_v18 = vmul.f32 %v5786_v17, %v5784_v14 }
0x1357   :  { %1492 = vrot.lane.b32.xlu1 %v1490_v18, %s6253_s28 }
0x13c9   :  { %v1493_v19 = vpop.permute.xlu1 %1492 }
0x13ca   :  { %1496 = vst.msk [vmem:[#allocation3 + $0x20] sm:$0xff] %vm195_vm0, %v1493_v19  ;;  %4729 = vmatmul.mubr.msk.f32.vlgmr.msra.gmra.mrb[10].mxu0 %vm195_vm0, %v1493_v19 }
0x13cb   :  { %5151 = vmatpush1.bf16.msra.mxu0 %v6654_v46  ;;  %1781 = vmatprep.mubr.f32.mxu0 %v6252_v1 }
0x13cc   :  { %5153 = vmatprep.subr.bf16.mxu0 %v6656_v5 }
0x13cf   :  { %5155 = vmatpush1.bf16.msra.mxu0 %v6661_v52 }
0x13d0   :  { %5157 = vmatprep.subr.bf16.mxu0 %v6665_v53 }
0x13d3   :  { %5159 = vmatpush1.bf16.msra.mxu0 %v6668_v58 }
0x13d4   :  { %5161 = vmatprep.subr.bf16.mxu0 %v6671_v59 }
0x13d7   :  { %5163 = vmatpush1.bf16.msra.mxu0 %v6674_v62 }
0x149d   :  { %v1569_v23 = vpop.f32.mrb[10].mxu0 }
0x149e   :  { %v1574_v24 = vadd.f32 %v1569_v23, %v1499_v20  ;;  %v1571_v26 = vpop.f32.mrb[11].mxu0 }
0x149f   :  { %v1575_v28 = vadd.f32 %v1571_v26, %v1500_v27 }
0x14a0   :  { %v4730_v9 = vmul.f32 -1.442695, %v1574_v24 }
0x14a1   :  { %v4731_v25 = vmul.f32 -1.442695, %v1575_v28 }
0x14a2   :  { %5787 = vpow2.f32 %v4730_v9 }
0x14a3   :  { %5789 = vtanh.f32 %v1575_v28  ;;  %v4717_v28 = vmul.f32 -1.442695, %v6734_v55 }
0x14ac   :  { %v5788_v10 = vpop.eup %5787 }
0x14ad   :  { %v1579_v15 = vadd.f32 1.0, %v5788_v10  ;;  %v5790_v16 = vpop.eup %5789 }
0x14af   :  { %5791 = vrcp.f32 %v1579_v15 }
0x14b0   :  { %5793 = vpow2.f32 %v4731_v25 }
0x14b9   :  { %v5792_v21 = vpop.eup %5791 }
0x14ba   :  { %v1590_v22 = vmul.f32 %v5792_v21, %v5790_v16  ;;  %v5794_v29 = vpop.eup %5793  ;;  %v1589_v33 = vmul.f32 %v5792_v21, %v1488_v13  ;;  %v1040_v21 = vmul.f32 %v6737_v6, %v6698_v31 }
0x14bb   :  { %v1586_v30 = vadd.f32 1.0, %v5794_v29 }
0x14bc   :  { %1592 = vrot.lane.b32.xlu0 %v1590_v22, %s6253_s28 }
0x14bd   :  { %5795 = vrcp.f32 %v1586_v30 }
0x14c7   :  { %v5796_v36 = vpop.eup %5795 }
0x152e   :  { %v1593_v34 = vpop.permute.xlu0 %1592 }
0x152f   :  { %v1595_v35 = vadd.f32 %v1593_v34, %v1589_v33  ;;  %v1820_v33 = vld [vmem:[#allocation9] sm:$0xff] }
0x1531   :  { %5797 = vtanh.f32 %v1595_v35 }
0x153b   :  { %v5798_v37 = vpop.eup %5797 }
0x153c   :  { %v1597_v39 = vmul.f32 %v5798_v37, %v5796_v36 }
0x153e   :  { %1599 = vrot.lane.b32.xlu1 %v1597_v39, %s6253_s28  ;;  %v1821_v39 = vld [vmem:[#allocation9 + $0x8] sm:$0xff] }
0x15b0   :  { %v1600_v40 = vpop.permute.xlu1 %1599 }
0x15b1   :  { %1603 = vst.msk [vmem:[#allocation3 + $0x18] sm:$0xff] %vm195_vm0, %v1600_v40  ;;  %4732 = vmatmul.mubr.msk.f32.vlgmr.msra.gmra.mrb[14].mxu1 %vm195_vm0, %v1600_v40 }
0x15b2   :  { %5167 = vmatpush1.bf16.msra.mxu1 %v6654_v46  ;;  %1888 = vmatprep.mubr.f32.mxu1 %v6252_v1  ;;  %v1607_v46 = vld [vmem:[#allocation9 + $0x28] sm:$0xff] }
0x15b3   :  { %5169 = vmatprep.subr.bf16.mxu1 %v6656_v5 }
0x15b6   :  { %5171 = vmatpush1.bf16.msra.mxu1 %v6661_v52 }
0x15b7   :  { %5173 = vmatprep.subr.bf16.mxu1 %v6665_v53 }
0x15ba   :  { %5175 = vmatpush1.bf16.msra.mxu1 %v6668_v58 }
0x15bb   :  { %5177 = vmatprep.subr.bf16.mxu1 %v6671_v59 }
0x15be   :  { %5179 = vmatpush1.bf16.msra.mxu1 %v6674_v62 }
0x1684   :  { %v1676_v38 = vpop.f32.mrb[14].mxu1 }
0x1685   :  { %v1681_v42 = vadd.f32 %v1676_v38, %v1606_v41  ;;  %v1678_v43 = vpop.f32.mrb[15].mxu1 }
0x1686   :  { %v1682_v45 = vadd.f32 %v1678_v43, %v1607_v46  ;;  %v2307_v43 = vld [vmem:[#allocation19 + $0x8] sm:$0xff] }
0x1687   :  { %v4733_v44 = vmul.f32 -1.442695, %v1681_v42  ;;  %v1957_v46 = vld [vmem:[#allocation16 + $0x8] sm:$0xff] }
0x1688   :  { %v4734_v58 = vmul.f32 -1.442695, %v1682_v45 }
0x1689   :  { %5799 = vpow2.f32 %v4733_v44  ;;  %v2309_v44 = vld [vmem:[#allocation19 + $0x18] sm:$0xff] }
0x168a   :  { %5801 = vtanh.f32 %v1682_v45  ;;  %v5212_v45 = vpack.c.bf16 %v2309_v44, %v2307_v43  ;;  %v2290_v44 = vld [vmem:[#allocation17] sm:$0xff] }
0x168c   :  { %5213 = vmatprep.subr.bf16.mxu1 %v5212_v45  ;;  %v2295_v45 = vld [vmem:[#allocation17 + $0x28] sm:$0xff] }
0x1693   :  { %v5800_v47 = vpop.eup %5799 }
0x1694   :  { %v1686_v5 = vadd.f32 1.0, %v5800_v47  ;;  %v5802_v52 = vpop.eup %5801  ;;  %v1959_v47 = vld [vmem:[#allocation16 + $0x18] sm:$0xff] }
0x1696   :  { %5803 = vrcp.f32 %v1686_v5  ;;  %v2306_v5 = vld [vmem:[#allocation19] sm:$0xff] }
0x1697   :  { %5805 = vpow2.f32 %v4734_v58  ;;  %v1956_v58 = vld [vmem:[#allocation16] sm:$0xff] }
0x16a0   :  { %v5804_v53 = vpop.eup %5803 }
0x16a1   :  { %v1697_v48 = vmul.f32 %v5804_v53, %v5802_v52  ;;  %v5806_v59 = vpop.eup %5805  ;;  %v1696_v49 = vmul.f32 %v5804_v53, %v1595_v35  ;;  %v2308_v52 = vld [vmem:[#allocation19 + $0x10] sm:$0xff]  ;;  %v5180_v53 = vpack.c.bf16 %v1959_v47, %v1957_v46  ;;  %v2297_v47 = vld [vmem:[#allocation17 + $0x38] sm:$0xff] }
0x16a2   :  { %v1693_v62 = vadd.f32 1.0, %v5806_v59  ;;  %v1958_v59 = vld [vmem:[#allocation16 + $0x10] sm:$0xff] }
0x16a3   :  { %1699 = vrot.lane.b32.xlu0 %v1697_v48, %s6253_s28  ;;  %v5214_v48 = vpack.c.bf16 %v2308_v52, %v2306_v5  ;;  %5181 = vmatprep.subr.bf16.mxu0 %v5180_v53  ;;  %v2292_v46 = vld [vmem:[#allocation17 + $0x10] sm:$0xff]  ;;  %v1940_v5 = vld [vmem:[#allocation14] sm:$0xff] }
0x16a4   :  { %5807 = vrcp.f32 %v1693_v62  ;;  %v2311_v62 = vld [vmem:[#allocation19 + $0x28] sm:$0xff]  ;;  %v1942_v52 = vld [vmem:[#allocation14 + $0x10] sm:$0xff]  ;;  %v5230_v53 = vpack.c.bf16 %v2292_v46, %v2290_v44  ;;  %v1924_v44 = vld [vmem:[#allocation2] sm:$0xff] }
0x16ae   :  { %v5808_v54 = vpop.eup %5807 }
0x1715   :  { %v1700_v50 = vpop.permute.xlu0 %1699 }
0x1716   :  { %v1702_v51 = vadd.f32 %v1700_v50, %v1696_v49  ;;  %v5182_v49 = vpack.c.bf16 %v1958_v59, %v1956_v58  ;;  %v2313_v50 = vld [vmem:[#allocation19 + $0x38] sm:$0xff]  ;;  %v2294_v58 = vld [vmem:[#allocation17 + $0x20] sm:$0xff]  ;;  %v2296_v59 = vld [vmem:[#allocation17 + $0x30] sm:$0xff] }
0x1718   :  { %5809 = vtanh.f32 %v1702_v51 }
0x1722   :  { %v5810_v56 = vpop.eup %5809 }
0x1723   :  { %v1704_v57 = vmul.f32 %v5810_v56, %v5808_v54  ;;  %v1963_v54 = vld [vmem:[#allocation16 + $0x38] sm:$0xff]  ;;  %v5216_v56 = vpack.c.bf16 %v2313_v50, %v2311_v62  ;;  %v2299_v62 = vld [vmem:[#allocation17 + $0x48] sm:$0xff]  ;;  %v5198_v50 = vpack.c.bf16 %v1942_v52, %v1940_v5 }
0x1724   :  { %v3470_v52 = vld [vmem:[#allocation22 + $0x48] sm:$0xff] }
0x1725   :  { %1706 = vrot.lane.b32.xlu1 %v1704_v57, %s6253_s28 }
0x1797   :  { %v1707_v60 = vpop.permute.xlu1 %1706 }
0x1798   :  { %1710 = vst.msk [vmem:[#allocation3 + $0x10] sm:$0xff] %vm195_vm0, %v1707_v60  ;;  %4735 = vmatmul.mubr.msk.f32.vlgmr.msra.gmra.mrb[12].mxu0 %vm195_vm0, %v1707_v60  ;;  %v2310_v60 = vld [vmem:[#allocation19 + $0x20] sm:$0xff] }
0x1799   :  { %2060 = vmatprep.mubr.f32.mxu0 %v6252_v1  ;;  %5183 = vmatpush1.bf16.msra.mxu0 %v5182_v49 }
0x186b   :  { %v1783_v63 = vpop.f32.mrb[12].mxu0 }
0x186c   :  { %v1788_v0 = vadd.f32 %v1783_v63, %v1713_v61  ;;  %v1785_v2 = vpop.f32.mrb[13].mxu0  ;;  %v2312_v61 = vld [vmem:[#allocation19 + $0x30] sm:$0xff]  ;;  %v1960_v63 = vld [vmem:[#allocation16 + $0x20] sm:$0xff] }
0x186d   :  { %v1789_v32 = vadd.f32 %v1785_v2, %v1714_v4  ;;  %v1962_v2 = vld [vmem:[#allocation16 + $0x30] sm:$0xff]  ;;  %v2317_v4 = vld [vmem:[#allocation19 + $0x58] sm:$0xff] }
0x186e   :  { %v4736_v3 = vmul.f32 -1.442695, %v1788_v0  ;;  %v5218_v0 = vpack.c.bf16 %v2312_v61, %v2310_v60  ;;  %v1946_v60 = vld [vmem:[#allocation14 + $0x30] sm:$0xff] }
0x186f   :  { %v4737_v17 = vmul.f32 -1.442695, %v1789_v32 }
0x1870   :  { %5811 = vpow2.f32 %v4736_v3  ;;  %v2315_v3 = vld [vmem:[#allocation19 + $0x48] sm:$0xff] }
0x1871   :  { %5813 = vtanh.f32 %v1789_v32  ;;  %v5186_v32 = vpack.c.bf16 %v1962_v2, %v1960_v63  ;;  %v5234_v63 = vpack.c.bf16 %v2296_v59, %v2294_v58  ;;  %v2300_v2 = vld [vmem:[#allocation17 + $0x50] sm:$0xff]  ;;  %v3472_v58 = vld [vmem:[#allocation22 + $0x58] sm:$0xff]  ;;  %v2596_v59 = vld [vmem:[#allocation20 + $0x20] sm:$0xff] }
0x187a   :  { %v5812_v7 = vpop.eup %5811 }
0x187b   :  { %v1793_v11 = vadd.f32 1.0, %v5812_v7  ;;  %v5814_v12 = vpop.eup %5813  ;;  %v5220_v7 = vpack.c.bf16 %v2317_v4, %v2315_v3 }
0x187d   :  { %5815 = vrcp.f32 %v1793_v11 }
0x187e   :  { %5817 = vpow2.f32 %v4737_v17 }
0x1887   :  { %v5816_v13 = vpop.eup %5815 }
0x1888   :  { %v1804_v14 = vmul.f32 %v5816_v13, %v5814_v12  ;;  %v5818_v18 = vpop.eup %5817  ;;  %v1803_v20 = vmul.f32 %v5816_v13, %v1702_v51  ;;  %v1961_v51 = vld [vmem:[#allocation16 + $0x28] sm:$0xff] }
0x1889   :  { %v1800_v19 = vadd.f32 1.0, %v5818_v18  ;;  %v5184_v57 = vpack.c.bf16 %v1963_v54, %v1961_v51  ;;  %v1965_v18 = vld [vmem:[#allocation16 + $0x48] sm:$0xff]  ;;  %v1947_v54 = vld [vmem:[#allocation14 + $0x38] sm:$0xff] }
0x188a   :  { %1806 = vrot.lane.b32.xlu0 %v1804_v14, %s6253_s28  ;;  %v1945_v51 = vld [vmem:[#allocation14 + $0x28] sm:$0xff] }
0x188b   :  { %5819 = vrcp.f32 %v1800_v19  ;;  %5185 = vmatprep.subr.bf16.mxu0 %v5184_v57  ;;  %v1967_v19 = vld [vmem:[#allocation16 + $0x58] sm:$0xff]  ;;  %v1944_v57 = vld [vmem:[#allocation14 + $0x20] sm:$0xff]  ;;  %v5200_v3 = vpack.c.bf16 %v1947_v54, %v1945_v51  ;;  %v3471_v54 = vld [vmem:[#allocation22 + $0x50] sm:$0xff] }
0x188c   :  { %5187 = vmatpush1.bf16.msra.mxu0 %v5186_v32  ;;  %v5202_v32 = vpack.c.bf16 %v1946_v60, %v1944_v57  ;;  %v3469_v51 = vld [vmem:[#allocation22 + $0x40] sm:$0xff]  ;;  %v6872_v57 = vpack.c.bf16 %v3472_v58, %v3470_v52 }
0x1895   :  { %v5820_v26 = vpop.eup %5819 }
0x18fc   :  { %v1807_v23 = vpop.permute.xlu0 %1806 }
0x18fd   :  { %v6799_v24 = vadd.f32 %v1807_v23, %v1803_v20  ;;  %v5188_v23 = vpack.c.bf16 %v1967_v19, %v1965_v18  ;;  %v1934_v18 = vld [vmem:[#allocation3 + $0x10] sm:$0xff] }
0x18ff   :  { %5821 = vtanh.f32 %v6799_v24  ;;  %5189 = vmatprep.subr.bf16.mxu0 %v5188_v23  ;;  %v2302_v23 = vld [vmem:[#allocation17 + $0x60] sm:$0xff] }
0x1900   :  { %5823 = vpow2.f32 %v4717_v28 }
0x1909   :  { %v5822_v9 = vpop.eup %5821 }
0x190a   :  { %v1811_v27 = vmul.f32 %v5822_v9, %v5820_v26  ;;  %v5824_v10 = vpop.eup %5823  ;;  %v2314_v26 = vld [vmem:[#allocation19 + $0x40] sm:$0xff]  ;;  %v2316_v9 = vld [vmem:[#allocation19 + $0x50] sm:$0xff] }
0x190b   :  { %v1037_v16 = vadd.f32 1.0, %v5824_v10  ;;  %v5222_v28 = vpack.c.bf16 %v2316_v9, %v2314_v26  ;;  %v1966_v10 = vld [vmem:[#allocation16 + $0x50] sm:$0xff] }
0x190c   :  { %1813 = vrot.lane.b32.xlu1 %v1811_v27, %s6253_s28  ;;  %v1964_v27 = vld [vmem:[#allocation16 + $0x40] sm:$0xff]  ;;  %v2304_v26 = vld [vmem:[#allocation17 + $0x70] sm:$0xff] }
0x190d   :  { %5825 = vrcp.f32 %v1037_v16  ;;  %v2319_v16 = vld [vmem:[#allocation19 + $0x68] sm:$0xff] }
0x1910   :  { %1043 = vrot.lane.b32.xlu1 %v6740_v8, %s6253_s28 }
0x1917   :  { %v5826_v8 = vpop.eup %5825 }
0x197e   :  { %v1814_v15 = vpop.permute.xlu1 %1813 }
0x197f   :  { %1817 = vst.msk [vmem:[#allocation3 + $0x8] sm:$0xff] %vm195_vm0, %v1814_v15  ;;  %4738 = vmatmul.mubr.msk.f32.vlgmr.msra.gmra.mrb[16].mxu1 %vm195_vm0, %v1814_v15  ;;  %v5190_v15 = vpack.c.bf16 %v1966_v10, %v1964_v27  ;;  %v1955_v10 = vld [vmem:[#allocation14 + $0x78] sm:$0xff] }
0x1980   :  { %2386 = vmatprep.mubr.f32.mxu1 %v6252_v1  ;;  %5215 = vmatpush1.bf16.msra.mxu1 %v5214_v48  ;;  %v5232_v48 = vpack.c.bf16 %v2297_v47, %v2295_v45  ;;  %v3465_v45 = vld [vmem:[#allocation22 + $0x20] sm:$0xff]  ;;  %v3467_v47 = vld [vmem:[#allocation22 + $0x30] sm:$0xff] }
0x1981   :  { %5217 = vmatprep.subr.bf16.mxu1 %v5216_v56  ;;  %5191 = vmatpush1.bf16.msra.mxu0 %v5190_v15  ;;  %v2301_v56 = vld [vmem:[#allocation17 + $0x58] sm:$0xff]  ;;  %v1952_v15 = vld [vmem:[#allocation14 + $0x60] sm:$0xff] }
0x1982   :  { %v1044_v22 = vpop.permute.xlu1 %1043  ;;  %v5236_v4 = vpack.c.bf16 %v2301_v56, %v2299_v62  ;;  %v2598_v62 = vld [vmem:[#allocation20 + $0x30] sm:$0xff] }
0x1983   :  { %v1046_v25 = vadd.f32 %v1044_v22, %v1040_v21  ;;  %v2321_v21 = vld [vmem:[#allocation19 + $0x78] sm:$0xff]  ;;  %v1969_v22 = vld [vmem:[#allocation16 + $0x68] sm:$0xff]  ;;  %v6874_v60 = vpack.c.bf16 %v2598_v62, %v2596_v59 }
0x1984   :  { %5219 = vmatpush1.bf16.msra.mxu1 %v5218_v0  ;;  %v2298_v0 = vld [vmem:[#allocation17 + $0x40] sm:$0xff] }
0x1985   :  { %5827 = vtanh.f32 %v1046_v25  ;;  %5221 = vmatprep.subr.bf16.mxu1 %v5220_v7  ;;  %v5224_v25 = vpack.c.bf16 %v2321_v21, %v2319_v16  ;;  %v2303_v7 = vld [vmem:[#allocation17 + $0x68] sm:$0xff]  ;;  %v5238_v19 = vpack.c.bf16 %v2300_v2, %v2298_v0  ;;  %v1954_v16 = vld [vmem:[#allocation14 + $0x70] sm:$0xff]  ;;  %v2600_v0 = vld [vmem:[#allocation20 + $0x40] sm:$0xff] }
0x1986   :  { %v1933_v61 = vld [vmem:[#allocation3 + $0x8] sm:$0xff]  ;;  %v2602_v2 = vld [vmem:[#allocation20 + $0x50] sm:$0xff] }
0x1987   :  { %v3462_v21 = vld [vmem:[#allocation22 + $0x8] sm:$0xff] }
0x1988   :  { %5223 = vmatpush1.bf16.msra.mxu1 %v5222_v28  ;;  %v1953_v28 = vld [vmem:[#allocation14 + $0x68] sm:$0xff] }
0x1989   :  { %5225 = vmatprep.subr.bf16.mxu1 %v5224_v25  ;;  %v5242_v25 = vpack.c.bf16 %v2304_v26, %v2302_v23  ;;  %v2606_v23 = vld [vmem:[#allocation20 + $0x70] sm:$0xff] }
0x198f   :  { %v5828_v29 = vpop.eup %5827 }
0x1990   :  { %v1048_v55 = vmul.f32 %v5828_v29, %v5826_v8  ;;  %v2318_v8 = vld [vmem:[#allocation19 + $0x60] sm:$0xff]  ;;  %v2320_v29 = vld [vmem:[#allocation19 + $0x70] sm:$0xff] }
0x1992   :  { %1050 = vrot.lane.b32.xlu1 %v1048_v55, %s6253_s28 }
0x1a04   :  { %v1051_v30 = vpop.permute.xlu1 %1050 }
0x1a05   :  { %1054 = vst.msk [vmem:[#allocation2 + $0x38] sm:$0xff] %vm195_vm0, %v1051_v30  ;;  %v5226_v30 = vpack.c.bf16 %v2320_v29, %v2318_v8  ;;  %v1935_v8 = vld [vmem:[#allocation3 + $0x18] sm:$0xff]  ;;  %v5210_v29 = vpack.c.bf16 %v1954_v16, %v1952_v15  ;;  %v1929_v15 = vld [vmem:[#allocation2 + $0x28] sm:$0xff]  ;;  %v1930_v16 = vld [vmem:[#allocation2 + $0x30] sm:$0xff] }
0x1a07   :  { %5227 = vmatpush1.bf16.msra.mxu1 %v5226_v30  ;;  %v2593_v30 = vld [vmem:[#allocation20 + $0x8] sm:$0xff] }
0x1a52   :  { %v1890_v34 = vpop.f32.mrb[16].mxu1 }
0x1a53   :  { %v1895_v35 = vadd.f32 %v1890_v34, %v1820_v33  ;;  %v1892_v36 = vpop.f32.mrb[17].mxu1  ;;  %v1968_v33 = vld [vmem:[#allocation16 + $0x60] sm:$0xff]  ;;  %v1970_v34 = vld [vmem:[#allocation16 + $0x70] sm:$0xff] }
0x1a54   :  { %v1896_v31 = vadd.f32 %v1892_v36, %v1821_v39  ;;  %v5194_v36 = vpack.c.bf16 %v1970_v34, %v1968_v33  ;;  %v2595_v33 = vld [vmem:[#allocation20 + $0x18] sm:$0xff] }
0x1a55   :  { %v4739_v37 = vmul.f32 -1.442695, %v1895_v35  ;;  %v2291_v35 = vld [vmem:[#allocation17 + $0x8] sm:$0xff]  ;;  %v6835_v34 = vpack.c.bf16 %v2595_v33, %v2593_v30  ;;  %v2548_v30 = vld [vmem:[%s7328_s11] sm:$0x3] }
0x1a56   :  { %v4740_v11 = vmul.f32 -1.442695, %v1896_v31 }
0x1a57   :  { %5829 = vpow2.f32 %v4739_v37  ;;  %v2293_v37 = vld [vmem:[#allocation17 + $0x18] sm:$0xff] }
0x1a58   :  { %5831 = vtanh.f32 %v1896_v31  ;;  %v5228_v39 = vpack.c.bf16 %v2293_v37, %v2291_v35  ;;  %v1936_v35 = vld [vmem:[#allocation3 + $0x20] sm:$0xff]  ;;  %v1938_v37 = vld [vmem:[#allocation3 + $0x30] sm:$0xff] }
0x1a5a   :  { %5229 = vmatprep.subr.bf16.mxu1 %v5228_v39  ;;  %v3461_v39 = vld [vmem:[#allocation22] sm:$0xff] }
0x1a61   :  { %v5830_v6 = vpop.eup %5829 }
0x1a62   :  { %v1900_v40 = vadd.f32 1.0, %v5830_v6  ;;  %v5832_v41 = vpop.eup %5831 }
0x1a64   :  { %5833 = vrcp.f32 %v1900_v40 }
0x1a65   :  { %5835 = vpow2.f32 %v4740_v11  ;;  %v1949_v11 = vld [vmem:[#allocation14 + $0x48] sm:$0xff] }
0x1a6e   :  { %v5834_v38 = vpop.eup %5833 }
0x1a6f   :  { %v1911_v42 = vmul.f32 %v5834_v38, %v5832_v41  ;;  %v5836_v12 = vpop.eup %5835  ;;  %v1910_v14 = vmul.f32 %v5834_v38, %v6799_v24  ;;  %v1971_v24 = vld [vmem:[#allocation16 + $0x78] sm:$0xff]  ;;  %v1941_v41 = vld [vmem:[#allocation14 + $0x8] sm:$0xff] }
0x1a70   :  { %v1907_v13 = vadd.f32 1.0, %v5836_v12  ;;  %v5192_v55 = vpack.c.bf16 %v1971_v24, %v1969_v22  ;;  %v1943_v38 = vld [vmem:[#allocation14 + $0x18] sm:$0xff]  ;;  %v5208_v24 = vpack.c.bf16 %v1955_v10, %v1953_v28 }
0x1a71   :  { %1913 = vrot.lane.b32.xlu0 %v1911_v42, %s6253_s28  ;;  %v5196_v42 = vpack.c.bf16 %v1943_v38, %v1941_v41  ;;  %v1951_v12 = vld [vmem:[#allocation14 + $0x58] sm:$0xff]  ;;  %v2592_v38 = vld [vmem:[#allocation20] sm:$0xff] }
0x1a72   :  { %5837 = vrcp.f32 %v1907_v13  ;;  %5193 = vmatprep.subr.bf16.mxu0 %v5192_v55  ;;  %v2305_v13 = vld [vmem:[#allocation17 + $0x78] sm:$0xff] }
0x1a73   :  { %5195 = vmatpush1.bf16.msra.mxu0 %v5194_v36  ;;  %v5240_v9 = vpack.c.bf16 %v2305_v13, %v2303_v7  ;;  %v3464_v22 = vld [vmem:[#allocation22 + $0x18] sm:$0xff]  ;;  %v1937_v36 = vld [vmem:[#allocation3 + $0x28] sm:$0xff]  ;;  %v6881_v7 = vpack.c.bf16 %v3471_v54, %v3469_v51  ;;  %v6888_v13 = vpack.c.bf16 %v2602_v2, %v2600_v0 }
0x1a74   :  { %5197 = vmatprep.subr.bf16.mxu0 %v5196_v42  ;;  %v6829_v55 = vpack.c.bf16 %v3464_v22, %v3462_v21  ;;  %v3468_v41 = vld [vmem:[#allocation22 + $0x38] sm:$0xff]  ;;  %v2594_v42 = vld [vmem:[#allocation20 + $0x10] sm:$0xff]  ;;  %v2248_v22 = vlaneseq }
0x1a75   :  { %v6859_v5 = vpack.c.bf16 %v2594_v42, %v2592_v38  ;;  %v1928_v10 = vld [vmem:[#allocation2 + $0x20] sm:$0xff]  ;;  %v1931_v21 = vld [vmem:[#allocation2 + $0x38] sm:$0xff] }
0x1a7c   :  { %v5838_v31 = vpop.eup %5837 }
0x1ae3   :  { %v1914_v17 = vpop.permute.xlu0 %1913 }
0x1ae4   :  { %v1916_v20 = vadd.f32 %v1914_v17, %v1910_v14  ;;  %v1948_v14 = vld [vmem:[#allocation14 + $0x40] sm:$0xff]  ;;  %v1950_v17 = vld [vmem:[#allocation14 + $0x50] sm:$0xff] }
0x1ae5   :  { %v5206_v27 = vpack.c.bf16 %v1950_v17, %v1948_v14  ;;  %v3475_v17 = vld [vmem:[#allocation22 + $0x70] sm:$0xff] }
0x1ae6   :  { %5839 = vtanh.f32 %v1916_v20  ;;  %v5204_v20 = vpack.c.bf16 %v1951_v12, %v1949_v11  ;;  %v3473_v12 = vld [vmem:[#allocation22 + $0x60] sm:$0xff] }
0x1ae7   :  { %v6898_v26 = vpack.c.bf16 %v3475_v17, %v3473_v12 }
0x1af0   :  { %v5840_v6 = vpop.eup %5839 }
0x1af1   :  { %v1918_v40 = vmul.f32 %v5840_v6, %v5838_v31  ;;  %v3463_v31 = vld [vmem:[#allocation22 + $0x10] sm:$0xff] }
0x1af2   :  { %v1939_v6 = vld [vmem:[#allocation3 + $0x38] sm:$0xff] }
0x1af3   :  { %1920 = vrot.lane.b32.xlu0 %v1918_v40, %s6253_s28  ;;  %v3466_v40 = vld [vmem:[#allocation22 + $0x28] sm:$0xff] }
0x1af4   :  { %v6857_v46 = vpack.c.bf16 %v3468_v41, %v3466_v40 }
0x1b65   :  { %v1921_v43 = vpop.permute.xlu0 %1920 }
0x1b66   :  { %1923 = vst.msk [vmem:[#allocation3] sm:$0xff] %vm195_vm0, %v1921_v43  ;;  %v6855_v43 = vpack.c.bf16 %v3463_v31, %v3461_v39 }
0x1b6d   :  { %v1932_v49 = vld [vmem:[#allocation3] sm:$0xff] }
0x1b6e   :  { %4741 = vmatmul.mubr.msk.f32.vlgmr.msra.gmra.mrb[14].mxu0 %vm195_vm0, %v1932_v49  ;;  %4757 = vmatmul.mubr.msk.f32.vlgmr.msra.gmra.mrb[18].mxu1 %vm195_vm0, %v1932_v49  ;;  %v1925_v49 = vld [vmem:[#allocation2 + $0x8] sm:$0xff] }
0x1b6f   :  { %5231 = vmatpush1.bf16.msra.mxu1 %v5230_v53  ;;  %2066 = vmatprep.mubr.f32.mxu0 %v6252_v1  ;;  %v2597_v53 = vld [vmem:[#allocation20 + $0x28] sm:$0xff] }
0x1b70   :  { %2392 = vmatprep.mubr.f32.mxu1 %v6252_v1  ;;  %5233 = vmatprep.subr.bf16.mxu1 %v5232_v48  ;;  %v2599_v48 = vld [vmem:[#allocation20 + $0x38] sm:$0xff] }
0x1b71   :  { %5199 = vmatpush1.bf16.msra.mxu0 %v5198_v50  ;;  %v6867_v50 = vpack.c.bf16 %v3467_v47, %v3465_v45  ;;  %v6869_v56 = vpack.c.bf16 %v2599_v48, %v2597_v53 }
0x1b72   :  { %4742 = vmatmul.mubr.msk.f32.gmra.mrb[16].mxu0 %vm195_vm0, %v1933_v61  ;;  %4758 = vmatmul.mubr.msk.f32.gmra.mrb[20].mxu1 %vm195_vm0, %v1933_v61  ;;  %v2601_v61 = vld [vmem:[#allocation20 + $0x48] sm:$0xff] }
0x1b73   :  { %2072 = vmatprep.mubr.f32.mxu0 %v6252_v1  ;;  %2398 = vmatprep.mubr.f32.mxu1 %v6252_v1 }
0x1b74   :  { %5235 = vmatpush1.bf16.msra.mxu1 %v5234_v63  ;;  %5201 = vmatprep.subr.bf16.mxu0 %v5200_v3  ;;  %v2603_v63 = vld [vmem:[#allocation20 + $0x58] sm:$0xff]  ;;  %v3474_v3 = vld [vmem:[#allocation22 + $0x68] sm:$0xff] }
0x1b75   :  { %5237 = vmatprep.subr.bf16.mxu1 %v5236_v4  ;;  %5203 = vmatpush1.bf16.msra.mxu0 %v5202_v32  ;;  %v3476_v4 = vld [vmem:[#allocation22 + $0x78] sm:$0xff]  ;;  %v1926_v32 = vld [vmem:[#allocation2 + $0x10] sm:$0xff]  ;;  %v6884_v11 = vpack.c.bf16 %v2603_v63, %v2601_v61 }
0x1b76   :  { %4743 = vmatmul.mubr.msk.f32.gmra.mrb[18].mxu0 %vm195_vm0, %v1934_v18  ;;  %4759 = vmatmul.mubr.msk.f32.gmra.mrb[22].mxu1 %vm195_vm0, %v1934_v18  ;;  %v6890_v14 = vpack.c.bf16 %v3476_v4, %v3474_v3  ;;  %v2605_v18 = vld [vmem:[#allocation20 + $0x68] sm:$0xff] }
0x1b77   :  { %2078 = vmatprep.mubr.f32.mxu0 %v6252_v1  ;;  %2404 = vmatprep.mubr.f32.mxu1 %v6252_v1 }
0x1b78   :  { %5239 = vmatpush1.bf16.msra.mxu1 %v5238_v19  ;;  %5205 = vmatprep.subr.bf16.mxu0 %v5204_v20  ;;  %v2607_v19 = vld [vmem:[#allocation20 + $0x78] sm:$0xff]  ;;  %v2604_v20 = vld [vmem:[#allocation20 + $0x60] sm:$0xff] }
0x1b79   :  { %5241 = vmatprep.subr.bf16.mxu1 %v5240_v9  ;;  %5207 = vmatpush1.bf16.msra.mxu0 %v5206_v27  ;;  %v6900_v9 = vpack.c.bf16 %v2607_v19, %v2605_v18  ;;  %v1927_v27 = vld [vmem:[#allocation2 + $0x18] sm:$0xff]  ;;  %v6904_v28 = vpack.c.bf16 %v2606_v23, %v2604_v20 }
0x1b7a   :  { %4744 = vmatmul.mubr.msk.f32.gmra.mrb[20].mxu0 %vm195_vm0, %v1935_v8  ;;  %4760 = vmatmul.mubr.msk.f32.gmra.mrb[24].mxu1 %vm195_vm0, %v1935_v8  ;;  %v2246_v8 = vld [vmem:[%s7327_s10] sm:$0x3] }
0x1b7b   :  { %2084 = vmatprep.mubr.f32.mxu0 %v6252_v1  ;;  %2410 = vmatprep.mubr.f32.mxu1 %v6252_v1 }
0x1b7c   :  { %5243 = vmatpush1.bf16.msra.mxu1 %v5242_v25  ;;  %5209 = vmatprep.subr.bf16.mxu0 %v5208_v24  ;;  %v2249_v25 = vshrl.u32 %v2248_v22, 7 }
0x1b7d   :  { %5211 = vmatpush1.bf16.msra.mxu0 %v5210_v29  ;;  %5373 = vmatprep.subr.bf16.mxu1 %v6829_v55 }
0x1b7e   :  { %4745 = vmatmul.mubr.msk.f32.gmra.mrb[22].mxu0 %vm195_vm0, %v1936_v35  ;;  %4761 = vmatmul.mubr.msk.f32.gmra.mrb[26].mxu1 %vm195_vm0, %v1936_v35  ;;  %v2250_v24 = vsub.s32 0, %v2249_v25 }
0x1b7f   :  { %2090 = vmatprep.mubr.f32.mxu0 %v6252_v1  ;;  %2416 = vmatprep.mubr.f32.mxu1 %v6252_v1 }
0x1b80   :  { %5245 = vmatprep.subr.bf16.mxu0 %v6835_v34  ;;  %v6954_v29 = vrot.slane %v2246_v8, %v2250_v24 }
0x1b82   :  { %4746 = vmatmul.mubr.msk.f32.gmra.mrb[24].mxu0 %vm195_vm0, %v1937_v36  ;;  %4762 = vmatmul.mubr.msk.f32.gmra.mrb[28].mxu1 %vm195_vm0, %v1937_v36 }
0x1b83   :  { %2096 = vmatprep.mubr.f32.mxu0 %v6252_v1  ;;  %2422 = vmatprep.mubr.f32.mxu1 %v6252_v1 }
0x1b86   :  { %4747 = vmatmul.mubr.msk.f32.gmra.mrb[26].mxu0 %vm195_vm0, %v1938_v37  ;;  %4763 = vmatmul.mubr.msk.f32.gmra.mrb[30].mxu1 %vm195_vm0, %v1938_v37  ;;  %v6960_v37 = vrot.slane %v2548_v30, %v2250_v24 }
0x1b87   :  { %2102 = vmatprep.mubr.f32.mxu0 %v6252_v1  ;;  %2428 = vmatprep.mubr.f32.mxu1 %v6252_v1 }
0x1b8a   :  { %4748 = vmatmul.mubr.msk.f32.gmra.mrb[28].mxu0 %vm195_vm0, %v1939_v6  ;;  %4764 = vmatmul.mubr.msk.f32.gmra.mrb[32].mxu1 %vm195_vm0, %v1939_v6  ;;  %v2254_v6 = vsub.s32 1, %v2249_v25 }
0x1b8b   :  { %2197 = vmatprep.mubr.f32.mxu0 %v6252_v1  ;;  %2499 = vmatprep.mubr.f32.mxu1 %v6252_v1 }
0x1b8c   :  { %v6963_v42 = vrot.slane %v2246_v8, %v2254_v6  ;;  %v6966_v45 = vrot.slane %v2548_v30, %v2254_v6 }
0x1b8e   :  { %4749 = vmatmul.mubr.msk.f32.vlgmr.msra.gmra.mrb[14].mxu0 %vm195_vm0, %v1924_v44  ;;  %4765 = vmatmul.mubr.msk.f32.vlgmr.msra.gmra.mrb[18].mxu1 %vm195_vm0, %v1924_v44 }
0x1b8f   :  { %5375 = vmatpush1.bf16.msra.mxu1 %v6855_v43  ;;  %2203 = vmatprep.mubr.f32.mxu0 %v6252_v1 }
0x1b90   :  { %2505 = vmatprep.mubr.f32.mxu1 %v6252_v1  ;;  %5377 = vmatprep.subr.bf16.mxu1 %v6857_v46 }
0x1b91   :  { %5247 = vmatpush1.bf16.msra.mxu0 %v6859_v5 }
0x1b92   :  { %4750 = vmatmul.mubr.msk.f32.gmra.mrb[16].mxu0 %vm195_vm0, %v1925_v49  ;;  %4766 = vmatmul.mubr.msk.f32.gmra.mrb[20].mxu1 %vm195_vm0, %v1925_v49 }
0x1b93   :  { %2209 = vmatprep.mubr.f32.mxu0 %v6252_v1  ;;  %2511 = vmatprep.mubr.f32.mxu1 %v6252_v1 }
0x1b94   :  { %5379 = vmatpush1.bf16.msra.mxu1 %v6867_v50  ;;  %5249 = vmatprep.subr.bf16.mxu0 %v6869_v56 }
0x1b95   :  { %5381 = vmatprep.subr.bf16.mxu1 %v6872_v57  ;;  %5251 = vmatpush1.bf16.msra.mxu0 %v6874_v60 }
0x1b96   :  { %4751 = vmatmul.mubr.msk.f32.gmra.mrb[18].mxu0 %vm195_vm0, %v1926_v32  ;;  %4767 = vmatmul.mubr.msk.f32.gmra.mrb[22].mxu1 %vm195_vm0, %v1926_v32 }
0x1b97   :  { %2215 = vmatprep.mubr.f32.mxu0 %v6252_v1  ;;  %2517 = vmatprep.mubr.f32.mxu1 %v6252_v1 }
0x1b98   :  { %5383 = vmatpush1.bf16.msra.mxu1 %v6881_v7  ;;  %5253 = vmatprep.subr.bf16.mxu0 %v6884_v11 }
0x1b99   :  { %5255 = vmatpush1.bf16.msra.mxu0 %v6888_v13  ;;  %5385 = vmatprep.subr.bf16.mxu1 %v6890_v14 }
0x1b9a   :  { %4752 = vmatmul.mubr.msk.f32.gmra.mrb[20].mxu0 %vm195_vm0, %v1927_v27  ;;  %4768 = vmatmul.mubr.msk.f32.gmra.mrb[24].mxu1 %vm195_vm0, %v1927_v27 }
0x1b9b   :  { %2221 = vmatprep.mubr.f32.mxu0 %v6252_v1  ;;  %2523 = vmatprep.mubr.f32.mxu1 %v6252_v1 }
0x1b9c   :  { %5387 = vmatpush1.bf16.msra.mxu1 %v6898_v26  ;;  %5257 = vmatprep.subr.bf16.mxu0 %v6900_v9 }
0x1b9d   :  { %5259 = vmatpush1.bf16.msra.mxu0 %v6904_v28  ;;  %5389 = vmatprep.subr.bf16.mxu1 %v6829_v55 }
0x1b9e   :  { %4753 = vmatmul.mubr.msk.f32.gmra.mrb[22].mxu0 %vm195_vm0, %v1928_v10  ;;  %4769 = vmatmul.mubr.msk.f32.gmra.mrb[26].mxu1 %vm195_vm0, %v1928_v10 }
0x1b9f   :  { %2227 = vmatprep.mubr.f32.mxu0 %v6252_v1  ;;  %2529 = vmatprep.mubr.f32.mxu1 %v6252_v1 }
0x1ba0   :  { %5261 = vmatprep.subr.bf16.mxu0 %v6835_v34 }
0x1ba2   :  { %4754 = vmatmul.mubr.msk.f32.gmra.mrb[24].mxu0 %vm195_vm0, %v1929_v15  ;;  %4770 = vmatmul.mubr.msk.f32.gmra.mrb[28].mxu1 %vm195_vm0, %v1929_v15 }
0x1ba3   :  { %2233 = vmatprep.mubr.f32.mxu0 %v6252_v1  ;;  %2535 = vmatprep.mubr.f32.mxu1 %v6252_v1 }
0x1ba6   :  { %4755 = vmatmul.mubr.msk.f32.gmra.mrb[26].mxu0 %vm195_vm0, %v1930_v16  ;;  %4771 = vmatmul.mubr.msk.f32.gmra.mrb[30].mxu1 %vm195_vm0, %v1930_v16 }
0x1ba7   :  { %2239 = vmatprep.mubr.f32.mxu0 %v6252_v1  ;;  %2541 = vmatprep.mubr.f32.mxu1 %v6252_v1 }
0x1baa   :  { %4756 = vmatmul.mubr.msk.f32.gmra.mrb[28].mxu0 %vm195_vm0, %v1931_v21  ;;  %4772 = vmatmul.mubr.msk.f32.gmra.mrb[32].mxu1 %vm195_vm0, %v1931_v21 }
0x1bab   :  { %2676 = vmatprep.mubr.f32.mxu0 %v6252_v1  ;;  %3545 = vmatprep.mubr.f32.mxu1 %v6252_v1 }
0x1bae   :  { %2677 = vmatmul.mubr.f32.vlgmr.msra.gmra.mrb[14].mxu0 %v6252_v1 }
0x1baf   :  { %5263 = vmatpush1.bf16.msra.mxu0 %v6859_v5  ;;  %2782 = vmatprep.mubr.f32.mxu0 %v6252_v1 }
0x1bb0   :  { %5265 = vmatprep.subr.bf16.mxu0 %v6869_v56 }
0x1bb2   :  { %3546 = vmatmul.mubr.f32.vlgmr.msra.gmra.mrb[32].mxu1 %v6252_v1 }
0x1bb3   :  { %5267 = vmatpush1.bf16.msra.mxu0 %v6874_v60  ;;  %5391 = vmatpush1.bf16.msra.mxu1 %v6855_v43 }
0x1bb4   :  { %5269 = vmatprep.subr.bf16.mxu0 %v6884_v11  ;;  %5393 = vmatprep.subr.bf16.mxu1 %v6857_v46 }
0x1bb5   :  { %3652 = vmatprep.mubr.f32.mxu1 %v6252_v1 }
0x1bb7   :  { %5271 = vmatpush1.bf16.msra.mxu0 %v6888_v13  ;;  %5395 = vmatpush1.bf16.msra.mxu1 %v6867_v50 }
0x1bb8   :  { %5273 = vmatprep.subr.bf16.mxu0 %v6900_v9  ;;  %5397 = vmatprep.subr.bf16.mxu1 %v6872_v57 }
0x1bbb   :  { %5275 = vmatpush1.bf16.msra.mxu0 %v6904_v28  ;;  %5399 = vmatpush1.bf16.msra.mxu1 %v6881_v7 }
0x1bbc   :  { %5401 = vmatprep.subr.bf16.mxu1 %v6890_v14  ;;  %5277 = vmatprep.subr.bf16.mxu0 %v6835_v34 }
0x1bbf   :  { %5403 = vmatpush1.bf16.msra.mxu1 %v6898_v26 }
0x1bc0   :  { %5405 = vmatprep.subr.bf16.mxu1 %v6829_v55 }
0x1c81   :  { %v2678_v33 = vpop.f32.mrb[14].mxu0 }
0x1c82   :  { %v5532_v35 = vadd.f32 %v2678_v33, %v6954_v29  ;;  %v2680_v36 = vpop.f32.mrb[15].mxu0 }
0x1c83   :  { %v5533_v44 = vadd.f32 %v2680_v36, %v6963_v42 }
0x1c84   :  { %v4773_v39 = vmul.f32 -1.442695, %v5532_v35 }
0x1c85   :  { %v3547_v31 = vpop.f32.mrb[32].mxu1  ;;  %v4774_v63 = vmul.f32 -1.442695, %v5533_v44 }
0x1c86   :  { %5841 = vpow2.f32 %v4773_v39  ;;  %v5562_v40 = vadd.f32 %v3547_v31, %v6960_v37  ;;  %v3549_v41 = vpop.f32.mrb[33].mxu1 }
0x1c87   :  { %v5563_v53 = vadd.f32 %v3549_v41, %v6966_v45 }
0x1c88   :  { %v4796_v38 = vmul.f32 -1.442695, %v5562_v40 }
0x1c89   :  { %v4797_v0 = vmul.f32 -1.442695, %v5563_v53 }
0x1c8a   :  { %5843 = vpow2.f32 %v4796_v38 }
0x1c8b   :  { %5845 = vtanh.f32 %v5533_v44 }
0x1c90   :  { %v5842_v47 = vpop.eup %5841 }
0x1c91   :  { %v2688_v52 = vadd.f32 1.0, %v5842_v47 }
0x1c93   :  { %5847 = vrcp.f32 %v2688_v52 }
0x1c94   :  { %v5844_v48 = vpop.eup %5843  ;;  %5849 = vtanh.f32 %v5563_v53 }
0x1c95   :  { %v3557_v58 = vadd.f32 1.0, %v5844_v48  ;;  %v5846_v59 = vpop.eup %5845 }
0x1c97   :  { %5851 = vrcp.f32 %v3557_v58 }
0x1c98   :  { %5853 = vpow2.f32 %v4774_v63 }
0x1c99   :  { %5855 = vpow2.f32 %v4797_v0 }
0x1c9d   :  { %v5848_v62 = vpop.eup %5847 }
0x1c9e   :  { %v2699_v49 = vmul.f32 %v5848_v62, %v5846_v59  ;;  %v5850_v51 = vpop.eup %5849  ;;  %v2698_v32 = vmul.f32 0.0, %v5848_v62 }
0x1ca0   :  { %2701 = vrot.lane.b32.xlu1 %v2699_v49, %s6253_s28 }
0x1ca1   :  { %v5852_v54 = vpop.eup %5851 }
0x1ca2   :  { %v3568_v61 = vmul.f32 %v5852_v54, %v5850_v51  ;;  %v5854_v2 = vpop.eup %5853  ;;  %v3567_v19 = vmul.f32 0.0, %v5852_v54 }
0x1ca3   :  { %v2695_v3 = vadd.f32 1.0, %v5854_v2  ;;  %v5856_v4 = vpop.eup %5855 }
0x1ca4   :  { %3570 = vrot.lane.b32.xlu0 %v3568_v61, %s6253_s28  ;;  %v3564_v18 = vadd.f32 1.0, %v5856_v4 }
0x1ca5   :  { %5857 = vrcp.f32 %v2695_v3 }
0x1caf   :  { %v5858_v27 = vpop.eup %5857 }
0x1d12   :  { %v2702_v12 = vpop.permute.xlu1 %2701 }
0x1d13   :  { %v6971_v17 = vadd.f32 %v2702_v12, %v2698_v32 }
0x1d15   :  { %5859 = vtanh.f32 %v6971_v17 }
0x1d16   :  { %v3571_v20 = vpop.permute.xlu0 %3570  ;;  %5861 = vrcp.f32 %v3564_v18 }
0x1d17   :  { %v6974_v23 = vadd.f32 %v3571_v20, %v3567_v19 }
0x1d19   :  { %5863 = vtanh.f32 %v6974_v23 }
0x1d1f   :  { %v5860_v10 = vpop.eup %5859 }
0x1d20   :  { %v2706_v15 = vmul.f32 %v5860_v10, %v5858_v27  ;;  %v5862_v16 = vpop.eup %5861 }
0x1d22   :  { %2708 = vrot.lane.b32.xlu1 %v2706_v15, %s6253_s28 }
0x1d23   :  { %v5864_v21 = vpop.eup %5863 }
0x1d24   :  { %v3575_v22 = vmul.f32 %v5864_v21, %v5862_v16 }
0x1d26   :  { %3577 = vrot.lane.b32.xlu0 %v3575_v22, %s6253_s28 }
0x1d94   :  { %v2709_v25 = vpop.permute.xlu1 %2708 }
0x1d95   :  { %2711 = vst.msk [vmem:[#allocation4] sm:$0xff] %vm195_vm0, %v2709_v25  ;;  %4775 = vmatmul.mubr.msk.f32.vlgmr.msra.gmra.mrb[16].mxu0 %vm195_vm0, %v2709_v25 }
0x1d96   :  { %5279 = vmatpush1.bf16.msra.mxu0 %v6859_v5  ;;  %2889 = vmatprep.mubr.f32.mxu0 %v6252_v1 }
0x1d97   :  { %5281 = vmatprep.subr.bf16.mxu0 %v6869_v56 }
0x1d98   :  { %v3578_v24 = vpop.permute.xlu0 %3577 }
0x1d99   :  { %3581 = vst.msk [vmem:[#allocation5 + $0x38] sm:$0xff] %vm195_vm0, %v3578_v24  ;;  %4798 = vmatmul.mubr.msk.f32.vlgmr.msra.gmra.mrb[30].mxu1 %vm195_vm0, %v3578_v24 }
0x1d9a   :  { %5283 = vmatpush1.bf16.msra.mxu0 %v6874_v60  ;;  %5407 = vmatpush1.bf16.msra.mxu1 %v6855_v43 }
0x1d9b   :  { %5285 = vmatprep.subr.bf16.mxu0 %v6884_v11  ;;  %5409 = vmatprep.subr.bf16.mxu1 %v6857_v46 }
0x1d9c   :  { %3759 = vmatprep.mubr.f32.mxu1 %v6252_v1 }
0x1d9e   :  { %5287 = vmatpush1.bf16.msra.mxu0 %v6888_v13  ;;  %5411 = vmatpush1.bf16.msra.mxu1 %v6867_v50 }
0x1d9f   :  { %5289 = vmatprep.subr.bf16.mxu0 %v6900_v9  ;;  %5413 = vmatprep.subr.bf16.mxu1 %v6872_v57 }
0x1da2   :  { %5291 = vmatpush1.bf16.msra.mxu0 %v6904_v28  ;;  %5415 = vmatpush1.bf16.msra.mxu1 %v6881_v7 }
0x1da3   :  { %5417 = vmatprep.subr.bf16.mxu1 %v6890_v14  ;;  %5293 = vmatprep.subr.bf16.mxu0 %v6835_v34 }
0x1da6   :  { %5419 = vmatpush1.bf16.msra.mxu1 %v6898_v26 }
0x1da7   :  { %5421 = vmatprep.subr.bf16.mxu1 %v6829_v55 }
0x1e68   :  { %v2784_v8 = vpop.f32.mrb[16].mxu0 }
0x1e69   :  { %v5534_v30 = vadd.f32 %v2784_v8, %v6954_v29  ;;  %v2786_v33 = vpop.f32.mrb[17].mxu0 }
0x1e6a   :  { %v5535_v40 = vadd.f32 %v2786_v33, %v6963_v42 }
0x1e6b   :  { %v4776_v35 = vmul.f32 -1.442695, %v5534_v30 }
0x1e6c   :  { %v3654_v36 = vpop.f32.mrb[30].mxu1  ;;  %v4777_v51 = vmul.f32 -1.442695, %v5535_v40 }
0x1e6d   :  { %5865 = vpow2.f32 %v4776_v35  ;;  %v5560_v39 = vadd.f32 %v3654_v36, %v6960_v37  ;;  %v3656_v31 = vpop.f32.mrb[31].mxu1 }
0x1e6e   :  { %v5561_v44 = vadd.f32 %v3656_v31, %v6966_v45 }
0x1e6f   :  { %v4799_v6 = vmul.f32 -1.442695, %v5560_v39 }
0x1e70   :  { %v4800_v54 = vmul.f32 -1.442695, %v5561_v44 }
0x1e71   :  { %5867 = vpow2.f32 %v4799_v6 }
0x1e72   :  { %5869 = vtanh.f32 %v5535_v40 }
0x1e77   :  { %v5866_v41 = vpop.eup %5865 }
0x1e78   :  { %v2794_v38 = vadd.f32 1.0, %v5866_v41 }
0x1e7a   :  { %5871 = vrcp.f32 %v2794_v38 }
0x1e7b   :  { %v5868_v47 = vpop.eup %5867  ;;  %5873 = vtanh.f32 %v5561_v44 }
0x1e7c   :  { %v3664_v52 = vadd.f32 1.0, %v5868_v47  ;;  %v5870_v53 = vpop.eup %5869 }
0x1e7e   :  { %5875 = vrcp.f32 %v3664_v52 }
0x1e7f   :  { %5877 = vpow2.f32 %v4777_v51 }
0x1e80   :  { %5879 = vpow2.f32 %v4800_v54 }
0x1e84   :  { %v5872_v48 = vpop.eup %5871 }
0x1e85   :  { %v2805_v58 = vmul.f32 %v5872_v48, %v5870_v53  ;;  %v5874_v59 = vpop.eup %5873  ;;  %v2804_v2 = vmul.f32 %v5872_v48, %v6971_v17 }
0x1e87   :  { %2807 = vrot.lane.b32.xlu1 %v2805_v58, %s6253_s28 }
0x1e88   :  { %v5876_v62 = vpop.eup %5875 }
0x1e89   :  { %v3675_v49 = vmul.f32 %v5876_v62, %v5874_v59  ;;  %v5878_v61 = vpop.eup %5877  ;;  %v3674_v12 = vmul.f32 %v5876_v62, %v6974_v23 }
0x1e8a   :  { %v2801_v63 = vadd.f32 1.0, %v5878_v61  ;;  %v5880_v0 = vpop.eup %5879 }
0x1e8b   :  { %3677 = vrot.lane.b32.xlu0 %v3675_v49, %s6253_s28  ;;  %v3671_v32 = vadd.f32 1.0, %v5880_v0 }
0x1e8c   :  { %5881 = vrcp.f32 %v2801_v63 }
0x1e96   :  { %v5882_v20 = vpop.eup %5881 }
0x1ef9   :  { %v2808_v3 = vpop.permute.xlu1 %2807 }
0x1efa   :  { %v7008_v4 = vadd.f32 %v2808_v3, %v2804_v2 }
0x1efc   :  { %5883 = vtanh.f32 %v7008_v4 }
0x1efd   :  { %v3678_v18 = vpop.permute.xlu0 %3677  ;;  %5885 = vrcp.f32 %v3671_v32 }
0x1efe   :  { %v7012_v19 = vadd.f32 %v3678_v18, %v3674_v12 }
0x1f00   :  { %5887 = vtanh.f32 %v7012_v19 }
0x1f06   :  { %v5884_v27 = vpop.eup %5883 }
0x1f07   :  { %v2812_v10 = vmul.f32 %v5884_v27, %v5882_v20  ;;  %v5886_v15 = vpop.eup %5885 }
0x1f09   :  { %2814 = vrot.lane.b32.xlu1 %v2812_v10, %s6253_s28 }
0x1f0a   :  { %v5888_v17 = vpop.eup %5887 }
0x1f0b   :  { %v3682_v16 = vmul.f32 %v5888_v17, %v5886_v15 }
0x1f0d   :  { %3684 = vrot.lane.b32.xlu0 %v3682_v16, %s6253_s28 }
0x1f7b   :  { %v2815_v21 = vpop.permute.xlu1 %2814 }
0x1f7c   :  { %2818 = vst.msk [vmem:[#allocation4 + $0x8] sm:$0xff] %vm195_vm0, %v2815_v21  ;;  %4778 = vmatmul.mubr.msk.f32.vlgmr.msra.gmra.mrb[18].mxu0 %vm195_vm0, %v2815_v21 }
0x1f7d   :  { %5295 = vmatpush1.bf16.msra.mxu0 %v6859_v5  ;;  %2996 = vmatprep.mubr.f32.mxu0 %v6252_v1 }
0x1f7e   :  { %5297 = vmatprep.subr.bf16.mxu0 %v6869_v56 }
0x1f7f   :  { %v3685_v23 = vpop.permute.xlu0 %3684 }
0x1f80   :  { %3688 = vst.msk [vmem:[#allocation5 + $0x30] sm:$0xff] %vm195_vm0, %v3685_v23  ;;  %4801 = vmatmul.mubr.msk.f32.vlgmr.msra.gmra.mrb[28].mxu1 %vm195_vm0, %v3685_v23 }
0x1f81   :  { %5299 = vmatpush1.bf16.msra.mxu0 %v6874_v60  ;;  %5423 = vmatpush1.bf16.msra.mxu1 %v6855_v43 }
0x1f82   :  { %5301 = vmatprep.subr.bf16.mxu0 %v6884_v11  ;;  %5425 = vmatprep.subr.bf16.mxu1 %v6857_v46 }
0x1f83   :  { %3866 = vmatprep.mubr.f32.mxu1 %v6252_v1 }
0x1f85   :  { %5303 = vmatpush1.bf16.msra.mxu0 %v6888_v13  ;;  %5427 = vmatpush1.bf16.msra.mxu1 %v6867_v50 }
0x1f86   :  { %5305 = vmatprep.subr.bf16.mxu0 %v6900_v9  ;;  %5429 = vmatprep.subr.bf16.mxu1 %v6872_v57 }
0x1f89   :  { %5307 = vmatpush1.bf16.msra.mxu0 %v6904_v28  ;;  %5431 = vmatpush1.bf16.msra.mxu1 %v6881_v7 }
0x1f8a   :  { %5433 = vmatprep.subr.bf16.mxu1 %v6890_v14  ;;  %5309 = vmatprep.subr.bf16.mxu0 %v6835_v34 }
0x1f8d   :  { %5435 = vmatpush1.bf16.msra.mxu1 %v6898_v26 }
0x1f8e   :  { %5437 = vmatprep.subr.bf16.mxu1 %v6829_v55 }
0x204f   :  { %v2891_v22 = vpop.f32.mrb[18].mxu0 }
0x2050   :  { %v5536_v25 = vadd.f32 %v2891_v22, %v6954_v29  ;;  %v2893_v24 = vpop.f32.mrb[19].mxu0 }
0x2051   :  { %v5537_v39 = vadd.f32 %v2893_v24, %v6963_v42 }
0x2052   :  { %v4779_v8 = vmul.f32 -1.442695, %v5536_v25 }
0x2053   :  { %v3761_v30 = vpop.f32.mrb[28].mxu1  ;;  %v4780_v59 = vmul.f32 -1.442695, %v5537_v39 }
0x2054   :  { %5889 = vpow2.f32 %v4779_v8  ;;  %v5558_v33 = vadd.f32 %v3761_v30, %v6960_v37  ;;  %v3763_v35 = vpop.f32.mrb[29].mxu1 }
0x2055   :  { %v5559_v40 = vadd.f32 %v3763_v35, %v6966_v45 }
0x2056   :  { %v4802_v36 = vmul.f32 -1.442695, %v5558_v33 }
0x2057   :  { %v4803_v62 = vmul.f32 -1.442695, %v5559_v40 }
0x2058   :  { %5891 = vpow2.f32 %v4802_v36 }
0x2059   :  { %5893 = vtanh.f32 %v5537_v39 }
0x205e   :  { %v5890_v31 = vpop.eup %5889 }
0x205f   :  { %v2901_v6 = vadd.f32 1.0, %v5890_v31 }
0x2061   :  { %5895 = vrcp.f32 %v2901_v6 }
0x2062   :  { %v5892_v41 = vpop.eup %5891  ;;  %5897 = vtanh.f32 %v5559_v40 }
0x2063   :  { %v3771_v38 = vadd.f32 1.0, %v5892_v41  ;;  %v5894_v44 = vpop.eup %5893 }
0x2065   :  { %5899 = vrcp.f32 %v3771_v38 }
0x2066   :  { %5901 = vpow2.f32 %v4780_v59 }
0x2067   :  { %5903 = vpow2.f32 %v4803_v62 }
0x206b   :  { %v5896_v47 = vpop.eup %5895 }
0x206c   :  { %v2912_v52 = vmul.f32 %v5896_v47, %v5894_v44  ;;  %v5898_v53 = vpop.eup %5897  ;;  %v2911_v61 = vmul.f32 %v5896_v47, %v7008_v4 }
0x206e   :  { %2914 = vrot.lane.b32.xlu1 %v2912_v52, %s6253_s28 }
0x206f   :  { %v5900_v48 = vpop.eup %5899 }
0x2070   :  { %v3782_v58 = vmul.f32 %v5900_v48, %v5898_v53  ;;  %v5902_v49 = vpop.eup %5901  ;;  %v3781_v3 = vmul.f32 %v5900_v48, %v7012_v19 }
0x2071   :  { %v2908_v51 = vadd.f32 1.0, %v5902_v49  ;;  %v5904_v54 = vpop.eup %5903 }
0x2072   :  { %3784 = vrot.lane.b32.xlu0 %v3782_v58, %s6253_s28  ;;  %v3778_v2 = vadd.f32 1.0, %v5904_v54 }
0x2073   :  { %5905 = vrcp.f32 %v2908_v51 }
0x207d   :  { %v5906_v18 = vpop.eup %5905 }
0x20e0   :  { %v2915_v63 = vpop.permute.xlu1 %2914 }
0x20e1   :  { %v7046_v0 = vadd.f32 %v2915_v63, %v2911_v61 }
0x20e3   :  { %5907 = vtanh.f32 %v7046_v0 }
0x20e4   :  { %v3785_v32 = vpop.permute.xlu0 %3784  ;;  %5909 = vrcp.f32 %v3778_v2 }
0x20e5   :  { %v7050_v12 = vadd.f32 %v3785_v32, %v3781_v3 }
0x20e7   :  { %5911 = vtanh.f32 %v7050_v12 }
0x20ed   :  { %v5908_v20 = vpop.eup %5907 }
0x20ee   :  { %v2919_v27 = vmul.f32 %v5908_v20, %v5906_v18  ;;  %v5910_v10 = vpop.eup %5909 }
0x20f0   :  { %2921 = vrot.lane.b32.xlu1 %v2919_v27, %s6253_s28 }
0x20f1   :  { %v5912_v4 = vpop.eup %5911 }
0x20f2   :  { %v3789_v15 = vmul.f32 %v5912_v4, %v5910_v10 }
0x20f4   :  { %3791 = vrot.lane.b32.xlu0 %v3789_v15, %s6253_s28 }
0x2162   :  { %v2922_v17 = vpop.permute.xlu1 %2921 }
0x2163   :  { %2925 = vst.msk [vmem:[#allocation4 + $0x10] sm:$0xff] %vm195_vm0, %v2922_v17  ;;  %4781 = vmatmul.mubr.msk.f32.vlgmr.msra.gmra.mrb[20].mxu0 %vm195_vm0, %v2922_v17 }
0x2164   :  { %5311 = vmatpush1.bf16.msra.mxu0 %v6859_v5  ;;  %3103 = vmatprep.mubr.f32.mxu0 %v6252_v1 }
0x2165   :  { %5313 = vmatprep.subr.bf16.mxu0 %v6869_v56 }
0x2166   :  { %v3792_v19 = vpop.permute.xlu0 %3791 }
0x2167   :  { %3795 = vst.msk [vmem:[#allocation5 + $0x28] sm:$0xff] %vm195_vm0, %v3792_v19  ;;  %4804 = vmatmul.mubr.msk.f32.vlgmr.msra.gmra.mrb[26].mxu1 %vm195_vm0, %v3792_v19 }
0x2168   :  { %5315 = vmatpush1.bf16.msra.mxu0 %v6874_v60  ;;  %5439 = vmatpush1.bf16.msra.mxu1 %v6855_v43 }
0x2169   :  { %5317 = vmatprep.subr.bf16.mxu0 %v6884_v11  ;;  %5441 = vmatprep.subr.bf16.mxu1 %v6857_v46 }
0x216a   :  { %3973 = vmatprep.mubr.f32.mxu1 %v6252_v1 }
0x216c   :  { %5319 = vmatpush1.bf16.msra.mxu0 %v6888_v13  ;;  %5443 = vmatpush1.bf16.msra.mxu1 %v6867_v50 }
0x216d   :  { %5321 = vmatprep.subr.bf16.mxu0 %v6900_v9  ;;  %5445 = vmatprep.subr.bf16.mxu1 %v6872_v57 }
0x2170   :  { %5323 = vmatpush1.bf16.msra.mxu0 %v6904_v28  ;;  %5447 = vmatpush1.bf16.msra.mxu1 %v6881_v7 }
0x2171   :  { %5449 = vmatprep.subr.bf16.mxu1 %v6890_v14  ;;  %5325 = vmatprep.subr.bf16.mxu0 %v6835_v34 }
0x2174   :  { %5451 = vmatpush1.bf16.msra.mxu1 %v6898_v26 }
0x2175   :  { %5453 = vmatprep.subr.bf16.mxu1 %v6829_v55 }
0x2236   :  { %v2998_v16 = vpop.f32.mrb[20].mxu0 }
0x2237   :  { %v5538_v21 = vadd.f32 %v2998_v16, %v6954_v29  ;;  %v3000_v23 = vpop.f32.mrb[21].mxu0 }
0x2238   :  { %v5539_v33 = vadd.f32 %v3000_v23, %v6963_v42 }
0x2239   :  { %v4782_v22 = vmul.f32 -1.442695, %v5538_v21 }
0x223a   :  { %v3868_v25 = vpop.f32.mrb[26].mxu1  ;;  %v4783_v53 = vmul.f32 -1.442695, %v5539_v33 }
0x223b   :  { %5913 = vpow2.f32 %v4782_v22  ;;  %v5556_v24 = vadd.f32 %v3868_v25, %v6960_v37  ;;  %v3870_v8 = vpop.f32.mrb[27].mxu1 }
0x223c   :  { %v5557_v39 = vadd.f32 %v3870_v8, %v6966_v45 }
0x223d   :  { %v4805_v30 = vmul.f32 -1.442695, %v5556_v24 }
0x223e   :  { %v4806_v48 = vmul.f32 -1.442695, %v5557_v39 }
0x223f   :  { %5915 = vpow2.f32 %v4805_v30 }
0x2240   :  { %5917 = vtanh.f32 %v5539_v33 }
0x2245   :  { %v5914_v35 = vpop.eup %5913 }
0x2246   :  { %v3008_v36 = vadd.f32 1.0, %v5914_v35 }
0x2248   :  { %5919 = vrcp.f32 %v3008_v36 }
0x2249   :  { %v5916_v31 = vpop.eup %5915  ;;  %5921 = vtanh.f32 %v5557_v39 }
0x224a   :  { %v3878_v6 = vadd.f32 1.0, %v5916_v31  ;;  %v5918_v40 = vpop.eup %5917 }
0x224c   :  { %5923 = vrcp.f32 %v3878_v6 }
0x224d   :  { %5925 = vpow2.f32 %v4783_v53 }
0x224e   :  { %5927 = vpow2.f32 %v4806_v48 }
0x2252   :  { %v5920_v41 = vpop.eup %5919 }
0x2253   :  { %v3019_v38 = vmul.f32 %v5920_v41, %v5918_v40  ;;  %v5922_v44 = vpop.eup %5921  ;;  %v3018_v49 = vmul.f32 %v5920_v41, %v7046_v0 }
0x2255   :  { %3021 = vrot.lane.b32.xlu1 %v3019_v38, %s6253_s28 }
0x2256   :  { %v5924_v47 = vpop.eup %5923 }
0x2257   :  { %v3889_v52 = vmul.f32 %v5924_v47, %v5922_v44  ;;  %v5926_v58 = vpop.eup %5925  ;;  %v3888_v63 = vmul.f32 %v5924_v47, %v7050_v12 }
0x2258   :  { %v3015_v59 = vadd.f32 1.0, %v5926_v58  ;;  %v5928_v62 = vpop.eup %5927 }
0x2259   :  { %3891 = vrot.lane.b32.xlu0 %v3889_v52, %s6253_s28  ;;  %v3885_v61 = vadd.f32 1.0, %v5928_v62 }
0x225a   :  { %5929 = vrcp.f32 %v3015_v59 }
0x2264   :  { %v5930_v32 = vpop.eup %5929 }
0x22c7   :  { %v3022_v51 = vpop.permute.xlu1 %3021 }
0x22c8   :  { %v7084_v54 = vadd.f32 %v3022_v51, %v3018_v49 }
0x22ca   :  { %5931 = vtanh.f32 %v7084_v54 }
0x22cb   :  { %v3892_v2 = vpop.permute.xlu0 %3891  ;;  %5933 = vrcp.f32 %v3885_v61 }
0x22cc   :  { %v7088_v3 = vadd.f32 %v3892_v2, %v3888_v63 }
0x22ce   :  { %5935 = vtanh.f32 %v7088_v3 }
0x22d4   :  { %v5932_v18 = vpop.eup %5931 }
0x22d5   :  { %v3026_v20 = vmul.f32 %v5932_v18, %v5930_v32  ;;  %v5934_v27 = vpop.eup %5933 }
0x22d7   :  { %3028 = vrot.lane.b32.xlu1 %v3026_v20, %s6253_s28 }
0x22d8   :  { %v5936_v0 = vpop.eup %5935 }
0x22d9   :  { %v3896_v10 = vmul.f32 %v5936_v0, %v5934_v27 }
0x22db   :  { %3898 = vrot.lane.b32.xlu0 %v3896_v10, %s6253_s28 }
0x2349   :  { %v3029_v4 = vpop.permute.xlu1 %3028 }
0x234a   :  { %3032 = vst.msk [vmem:[#allocation4 + $0x18] sm:$0xff] %vm195_vm0, %v3029_v4  ;;  %4784 = vmatmul.mubr.msk.f32.vlgmr.msra.gmra.mrb[22].mxu0 %vm195_vm0, %v3029_v4 }
0x234b   :  { %5327 = vmatpush1.bf16.msra.mxu0 %v6859_v5  ;;  %3210 = vmatprep.mubr.f32.mxu0 %v6252_v1 }
0x234c   :  { %5329 = vmatprep.subr.bf16.mxu0 %v6869_v56 }
0x234d   :  { %v3899_v12 = vpop.permute.xlu0 %3898 }
0x234e   :  { %3902 = vst.msk [vmem:[#allocation5 + $0x20] sm:$0xff] %vm195_vm0, %v3899_v12  ;;  %4807 = vmatmul.mubr.msk.f32.vlgmr.msra.gmra.mrb[24].mxu1 %vm195_vm0, %v3899_v12 }
0x234f   :  { %5331 = vmatpush1.bf16.msra.mxu0 %v6874_v60  ;;  %5455 = vmatpush1.bf16.msra.mxu1 %v6855_v43 }
0x2350   :  { %5333 = vmatprep.subr.bf16.mxu0 %v6884_v11  ;;  %5457 = vmatprep.subr.bf16.mxu1 %v6857_v46 }
0x2351   :  { %4080 = vmatprep.mubr.f32.mxu1 %v6252_v1 }
0x2353   :  { %5335 = vmatpush1.bf16.msra.mxu0 %v6888_v13  ;;  %5459 = vmatpush1.bf16.msra.mxu1 %v6867_v50 }
0x2354   :  { %5337 = vmatprep.subr.bf16.mxu0 %v6900_v9  ;;  %5461 = vmatprep.subr.bf16.mxu1 %v6872_v57 }
0x2357   :  { %5339 = vmatpush1.bf16.msra.mxu0 %v6904_v28  ;;  %5463 = vmatpush1.bf16.msra.mxu1 %v6881_v7 }
0x2358   :  { %5465 = vmatprep.subr.bf16.mxu1 %v6890_v14  ;;  %5341 = vmatprep.subr.bf16.mxu0 %v6835_v34 }
0x235b   :  { %5467 = vmatpush1.bf16.msra.mxu1 %v6898_v26 }
0x235c   :  { %5469 = vmatprep.subr.bf16.mxu1 %v6829_v55 }
0x241d   :  { %v3105_v15 = vpop.f32.mrb[22].mxu0 }
0x241e   :  { %v5540_v17 = vadd.f32 %v3105_v15, %v6954_v29  ;;  %v3107_v19 = vpop.f32.mrb[23].mxu0 }
0x241f   :  { %v5541_v24 = vadd.f32 %v3107_v19, %v6963_v42 }
0x2420   :  { %v4785_v16 = vmul.f32 -1.442695, %v5540_v17 }
0x2421   :  { %v3975_v21 = vpop.f32.mrb[24].mxu1  ;;  %v4786_v44 = vmul.f32 -1.442695, %v5541_v24 }
0x2422   :  { %5937 = vpow2.f32 %v4785_v16  ;;  %v5554_v23 = vadd.f32 %v3975_v21, %v6960_v37  ;;  %v3977_v22 = vpop.f32.mrb[25].mxu1 }
0x2423   :  { %v5555_v33 = vadd.f32 %v3977_v22, %v6966_v45 }
0x2424   :  { %v4808_v25 = vmul.f32 -1.442695, %v5554_v23 }
0x2425   :  { %v4809_v47 = vmul.f32 -1.442695, %v5555_v33 }
0x2426   :  { %5939 = vpow2.f32 %v4808_v25 }
0x2427   :  { %5941 = vtanh.f32 %v5541_v24 }
0x242c   :  { %v5938_v8 = vpop.eup %5937 }
0x242d   :  { %v3115_v30 = vadd.f32 1.0, %v5938_v8 }
0x242f   :  { %5943 = vrcp.f32 %v3115_v30 }
0x2430   :  { %v5940_v35 = vpop.eup %5939  ;;  %5945 = vtanh.f32 %v5555_v33 }
0x2431   :  { %v3985_v36 = vadd.f32 1.0, %v5940_v35  ;;  %v5942_v39 = vpop.eup %5941 }
0x2433   :  { %5947 = vrcp.f32 %v3985_v36 }
0x2434   :  { %5949 = vpow2.f32 %v4786_v44 }
0x2435   :  { %5951 = vpow2.f32 %v4809_v47 }
0x2439   :  { %v5944_v31 = vpop.eup %5943 }
0x243a   :  { %v3126_v6 = vmul.f32 %v5944_v31, %v5942_v39  ;;  %v5946_v40 = vpop.eup %5945  ;;  %v3125_v58 = vmul.f32 %v5944_v31, %v7084_v54 }
0x243c   :  { %3128 = vrot.lane.b32.xlu1 %v3126_v6, %s6253_s28 }
0x243d   :  { %v5948_v41 = vpop.eup %5947 }
0x243e   :  { %v3996_v38 = vmul.f32 %v5948_v41, %v5946_v40  ;;  %v5950_v52 = vpop.eup %5949  ;;  %v3995_v51 = vmul.f32 %v5948_v41, %v7088_v3 }
0x243f   :  { %v3122_v53 = vadd.f32 1.0, %v5950_v52  ;;  %v5952_v48 = vpop.eup %5951 }
0x2440   :  { %3998 = vrot.lane.b32.xlu0 %v3996_v38, %s6253_s28  ;;  %v3992_v49 = vadd.f32 1.0, %v5952_v48 }
0x2441   :  { %5953 = vrcp.f32 %v3122_v53 }
0x244b   :  { %v5954_v2 = vpop.eup %5953 }
0x24ae   :  { %v3129_v59 = vpop.permute.xlu1 %3128 }
0x24af   :  { %v7122_v62 = vadd.f32 %v3129_v59, %v3125_v58 }
0x24b1   :  { %5955 = vtanh.f32 %v7122_v62 }
0x24b2   :  { %v3999_v61 = vpop.permute.xlu0 %3998  ;;  %5957 = vrcp.f32 %v3992_v49 }
0x24b3   :  { %v7126_v63 = vadd.f32 %v3999_v61, %v3995_v51 }
0x24b5   :  { %5959 = vtanh.f32 %v7126_v63 }
0x24bb   :  { %v5956_v32 = vpop.eup %5955 }
0x24bc   :  { %v3133_v18 = vmul.f32 %v5956_v32, %v5954_v2  ;;  %v5958_v20 = vpop.eup %5957 }
0x24be   :  { %3135 = vrot.lane.b32.xlu1 %v3133_v18, %s6253_s28 }
0x24bf   :  { %v5960_v54 = vpop.eup %5959 }
0x24c0   :  { %v4003_v27 = vmul.f32 %v5960_v54, %v5958_v20 }
0x24c2   :  { %4005 = vrot.lane.b32.xlu0 %v4003_v27, %s6253_s28 }
0x2530   :  { %v3136_v0 = vpop.permute.xlu1 %3135 }
0x2531   :  { %3139 = vst.msk [vmem:[#allocation4 + $0x20] sm:$0xff] %vm195_vm0, %v3136_v0  ;;  %4787 = vmatmul.mubr.msk.f32.vlgmr.msra.gmra.mrb[24].mxu0 %vm195_vm0, %v3136_v0 }
0x2532   :  { %5343 = vmatpush1.bf16.msra.mxu0 %v6859_v5  ;;  %3317 = vmatprep.mubr.f32.mxu0 %v6252_v1 }
0x2533   :  { %5345 = vmatprep.subr.bf16.mxu0 %v6869_v56 }
0x2534   :  { %v4006_v3 = vpop.permute.xlu0 %4005 }
0x2535   :  { %4009 = vst.msk [vmem:[#allocation5 + $0x18] sm:$0xff] %vm195_vm0, %v4006_v3  ;;  %4810 = vmatmul.mubr.msk.f32.vlgmr.msra.gmra.mrb[22].mxu1 %vm195_vm0, %v4006_v3 }
0x2536   :  { %5347 = vmatpush1.bf16.msra.mxu0 %v6874_v60  ;;  %5471 = vmatpush1.bf16.msra.mxu1 %v6855_v43 }
0x2537   :  { %5349 = vmatprep.subr.bf16.mxu0 %v6884_v11  ;;  %5473 = vmatprep.subr.bf16.mxu1 %v6857_v46 }
0x2538   :  { %4187 = vmatprep.mubr.f32.mxu1 %v6252_v1 }
0x253a   :  { %5351 = vmatpush1.bf16.msra.mxu0 %v6888_v13  ;;  %5475 = vmatpush1.bf16.msra.mxu1 %v6867_v50 }
0x253b   :  { %5353 = vmatprep.subr.bf16.mxu0 %v6900_v9  ;;  %5477 = vmatprep.subr.bf16.mxu1 %v6872_v57 }
0x253e   :  { %5355 = vmatpush1.bf16.msra.mxu0 %v6904_v28  ;;  %5479 = vmatpush1.bf16.msra.mxu1 %v6881_v7 }
0x253f   :  { %5481 = vmatprep.subr.bf16.mxu1 %v6890_v14  ;;  %5357 = vmatprep.subr.bf16.mxu0 %v6835_v34 }
0x2542   :  { %5483 = vmatpush1.bf16.msra.mxu1 %v6898_v26 }
0x2543   :  { %5485 = vmatprep.subr.bf16.mxu1 %v6829_v55 }
0x2604   :  { %v3212_v10 = vpop.f32.mrb[24].mxu0 }
0x2605   :  { %v5542_v4 = vadd.f32 %v3212_v10, %v6954_v29  ;;  %v3214_v12 = vpop.f32.mrb[25].mxu0 }
0x2606   :  { %v5543_v23 = vadd.f32 %v3214_v12, %v6963_v42 }
0x2607   :  { %v4788_v15 = vmul.f32 -1.442695, %v5542_v4 }
0x2608   :  { %v4082_v17 = vpop.f32.mrb[22].mxu1  ;;  %v4789_v31 = vmul.f32 -1.442695, %v5543_v23 }
0x2609   :  { %5961 = vpow2.f32 %v4788_v15  ;;  %v5552_v19 = vadd.f32 %v4082_v17, %v6960_v37  ;;  %v4084_v16 = vpop.f32.mrb[23].mxu1 }
0x260a   :  { %v5553_v25 = vadd.f32 %v4084_v16, %v6966_v45 }
0x260b   :  { %v4811_v21 = vmul.f32 -1.442695, %v5552_v19 }
0x260c   :  { %v4812_v6 = vmul.f32 -1.442695, %v5553_v25 }
0x260d   :  { %5963 = vpow2.f32 %v4811_v21 }
0x260e   :  { %5965 = vtanh.f32 %v5543_v23 }
0x2613   :  { %v5962_v22 = vpop.eup %5961 }
0x2614   :  { %v3222_v34 = vadd.f32 1.0, %v5962_v22 }
0x2616   :  { %5967 = vrcp.f32 %v3222_v34 }
0x2617   :  { %v5964_v55 = vpop.eup %5963  ;;  %5969 = vtanh.f32 %v5553_v25 }
0x2618   :  { %v4092_v24 = vadd.f32 1.0, %v5964_v55  ;;  %v5966_v8 = vpop.eup %5965 }
0x261a   :  { %5971 = vrcp.f32 %v4092_v24 }
0x261b   :  { %5973 = vpow2.f32 %v4789_v31 }
0x261c   :  { %5975 = vpow2.f32 %v4812_v6 }
0x2620   :  { %v5968_v30 = vpop.eup %5967 }
0x2621   :  { %v3233_v33 = vmul.f32 %v5968_v30, %v5966_v8  ;;  %v5970_v35 = vpop.eup %5969  ;;  %v3232_v44 = vmul.f32 %v5968_v30, %v7122_v62 }
0x2623   :  { %3235 = vrot.lane.b32.xlu1 %v3233_v33, %s6253_s28 }
0x2624   :  { %v5972_v36 = vpop.eup %5971 }
0x2625   :  { %v4103_v39 = vmul.f32 %v5972_v36, %v5970_v35  ;;  %v5974_v40 = vpop.eup %5973  ;;  %v4102_v48 = vmul.f32 %v5972_v36, %v7126_v63 }
0x2626   :  { %v3229_v41 = vadd.f32 1.0, %v5974_v40  ;;  %v5976_v38 = vpop.eup %5975 }
0x2627   :  { %4105 = vrot.lane.b32.xlu0 %v4103_v39, %s6253_s28  ;;  %v4099_v53 = vadd.f32 1.0, %v5976_v38 }
0x2628   :  { %5977 = vrcp.f32 %v3229_v41 }
0x2632   :  { %v5978_v49 = vpop.eup %5977 }
0x2695   :  { %v3236_v47 = vpop.permute.xlu1 %3235 }
0x2696   :  { %v7160_v52 = vadd.f32 %v3236_v47, %v3232_v44 }
0x2698   :  { %5979 = vtanh.f32 %v7160_v52 }
0x2699   :  { %v4106_v58 = vpop.permute.xlu0 %4105  ;;  %5981 = vrcp.f32 %v4099_v53 }
0x269a   :  { %v7164_v59 = vadd.f32 %v4106_v58, %v4102_v48 }
0x269c   :  { %5983 = vtanh.f32 %v7164_v59 }
0x26a2   :  { %v5980_v51 = vpop.eup %5979 }
0x26a3   :  { %v3240_v61 = vmul.f32 %v5980_v51, %v5978_v49  ;;  %v5982_v2 = vpop.eup %5981 }
0x26a5   :  { %3242 = vrot.lane.b32.xlu1 %v3240_v61, %s6253_s28 }
0x26a6   :  { %v5984_v62 = vpop.eup %5983 }
0x26a7   :  { %v4110_v32 = vmul.f32 %v5984_v62, %v5982_v2 }
0x26a9   :  { %4112 = vrot.lane.b32.xlu0 %v4110_v32, %s6253_s28 }
0x2717   :  { %v3243_v18 = vpop.permute.xlu1 %3242 }
0x2718   :  { %3246 = vst.msk [vmem:[#allocation4 + $0x28] sm:$0xff] %vm195_vm0, %v3243_v18  ;;  %4790 = vmatmul.mubr.msk.f32.vlgmr.msra.gmra.mrb[26].mxu0 %vm195_vm0, %v3243_v18 }
0x2719   :  { %5359 = vmatpush1.bf16.msra.mxu0 %v6859_v5  ;;  %3424 = vmatprep.mubr.f32.mxu0 %v6252_v1 }
0x271a   :  { %5361 = vmatprep.subr.bf16.mxu0 %v6869_v56 }
0x271b   :  { %v4113_v63 = vpop.permute.xlu0 %4112 }
0x271c   :  { %4116 = vst.msk [vmem:[#allocation5 + $0x10] sm:$0xff] %vm195_vm0, %v4113_v63  ;;  %4813 = vmatmul.mubr.msk.f32.vlgmr.msra.gmra.mrb[20].mxu1 %vm195_vm0, %v4113_v63 }
0x271d   :  { %5363 = vmatpush1.bf16.msra.mxu0 %v6874_v60  ;;  %5487 = vmatpush1.bf16.msra.mxu1 %v6855_v43 }
0x271e   :  { %5365 = vmatprep.subr.bf16.mxu0 %v6884_v11  ;;  %5489 = vmatprep.subr.bf16.mxu1 %v6857_v46 }
0x271f   :  { %4294 = vmatprep.mubr.f32.mxu1 %v6252_v1 }
0x2721   :  { %5367 = vmatpush1.bf16.msra.mxu0 %v6888_v13  ;;  %5491 = vmatpush1.bf16.msra.mxu1 %v6867_v50 }
0x2722   :  { %5369 = vmatprep.subr.bf16.mxu0 %v6900_v9  ;;  %5493 = vmatprep.subr.bf16.mxu1 %v6872_v57 }
0x2725   :  { %5371 = vmatpush1.bf16.msra.mxu0 %v6904_v28  ;;  %5495 = vmatpush1.bf16.msra.mxu1 %v6881_v7 }
0x2726   :  { %5497 = vmatprep.subr.bf16.mxu1 %v6890_v14 }
0x2729   :  { %5499 = vmatpush1.bf16.msra.mxu1 %v6898_v26 }
0x27eb   :  { %v3319_v43 = vpop.f32.mrb[26].mxu0 }
0x27ec   :  { %v5544_v46 = vadd.f32 %v3319_v43, %v6954_v29  ;;  %v3321_v1 = vpop.f32.mrb[27].mxu0 }
0x27ed   :  { %v5545_v57 = vadd.f32 %v3321_v1, %v6963_v42 }
0x27ee   :  { %v4791_v5 = vmul.f32 -1.442695, %v5544_v46 }
0x27ef   :  { %v4189_v56 = vpop.f32.mrb[20].mxu1  ;;  %v4792_v10 = vmul.f32 -1.442695, %v5545_v57 }
0x27f0   :  { %5985 = vpow2.f32 %v4791_v5  ;;  %v5550_v50 = vadd.f32 %v4189_v56, %v6960_v37  ;;  %v4191_v60 = vpop.f32.mrb[21].mxu1 }
0x27f1   :  { %v5551_v14 = vadd.f32 %v4191_v60, %v6966_v45 }
0x27f2   :  { %v4814_v11 = vmul.f32 -1.442695, %v5550_v50 }
0x27f3   :  { %v4815_v4 = vmul.f32 -1.442695, %v5551_v14 }
0x27f4   :  { %5987 = vpow2.f32 %v4814_v11  ;;  %v4356_v11 = vld [vmem:[%s7330_s13 + $0x10] sm:$0xff] }
0x27f5   :  { %5989 = vtanh.f32 %v5545_v57  ;;  %v4357_v57 = vld [vmem:[%s7330_s13 + $0x18] sm:$0xff] }
0x27fa   :  { %v5986_v13 = vpop.eup %5985 }
0x27fb   :  { %v3329_v7 = vadd.f32 1.0, %v5986_v13 }
0x27fd   :  { %5991 = vrcp.f32 %v3329_v7  ;;  %v5504_v7 = vpack.c.bf16 %v4357_v57, %v4356_v11 }
0x27fe   :  { %v5988_v26 = vpop.eup %5987  ;;  %5993 = vtanh.f32 %v5551_v14 }
0x27ff   :  { %v4199_v9 = vadd.f32 1.0, %v5988_v26  ;;  %v5990_v28 = vpop.eup %5989 }
0x2801   :  { %5995 = vrcp.f32 %v4199_v9 }
0x2802   :  { %5997 = vpow2.f32 %v4792_v10 }
0x2803   :  { %5999 = vpow2.f32 %v4815_v4 }
0x2807   :  { %v5992_v20 = vpop.eup %5991 }
0x2808   :  { %v3340_v54 = vmul.f32 %v5992_v20, %v5990_v28  ;;  %v5994_v27 = vpop.eup %5993  ;;  %v3339_v19 = vmul.f32 %v5992_v20, %v7160_v52  ;;  %v4358_v28 = vld [vmem:[%s7330_s13 + $0x20] sm:$0xff]  ;;  %v4359_v20 = vld [vmem:[%s7330_s13 + $0x28] sm:$0xff] }
0x280a   :  { %3342 = vrot.lane.b32.xlu1 %v3340_v54, %s6253_s28  ;;  %v5508_v54 = vpack.c.bf16 %v4359_v20, %v4358_v28 }
0x280b   :  { %v5996_v0 = vpop.eup %5995 }
0x280c   :  { %v4210_v3 = vmul.f32 %v5996_v0, %v5994_v27  ;;  %v5998_v12 = vpop.eup %5997  ;;  %v4209_v22 = vmul.f32 %v5996_v0, %v7164_v59  ;;  %v4360_v27 = vld [vmem:[%s7330_s13 + $0x30] sm:$0xff]  ;;  %v4361_v0 = vld [vmem:[%s7330_s13 + $0x38] sm:$0xff] }
0x280d   :  { %v3336_v15 = vadd.f32 1.0, %v5998_v12  ;;  %v6000_v17 = vpop.eup %5999  ;;  %v4338_v12 = vld [vmem:[%s7329_s12] sm:$0xff] }
0x280e   :  { %4212 = vrot.lane.b32.xlu0 %v4210_v3, %s6253_s28  ;;  %v4206_v23 = vadd.f32 1.0, %v6000_v17  ;;  %v5512_v3 = vpack.c.bf16 %v4361_v0, %v4360_v27 }
0x280f   :  { %6001 = vrcp.f32 %v3336_v15  ;;  %v4339_v15 = vld [vmem:[%s7329_s12 + $0x8] sm:$0xff] }
0x2819   :  { %v6002_v55 = vpop.eup %6001 }
0x287c   :  { %v3343_v16 = vpop.permute.xlu1 %3342 }
0x287d   :  { %v7196_v21 = vadd.f32 %v3343_v16, %v3339_v19  ;;  %v5516_v19 = vpack.c.bf16 %v4339_v15, %v4338_v12 }
0x287f   :  { %6003 = vtanh.f32 %v7196_v21 }
0x2880   :  { %v4213_v34 = vpop.permute.xlu0 %4212  ;;  %6005 = vrcp.f32 %v4206_v23 }
0x2881   :  { %v7200_v25 = vadd.f32 %v4213_v34, %v4209_v22 }
0x2883   :  { %6007 = vtanh.f32 %v7200_v25 }
0x2889   :  { %v6004_v24 = vpop.eup %6003 }
0x288a   :  { %v3347_v8 = vmul.f32 %v6004_v24, %v6002_v55  ;;  %v6006_v30 = vpop.eup %6005  ;;  %v4341_v55 = vld [vmem:[%s7329_s12 + $0x18] sm:$0xff] }
0x288c   :  { %3349 = vrot.lane.b32.xlu1 %v3347_v8, %s6253_s28 }
0x288d   :  { %v6008_v33 = vpop.eup %6007 }
0x288e   :  { %v4217_v35 = vmul.f32 %v6008_v33, %v6006_v30  ;;  %v4342_v33 = vld [vmem:[%s7329_s12 + $0x20] sm:$0xff] }
0x2890   :  { %4219 = vrot.lane.b32.xlu0 %v4217_v35, %s6253_s28  ;;  %v4343_v35 = vld [vmem:[%s7329_s12 + $0x28] sm:$0xff] }
0x28fe   :  { %v3350_v36 = vpop.permute.xlu1 %3349 }
0x28ff   :  { %3353 = vst.msk [vmem:[#allocation4 + $0x30] sm:$0xff] %vm195_vm0, %v3350_v36  ;;  %4793 = vmatmul.mubr.msk.f32.vlgmr.msra.gmra.mrb[28].mxu0 %vm195_vm0, %v3350_v36  ;;  %v4348_v36 = vld [vmem:[#allocation5 + $0x10] sm:$0xff] }
0x2902   :  { %v4220_v39 = vpop.permute.xlu0 %4219 }
0x2903   :  { %4223 = vst.msk [vmem:[#allocation5 + $0x8] sm:$0xff] %vm195_vm0, %v4220_v39  ;;  %4816 = vmatmul.mubr.msk.f32.vlgmr.msra.gmra.mrb[18].mxu1 %vm195_vm0, %v4220_v39  ;;  %v5524_v39 = vpack.c.bf16 %v4343_v35, %v4342_v33 }
0x290a   :  { %v4347_v30 = vld [vmem:[#allocation5 + $0x8] sm:$0xff] }
0x29d2   :  { %v3426_v31 = vpop.f32.mrb[28].mxu0 }
0x29d3   :  { %v5546_v6 = vadd.f32 %v3426_v31, %v6954_v29  ;;  %v3428_v40 = vpop.f32.mrb[29].mxu0  ;;  %v4349_v31 = vld [vmem:[#allocation5 + $0x18] sm:$0xff] }
0x29d4   :  { %v5547_v53 = vadd.f32 %v3428_v40, %v6963_v42  ;;  %v4354_v42 = vld [vmem:[%s7330_s13] sm:$0xff]  ;;  %v4345_v40 = vld [vmem:[%s7329_s12 + $0x38] sm:$0xff] }
0x29d5   :  { %v4794_v41 = vmul.f32 -1.442695, %v5546_v6  ;;  %v4344_v6 = vld [vmem:[%s7329_s12 + $0x30] sm:$0xff] }
0x29d6   :  { %v4296_v38 = vpop.f32.mrb[18].mxu1  ;;  %v4795_v63 = vmul.f32 -1.442695, %v5547_v53 }
0x29d7   :  { %6009 = vpow2.f32 %v4794_v41  ;;  %v5548_v44 = vadd.f32 %v4296_v38, %v6960_v37  ;;  %v4298_v47 = vpop.f32.mrb[19].mxu1  ;;  %v4350_v41 = vld [vmem:[#allocation5 + $0x20] sm:$0xff]  ;;  %v5528_v38 = vpack.c.bf16 %v4345_v40, %v4344_v6 }
0x29d8   :  { %v5549_v59 = vadd.f32 %v4298_v47, %v6966_v45  ;;  %v4355_v45 = vld [vmem:[%s7330_s13 + $0x8] sm:$0xff]  ;;  %v4352_v47 = vld [vmem:[#allocation5 + $0x30] sm:$0xff] }
0x29d9   :  { %v4817_v52 = vmul.f32 -1.442695, %v5548_v44  ;;  %v5500_v18 = vpack.c.bf16 %v4355_v45, %v4354_v42  ;;  %v4351_v44 = vld [vmem:[#allocation5 + $0x28] sm:$0xff] }
0x29da   :  { %v4818_v43 = vmul.f32 -1.442695, %v5549_v59 }
0x29db   :  { %6011 = vpow2.f32 %v4817_v52  ;;  %5501 = vmatprep.subr.bf16.mxu0 %v5500_v18  ;;  %v4353_v52 = vld [vmem:[#allocation5 + $0x38] sm:$0xff] }
0x29dc   :  { %6013 = vtanh.f32 %v5547_v53  ;;  %5503 = vmatpush3.bf16.msra.mxu0 %v5500_v18  ;;  %v4330_v53 = vld [vmem:[#allocation4] sm:$0xff] }
0x29dd   :  { %5505 = vmatprep.subr.bf16.mxu0 %v5504_v7 }
0x29e0   :  { %5507 = vmatpush3.bf16.msra.mxu0 %v5504_v7 }
0x29e1   :  { %v6010_v48 = vpop.eup %6009  ;;  %5509 = vmatprep.subr.bf16.mxu0 %v5508_v54 }
0x29e2   :  { %v3436_v58 = vadd.f32 1.0, %v6010_v48  ;;  %v4331_v48 = vld [vmem:[#allocation4 + $0x8] sm:$0xff] }
0x29e4   :  { %6015 = vrcp.f32 %v3436_v58  ;;  %5511 = vmatpush3.bf16.msra.mxu0 %v5508_v54  ;;  %v4332_v58 = vld [vmem:[#allocation4 + $0x10] sm:$0xff] }
0x29e5   :  { %v6012_v49 = vpop.eup %6011  ;;  %6017 = vtanh.f32 %v5549_v59  ;;  %5513 = vmatprep.subr.bf16.mxu0 %v5512_v3  ;;  %v4333_v59 = vld [vmem:[#allocation4 + $0x18] sm:$0xff] }
0x29e6   :  { %v4306_v51 = vadd.f32 1.0, %v6012_v49  ;;  %v6014_v29 = vpop.eup %6013  ;;  %v4334_v49 = vld [vmem:[#allocation4 + $0x20] sm:$0xff] }
0x29e8   :  { %6019 = vrcp.f32 %v4306_v51  ;;  %5515 = vmatpush3.bf16.msra.mxu0 %v5512_v3  ;;  %v4335_v51 = vld [vmem:[#allocation4 + $0x28] sm:$0xff] }
0x29e9   :  { %6021 = vpow2.f32 %v4795_v63  ;;  %5517 = vmatprep.subr.bf16.mxu0 %v5516_v19 }
0x29ea   :  { %6023 = vpow2.f32 %v4818_v43 }
0x29ee   :  { %v6016_v61 = vpop.eup %6015 }
0x29ef   :  { %v3447_v2 = vmul.f32 %v6016_v61, %v6014_v29  ;;  %v6018_v62 = vpop.eup %6017  ;;  %v3446_v56 = vmul.f32 %v6016_v61, %v7196_v21  ;;  %v4336_v29 = vld [vmem:[#allocation4 + $0x30] sm:$0xff] }
0x29f1   :  { %3449 = vrot.lane.b32.xlu1 %v3447_v2, %s6253_s28  ;;  %v4835_v2 = vld [vmem:[#allocation8] ss:$0 sm:$0xff] }
0x29f2   :  { %v6020_v37 = vpop.eup %6019 }
0x29f3   :  { %v4317_v32 = vmul.f32 %v6020_v37, %v6018_v62  ;;  %v6022_v46 = vpop.eup %6021  ;;  %v4316_v14 = vmul.f32 %v6020_v37, %v7200_v25  ;;  %v4340_v25 = vld [vmem:[%s7329_s12 + $0x10] sm:$0xff] }
0x29f4   :  { %v3443_v1 = vadd.f32 1.0, %v6022_v46  ;;  %v6024_v5 = vpop.eup %6023  ;;  %v5520_v8 = vpack.c.bf16 %v4341_v55, %v4340_v25 }
0x29f5   :  { %4319 = vrot.lane.b32.xlu0 %v4317_v32, %s6253_s28  ;;  %v4313_v13 = vadd.f32 1.0, %v6024_v5 }
0x29f6   :  { %6025 = vrcp.f32 %v3443_v1 }
0x2a00   :  { %v6026_v10 = vpop.eup %6025 }
0x2a63   :  { %v3450_v50 = vpop.permute.xlu1 %3449 }
0x2a64   :  { %v3452_v60 = vadd.f32 %v3450_v50, %v3446_v56 }
0x2a66   :  { %6027 = vtanh.f32 %v3452_v60 }
0x2a67   :  { %v4320_v26 = vpop.permute.xlu0 %4319  ;;  %6029 = vrcp.f32 %v4313_v13 }
0x2a68   :  { %v4322_v9 = vadd.f32 %v4320_v26, %v4316_v14 }
0x2a6a   :  { %6031 = vtanh.f32 %v4322_v9 }
0x2a70   :  { %v6028_v4 = vpop.eup %6027 }
0x2a71   :  { %v3454_v17 = vmul.f32 %v6028_v4, %v6026_v10  ;;  %v6030_v16 = vpop.eup %6029 }
0x2a73   :  { %3456 = vrot.lane.b32.xlu1 %v3454_v17, %s6253_s28 }
0x2a74   :  { %v6032_v21 = vpop.eup %6031 }
0x2a75   :  { %v4324_v23 = vmul.f32 %v6032_v21, %v6030_v16 }
0x2a77   :  { %4326 = vrot.lane.b32.xlu0 %v4324_v23, %s6253_s28 }
0x2ae5   :  { %v3457_v22 = vpop.permute.xlu1 %3456 }
0x2ae6   :  { %3460 = vst.msk [vmem:[#allocation4 + $0x38] sm:$0xff] %vm195_vm0, %v3457_v22 }
0x2ae9   :  { %v4327_v34 = vpop.permute.xlu0 %4326 }
0x2aea   :  { %4329 = vst.msk [vmem:[#allocation5] sm:$0xff] %vm195_vm0, %v4327_v34 }
0x2aed   :  { %v4337_v61 = vld [vmem:[#allocation4 + $0x38] sm:$0xff] }
0x2af1   :  { %v4346_v24 = vld [vmem:[#allocation5] sm:$0xff] }
0x2af2   :  { %4884 = vmatprep.mubr.msk.f32.mxu0 %vm195_vm0, %v4346_v24 }
0x2af3   :  { %4885 = vmatmul.mubr.msk.f32.vlgmr.msra.gmra.mrb[30].mxu0 %vm195_vm0, %v4347_v30 }
0x2af4   :  { %5519 = vmatpush3.bf16.msra.mxu0 %v5516_v19  ;;  %4887 = vmatprep.mubr.msk.f32.mxu0 %vm195_vm0, %v4348_v36 }
0x2af5   :  { %5521 = vmatprep.subr.bf16.mxu0 %v5520_v8 }
0x2af7   :  { %4888 = vmatmul.mubr.msk.f32.gmra.mrb[32].mxu0 %vm195_vm0, %v4349_v31 }
0x2af8   :  { %5523 = vmatpush3.bf16.msra.mxu0 %v5520_v8  ;;  %4890 = vmatprep.mubr.msk.f32.mxu0 %vm195_vm0, %v4350_v41 }
0x2af9   :  { %5525 = vmatprep.subr.bf16.mxu0 %v5524_v39 }
0x2afb   :  { %4891 = vmatmul.mubr.msk.f32.gmra.mrb[34].mxu0 %vm195_vm0, %v4351_v44 }
0x2afc   :  { %5527 = vmatpush3.bf16.msra.mxu0 %v5524_v39  ;;  %4893 = vmatprep.mubr.msk.f32.mxu0 %vm195_vm0, %v4352_v47 }
0x2afd   :  { %5529 = vmatprep.subr.bf16.mxu0 %v5528_v38 }
0x2aff   :  { %4894 = vmatmul.mubr.msk.f32.gmra.mrb[36].mxu0 %vm195_vm0, %v4353_v52 }
0x2b00   :  { %5531 = vmatpush3.bf16.msra.mxu0 %v5528_v38  ;;  %4912 = vmatprep.mubr.msk.f32.mxu0 %vm195_vm0, %v4330_v53 }
0x2b03   :  { %4913 = vmatmul.mubr.msk.f32.vlgmr.msra.gmra.mrb[30].mxu0 %vm195_vm0, %v4331_v48 }
0x2b04   :  { %4915 = vmatprep.mubr.msk.f32.mxu0 %vm195_vm0, %v4332_v58 }
0x2b07   :  { %4916 = vmatmul.mubr.msk.f32.gmra.mrb[32].mxu0 %vm195_vm0, %v4333_v59 }
0x2b08   :  { %4918 = vmatprep.mubr.msk.f32.mxu0 %vm195_vm0, %v4334_v49 }
0x2b0b   :  { %4919 = vmatmul.mubr.msk.f32.gmra.mrb[34].mxu0 %vm195_vm0, %v4335_v51 }
0x2b0c   :  { %4921 = vmatprep.mubr.msk.f32.mxu0 %vm195_vm0, %v4336_v29 }
0x2b0f   :  { %4922 = vmatmul.mubr.msk.f32.gmra.mrb[36].mxu0 %vm195_vm0, %v4337_v61 }
0x2bd6   :  { %v4914_v62 = vpop.f32.mrb[30].mxu0 }
0x2bd7   :  { %v4628_v37 = vadd.f32 %v4914_v62, %v4835_v2  ;;  %v4581_v32 = vpop.f32.mrb[31].mxu0 }
0x2bd8   :  { %v4627_v42 = vadd.f32 %v4835_v2, %v4581_v32 }
0x2bd9   :  { %4637 = vst.msk [vmem:[%s7332_s15 + $0x8] sm:$0xff] %vm4635_vm1, %v4628_v37 }
0x2bda   :  { %4636 = vst.msk [vmem:[%s7332_s15] sm:$0xff] %vm4635_vm1, %v4627_v42  ;;  %v4917_v45 = vpop.f32.mrb[32].mxu0 }
0x2bdb   :  { %v4630_v18 = vadd.f32 %v4917_v45, %v4835_v2  ;;  %v4591_v63 = vpop.f32.mrb[33].mxu0 }
0x2bdc   :  { %v4629_v43 = vadd.f32 %v4835_v2, %v4591_v63 }
0x2bdd   :  { %4639 = vst.msk [vmem:[%s7332_s15 + $0x18] sm:$0xff] %vm4635_vm1, %v4630_v18 }
0x2bde   :  { %4638 = vst.msk [vmem:[%s7332_s15 + $0x10] sm:$0xff] %vm4635_vm1, %v4629_v43  ;;  %v4920_v46 = vpop.f32.mrb[34].mxu0 }
0x2bdf   :  { %v4632_v1 = vadd.f32 %v4920_v46, %v4835_v2  ;;  %v4601_v5 = vpop.f32.mrb[35].mxu0 }
0x2be0   :  { %v4631_v56 = vadd.f32 %v4835_v2, %v4601_v5 }
0x2be1   :  { %4641 = vst.msk [vmem:[%s7332_s15 + $0x28] sm:$0xff] %vm4635_vm1, %v4632_v1 }
0x2be2   :  { %4640 = vst.msk [vmem:[%s7332_s15 + $0x20] sm:$0xff] %vm4635_vm1, %v4631_v56  ;;  %v4923_v50 = vpop.f32.mrb[36].mxu0 }
0x2be3   :  { %v4634_v60 = vadd.f32 %v4923_v50, %v4835_v2  ;;  %v4611_v11 = vpop.f32.mrb[37].mxu0 }
0x2be4   :  { %v4633_v57 = vadd.f32 %v4835_v2, %v4611_v11 }
0x2be5   :  { %4643 = vst.msk [vmem:[%s7332_s15 + $0x38] sm:$0xff] %vm4635_vm1, %v4634_v60 }
0x2be6   :  { %4642 = vst.msk [vmem:[%s7332_s15 + $0x30] sm:$0xff] %vm4635_vm1, %v4633_v57 }
0x2be7   :  { %4648 = vsyncpa [#allocation10], 1 }
0x2be8   :  { %4649 = vsyncpa [#allocation12], 1 }
0x2be9   :  { %4650 = vsyncpa [#allocation15], 1 }
0x2bea   :  { %4651 = vsyncpa [#allocation18], 1 }
0x2beb   :  { %4652 = vsyncpa [#allocation21], 1 }

</bundles_post_ra>
